<compile_context>
chip_gen: v6e
topology: v6e:2x2x1
jax: 0.10.0
libtpu: 0.0.40
codegen_flags: <defaults>
</compile_context>

<pallas_src>
import functools

import jax
import jax.numpy as jnp
from jax.experimental import pallas as pl
from jax.experimental.pallas import tpu as pltpu

# ---------------------------------------------------------------------------
# Model hyper-parameters (PyTorch module defaults)
# ---------------------------------------------------------------------------
PROJECTION_DIM = 1024
HIDDEN_A = [512, 256, 128]
NUM_CLASSES_A = 5
HIDDEN_B = [512, 128]
NUM_CLASSES_B = 2
LN_EPS = 1e-5           # nn.LayerNorm default
OUT_PAD = 128           # lane-dense padded logit width per task

# Synthetic encoder front-end sizes (stand-in for BERT hidden states)
BATCH = 2
SEQ = 8
ENC_DIM = 256

# TODO(synk): the pretrained 'bert-base-uncased' transformer stack (attention
# layers, tokenization of raw strings, attention-masked mean pooling) is
# replaced by a synthetic mean-pool + linear projection encoder.


# ---------------------------------------------------------------------------
# Kernel
# ---------------------------------------------------------------------------
def _mtl_kernel(
    x_ref,                       # (B, S, E) token embeddings, f32
    wproj_ref, bproj_ref,        # (E, P) bf16, (1, P) f32
    w0_ref, b0_ref,              # fused LN-folded first layers: (P, 1024) bf16, (1, 1024) f32
    wa1_ref, ba1_ref,            # (512, 256) bf16, (1, 256) f32
    wa2_ref, ba2_ref,            # (256, 128) bf16, (1, 128) f32
    wa3_ref, ba3_ref,            # (128, 128) bf16 (cols 0..4 real), (1, 128) f32
    wb1_ref, bb1_ref,            # (512, 128) bf16, (1, 128) f32
    wb2_ref, bb2_ref,            # (128, 128) bf16 (cols 0..1 real), (1, 128) f32
    out_ref,                     # (B, 2*OUT_PAD) f32 : [taskA_pad | taskB_pad]
):
    def linear(h_f32, w_ref, b_ref):
        # bf16 operands into the MXU, f32 accumulation, f32 bias add.
        return (
            jnp.dot(h_f32.astype(jnp.bfloat16), w_ref[...],
                    preferred_element_type=jnp.float32)
            + b_ref[...]
        )

    # --- shared encoder: mean pool over sequence + projection ----------------
    x = x_ref[...]                                   # (B, S, E) f32
    pooled = jnp.mean(x, axis=1)                     # (B, E)    f32
    emb = linear(pooled, wproj_ref, bproj_ref)       # (B, P)    f32

    # --- shared LayerNorm statistics (affine folded into w0/b0) --------------
    mu = jnp.mean(emb, axis=-1, keepdims=True)
    var = jnp.mean((emb - mu) ** 2, axis=-1, keepdims=True)
    n = (emb - mu) * jax.lax.rsqrt(var + LN_EPS)     # (B, P) f32

    # --- fused first layer of both heads (1024 -> 512+512) -------------------
    h0 = jnp.maximum(linear(n, w0_ref, b0_ref), 0.0)  # (B, 1024)
    ha = h0[:, : HIDDEN_A[0]]                         # (B, 512) task A
    hb = h0[:, HIDDEN_A[0]:]                          # (B, 512) task B

    # --- task A head ----------------------------------------------------------
    ha = jnp.maximum(linear(ha, wa1_ref, ba1_ref), 0.0)   # (B, 256)
    ha = jnp.maximum(linear(ha, wa2_ref, ba2_ref), 0.0)   # (B, 128)
    la = linear(ha, wa3_ref, ba3_ref)                     # (B, 128) padded logits

    # --- task B head ----------------------------------------------------------
    hb = jnp.maximum(linear(hb, wb1_ref, bb1_ref), 0.0)   # (B, 128)
    lb = linear(hb, wb2_ref, bb2_ref)                     # (B, 128) padded logits

    # Single lane-dense output slab.
    out_ref[...] = jnp.concatenate([la, lb], axis=-1)     # (B, 256)


# ---------------------------------------------------------------------------
# Parameter construction (deterministic) — "PyTorch-like" f32 params
# ---------------------------------------------------------------------------
def init_params(key):
    def linear_params(k, din, dout):
        kw, kb = jax.random.split(k)
        lim = 1.0 / jnp.sqrt(din)
        w = jax.random.uniform(kw, (din, dout), jnp.float32, -lim, lim)
        b = jax.random.uniform(kb, (1, dout), jnp.float32, -lim, lim)
        return w, b

    keys = jax.random.split(key, 16)
    params = {}
    params["wproj"], params["bproj"] = linear_params(keys[0], ENC_DIM, PROJECTION_DIM)
    params["lna_g"] = jnp.ones((1, PROJECTION_DIM), jnp.float32)
    params["lna_b"] = jnp.zeros((1, PROJECTION_DIM), jnp.float32)
    dims_a = [PROJECTION_DIM] + HIDDEN_A + [NUM_CLASSES_A]
    for i, (din, dout) in enumerate(zip(dims_a[:-1], dims_a[1:])):
        params[f"wa{i}"], params[f"ba{i}"] = linear_params(keys[1 + i], din, dout)
    params["lnb_g"] = jnp.ones((1, PROJECTION_DIM), jnp.float32)
    params["lnb_b"] = jnp.zeros((1, PROJECTION_DIM), jnp.float32)
    dims_b = [PROJECTION_DIM] + HIDDEN_B + [NUM_CLASSES_B]
    for i, (din, dout) in enumerate(zip(dims_b[:-1], dims_b[1:])):
        params[f"wb{i}"], params[f"bb{i}"] = linear_params(keys[8 + i], din, dout)
    return params


# ---------------------------------------------------------------------------
# One-time weight preparation (LN fold, first-layer fusion, bf16 cast, padding)
# ---------------------------------------------------------------------------
def prepare_params(params):
    f32, bf16 = jnp.float32, jnp.bfloat16

    # Fold LayerNorm affine (gamma/beta) into each head's first Linear:
    #   (n * g + beta) @ W + b  ==  n @ (diag(g) W) + (beta @ W + b)
    g_a = params["lna_g"].reshape(-1, 1)
    g_b = params["lnb_g"].reshape(-1, 1)
    wa0_f = params["wa0"] * g_a
    ba0_f = params["lna_b"] @ params["wa0"] + params["ba0"]
    wb0_f = params["wb0"] * g_b
    bb0_f = params["lnb_b"] @ params["wb0"] + params["bb0"]

    # Fuse both first layers into one (P, 1024) matmul.
    w0 = jnp.concatenate([wa0_f, wb0_f], axis=1)
    b0 = jnp.concatenate([ba0_f, bb0_f], axis=1)

    # Pad final layers to 128 output lanes (lane-dense stores).
    def pad_last(w, b):
        din, dout = w.shape
        wp = jnp.zeros((din, OUT_PAD), f32).at[:, :dout].set(w)
        bp = jnp.zeros((1, OUT_PAD), f32).at[:, :dout].set(b)
        return wp, bp

    wa3_p, ba3_p = pad_last(params["wa3"], params["ba3"])
    wb2_p, bb2_p = pad_last(params["wb2"], params["bb2"])

    prep = {
        "wproj": params["wproj"].astype(bf16), "bproj": params["bproj"].astype(f32),
        "w0": w0.astype(bf16),                 "b0": b0.astype(f32),
        "wa1": params["wa1"].astype(bf16),     "ba1": params["ba1"].astype(f32),
        "wa2": params["wa2"].astype(bf16),     "ba2": params["ba2"].astype(f32),
        "wa3": wa3_p.astype(bf16),             "ba3": ba3_p,
        "wb1": params["wb1"].astype(bf16),     "bb1": params["bb1"].astype(f32),
        "wb2": wb2_p.astype(bf16),             "bb2": bb2_p,
    }
    return prep


# ---------------------------------------------------------------------------
# Wrapper
# ---------------------------------------------------------------------------
@jax.jit
def multi_task_forward(token_embeds, prep):
    b = token_embeds.shape[0]
    inputs = [
        token_embeds,
        prep["wproj"], prep["bproj"],
        prep["w0"], prep["b0"],
        prep["wa1"], prep["ba1"],
        prep["wa2"], prep["ba2"],
        prep["wa3"], prep["ba3"],
        prep["wb1"], prep["bb1"],
        prep["wb2"], prep["bb2"],
    ]

    # Cost estimate: memory-bound custom call (all weights re-read each call).
    flops = 2 * b * (
        ENC_DIM * PROJECTION_DIM
        + PROJECTION_DIM * (HIDDEN_A[0] + HIDDEN_B[0])
        + HIDDEN_A[0] * HIDDEN_A[1] + HIDDEN_A[1] * HIDDEN_A[2]
        + HIDDEN_A[2] * OUT_PAD
        + HIDDEN_B[0] * HIDDEN_B[1] + HIDDEN_B[1] * OUT_PAD
    )
    bytes_accessed = (
        sum(int(a.size) * a.dtype.itemsize for a in inputs)
        + b * 2 * OUT_PAD * 4
    )
    cost = pl.CostEstimate(flops=flops, transcendentals=b,
                           bytes_accessed=bytes_accessed)

    vmem_spec = pl.BlockSpec(memory_space=pltpu.MemorySpace.VMEM)
    out = pl.pallas_call(
        _mtl_kernel,
        out_shape=jax.ShapeDtypeStruct((b, 2 * OUT_PAD), jnp.float32),
        in_specs=[vmem_spec] * len(inputs),
        out_specs=vmem_spec,
        compiler_params=pltpu.CompilerParams(vmem_limit_bytes=16 << 20),
        cost_estimate=cost,
    )(*inputs)

    return {
        "task_a_logits": out[:, :NUM_CLASSES_A],
        "task_b_logits": out[:, OUT_PAD:OUT_PAD + NUM_CLASSES_B],
    }


# ---------------------------------------------------------------------------
# References
# ---------------------------------------------------------------------------
def reference_forward_f32(token_embeds, params):
    """Original-module math, all f32 (loose comparison vs. bf16 kernel)."""
    pooled = jnp.mean(token_embeds, axis=1)
    emb = pooled @ params["wproj"] + params["bproj"]

    def ln(h, g, beta):
        mu = jnp.mean(h, axis=-1, keepdims=True)
        var = jnp.mean((h - mu) ** 2, axis=-1, keepdims=True)
        return (h - mu) * jax.lax.rsqrt(var + LN_EPS) * g + beta

    ha = ln(emb, params["lna_g"], params["lna_b"])
    for i in range(len(HIDDEN_A)):
        ha = jnp.maximum(ha @ params[f"wa{i}"] + params[f"ba{i}"], 0.0)
    la = ha @ params[f"wa{len(HIDDEN_A)}"] + params[f"ba{len(HIDDEN_A)}"]

    hb = ln(emb, params["lnb_g"], params["lnb_b"])
    for i in range(len(HIDDEN_B)):
        hb = jnp.maximum(hb @ params[f"wb{i}"] + params[f"bb{i}"], 0.0)
    lb = hb @ params[f"wb{len(HIDDEN_B)}"] + params[f"bb{len(HIDDEN_B)}"]
    return la, lb


def reference_forward_prepared(token_embeds, prep):
    """Bit-faithful pure-JAX replica of the kernel math (tight comparison)."""
    def lin(h, w, b):
        return jnp.dot(h.astype(jnp.bfloat16), w,
                       preferred_element_type=jnp.float32) + b

    pooled = jnp.mean(token_embeds, axis=1)
    emb = lin(pooled, prep["wproj"], prep["bproj"])
    mu = jnp.mean(emb, axis=-1, keepdims=True)
    var = jnp.mean((emb - mu) ** 2, axis=-1, keepdims=True)
    n = (emb - mu) * jax.lax.rsqrt(var + LN_EPS)

    h0 = jnp.maximum(lin(n, prep["w0"], prep["b0"]), 0.0)
    ha, hb = h0[:, :HIDDEN_A[0]], h0[:, HIDDEN_A[0]:]

    ha = jnp.maximum(lin(ha, prep["wa1"], prep["ba1"]), 0.0)
    ha = jnp.maximum(lin(ha, prep["wa2"], prep["ba2"]), 0.0)
    la = lin(ha, prep["wa3"], prep["ba3"])

    hb = jnp.maximum(lin(hb, prep["wb1"], prep["bb1"]), 0.0)
    lb = lin(hb, prep["wb2"], prep["bb2"])
    return la[:, :NUM_CLASSES_A], lb[:, :NUM_CLASSES_B]


if __name__ == "__main__":
    key = jax.random.PRNGKey(0)
    k_x, k_p = jax.random.split(key)
    token_embeds = jax.random.normal(k_x, (BATCH, SEQ, ENC_DIM), jnp.float32)
    params = init_params(k_p)
    prep = jax.tree_util.tree_map(jax.block_until_ready, prepare_params(params))

    out = multi_task_forward(token_embeds, prep)
    jax.block_until_ready(out)

    assert out["task_a_logits"].shape == (BATCH, NUM_CLASSES_A)
    assert out["task_b_logits"].shape == (BATCH, NUM_CLASSES_B)

    # Tight check vs. a pure-JAX replica of the kernel math (same bf16 weights).
    ref_a, ref_b = reference_forward_prepared(token_embeds, prep)
    assert jnp.allclose(out["task_a_logits"], ref_a, atol=1e-2, rtol=1e-2)
    assert jnp.allclose(out["task_b_logits"], ref_b, atol=1e-2, rtol=1e-2)

    # Loose check vs. the original full-f32 module math (bf16 weight quantization).
    ref_a32, ref_b32 = reference_forward_f32(token_embeds, params)
    assert jnp.allclose(out["task_a_logits"], ref_a32, atol=1e-1, rtol=1e-1)
    assert jnp.allclose(out["task_b_logits"], ref_b32, atol=1e-1, rtol=1e-1)

    print("KERNEL_OK")
</pallas_src>

<mosaic_0001>
module attributes {stable_mosaic.version = 11 : i64} {
  func.func @_mtl_kernel(%arg0: memref<2x8x256xf32, #tpu.memory_space<vmem>>, %arg1: memref<256x1024xbf16, #tpu.memory_space<vmem>>, %arg2: memref<1x1024xf32, #tpu.memory_space<vmem>>, %arg3: memref<1024x1024xbf16, #tpu.memory_space<vmem>>, %arg4: memref<1x1024xf32, #tpu.memory_space<vmem>>, %arg5: memref<512x256xbf16, #tpu.memory_space<vmem>>, %arg6: memref<1x256xf32, #tpu.memory_space<vmem>>, %arg7: memref<256x128xbf16, #tpu.memory_space<vmem>>, %arg8: memref<1x128xf32, #tpu.memory_space<vmem>>, %arg9: memref<128x128xbf16, #tpu.memory_space<vmem>>, %arg10: memref<1x128xf32, #tpu.memory_space<vmem>>, %arg11: memref<512x128xbf16, #tpu.memory_space<vmem>>, %arg12: memref<1x128xf32, #tpu.memory_space<vmem>>, %arg13: memref<128x128xbf16, #tpu.memory_space<vmem>>, %arg14: memref<1x128xf32, #tpu.memory_space<vmem>>, %arg15: memref<2x256xf32, #tpu.memory_space<vmem>>) attributes {dimension_semantics = [], scalar_prefetch = 0 : i64, scratch_operands = 0 : i64, tpu.core_type = #tpu.core_type<tc>} {
    %c0 = arith.constant 0 : index
    %c0_0 = arith.constant 0 : index
    %c0_1 = arith.constant 0 : index
    %0 = vector.load %arg0[%c0, %c0_0, %c0_1] : memref<2x8x256xf32, #tpu.memory_space<vmem>>, vector<2x8x256xf32>
    %cst = arith.constant dense<0.000000e+00> : vector<2x256xf32>
    %1 = vector.multi_reduction <add>, %0, %cst [1] : vector<2x8x256xf32> to vector<2x256xf32>
    %cst_2 = arith.constant 8.000000e+00 : f32
    %2 = vector.broadcast %cst_2 : f32 to vector<2x256xf32>
    %3 = arith.divf %1, %2 : vector<2x256xf32>
    %4 = arith.truncf %3 : vector<2x256xf32> to vector<2x256xbf16>
    %c0_3 = arith.constant 0 : index
    %c0_4 = arith.constant 0 : index
    %5 = vector.load %arg1[%c0_3, %c0_4] : memref<256x1024xbf16, #tpu.memory_space<vmem>>, vector<256x1024xbf16>
    %cst_5 = arith.constant dense<0.000000e+00> : vector<2x1024xf32>
    %6 = tpu.matmul %4, %5, %cst_5 {dimension_numbers = #tpu.dot_dimension_numbers<[1], [0], [0], [1], [0, 0, 1, 1], [], []>} : vector<2x256xbf16>, vector<256x1024xbf16>, vector<2x1024xf32> -> vector<2x1024xf32>
    %c0_6 = arith.constant 0 : index
    %c0_7 = arith.constant 0 : index
    %7 = vector.load %arg2[%c0_6, %c0_7] : memref<1x1024xf32, #tpu.memory_space<vmem>>, vector<1x1024xf32>
    %8 = vector.broadcast %7 : vector<1x1024xf32> to vector<2x1024xf32>
    %9 = arith.addf %6, %8 : vector<2x1024xf32>
    %cst_8 = arith.constant dense<0.000000e+00> : vector<2xf32>
    %10 = vector.multi_reduction <add>, %9, %cst_8 [1] : vector<2x1024xf32> to vector<2xf32>
    %11 = vector.shape_cast %10 : vector<2xf32> to vector<2x1xf32>
    %cst_9 = arith.constant 1.024000e+03 : f32
    %12 = vector.broadcast %cst_9 : f32 to vector<2x1xf32>
    %13 = arith.divf %11, %12 : vector<2x1xf32>
    %14 = vector.broadcast %13 : vector<2x1xf32> to vector<2x1024xf32>
    %15 = arith.subf %9, %14 : vector<2x1024xf32>
    %16 = arith.mulf %15, %15 : vector<2x1024xf32>
    %cst_10 = arith.constant dense<0.000000e+00> : vector<2xf32>
    %17 = vector.multi_reduction <add>, %16, %cst_10 [1] : vector<2x1024xf32> to vector<2xf32>
    %18 = vector.shape_cast %17 : vector<2xf32> to vector<2x1xf32>
    %cst_11 = arith.constant 1.024000e+03 : f32
    %19 = vector.broadcast %cst_11 : f32 to vector<2x1xf32>
    %20 = arith.divf %18, %19 : vector<2x1xf32>
    %21 = vector.broadcast %13 : vector<2x1xf32> to vector<2x1024xf32>
    %22 = arith.subf %9, %21 : vector<2x1024xf32>
    %cst_12 = arith.constant 9.99999974E-6 : f32
    %23 = vector.broadcast %cst_12 : f32 to vector<2x1xf32>
    %24 = arith.addf %20, %23 : vector<2x1xf32>
    %25 = math.rsqrt %24 : vector<2x1xf32>
    %26 = vector.broadcast %25 : vector<2x1xf32> to vector<2x1024xf32>
    %27 = arith.mulf %22, %26 : vector<2x1024xf32>
    %28 = arith.truncf %27 : vector<2x1024xf32> to vector<2x1024xbf16>
    %c0_13 = arith.constant 0 : index
    %c0_14 = arith.constant 0 : index
    %29 = vector.load %arg3[%c0_13, %c0_14] : memref<1024x1024xbf16, #tpu.memory_space<vmem>>, vector<1024x1024xbf16>
    %cst_15 = arith.constant dense<0.000000e+00> : vector<2x1024xf32>
    %30 = tpu.matmul %28, %29, %cst_15 {dimension_numbers = #tpu.dot_dimension_numbers<[1], [0], [0], [1], [0, 0, 1, 1], [], []>} : vector<2x1024xbf16>, vector<1024x1024xbf16>, vector<2x1024xf32> -> vector<2x1024xf32>
    %c0_16 = arith.constant 0 : index
    %c0_17 = arith.constant 0 : index
    %31 = vector.load %arg4[%c0_16, %c0_17] : memref<1x1024xf32, #tpu.memory_space<vmem>>, vector<1x1024xf32>
    %32 = vector.broadcast %31 : vector<1x1024xf32> to vector<2x1024xf32>
    %33 = arith.addf %30, %32 : vector<2x1024xf32>
    %cst_18 = arith.constant 0.000000e+00 : f32
    %34 = vector.broadcast %cst_18 : f32 to vector<2x1024xf32>
    %35 = arith.maximumf %33, %34 : vector<2x1024xf32>
    %36 = vector.extract_strided_slice %35 {offsets = [0, 0], sizes = [2, 512], strides = [1, 1]} : vector<2x1024xf32> to vector<2x512xf32>
    %37 = vector.extract_strided_slice %35 {offsets = [0, 512], sizes = [2, 512], strides = [1, 1]} : vector<2x1024xf32> to vector<2x512xf32>
    %38 = arith.truncf %36 : vector<2x512xf32> to vector<2x512xbf16>
    %c0_19 = arith.constant 0 : index
    %c0_20 = arith.constant 0 : index
    %39 = vector.load %arg5[%c0_19, %c0_20] : memref<512x256xbf16, #tpu.memory_space<vmem>>, vector<512x256xbf16>
    %cst_21 = arith.constant dense<0.000000e+00> : vector<2x256xf32>
    %40 = tpu.matmul %38, %39, %cst_21 {dimension_numbers = #tpu.dot_dimension_numbers<[1], [0], [0], [1], [0, 0, 1, 1], [], []>} : vector<2x512xbf16>, vector<512x256xbf16>, vector<2x256xf32> -> vector<2x256xf32>
    %c0_22 = arith.constant 0 : index
    %c0_23 = arith.constant 0 : index
    %41 = vector.load %arg6[%c0_22, %c0_23] : memref<1x256xf32, #tpu.memory_space<vmem>>, vector<1x256xf32>
    %42 = vector.broadcast %41 : vector<1x256xf32> to vector<2x256xf32>
    %43 = arith.addf %40, %42 : vector<2x256xf32>
    %cst_24 = arith.constant 0.000000e+00 : f32
    %44 = vector.broadcast %cst_24 : f32 to vector<2x256xf32>
    %45 = arith.maximumf %43, %44 : vector<2x256xf32>
    %46 = arith.truncf %45 : vector<2x256xf32> to vector<2x256xbf16>
    %c0_25 = arith.constant 0 : index
    %c0_26 = arith.constant 0 : index
    %47 = vector.load %arg7[%c0_25, %c0_26] : memref<256x128xbf16, #tpu.memory_space<vmem>>, vector<256x128xbf16>
    %cst_27 = arith.constant dense<0.000000e+00> : vector<2x128xf32>
    %48 = tpu.matmul %46, %47, %cst_27 {dimension_numbers = #tpu.dot_dimension_numbers<[1], [0], [0], [1], [0, 0, 1, 1], [], []>} : vector<2x256xbf16>, vector<256x128xbf16>, vector<2x128xf32> -> vector<2x128xf32>
    %c0_28 = arith.constant 0 : index
    %c0_29 = arith.constant 0 : index
    %49 = vector.load %arg8[%c0_28, %c0_29] : memref<1x128xf32, #tpu.memory_space<vmem>>, vector<1x128xf32>
    %50 = vector.broadcast %49 : vector<1x128xf32> to vector<2x128xf32>
    %51 = arith.addf %48, %50 : vector<2x128xf32>
    %cst_30 = arith.constant 0.000000e+00 : f32
    %52 = vector.broadcast %cst_30 : f32 to vector<2x128xf32>
    %53 = arith.maximumf %51, %52 : vector<2x128xf32>
    %54 = arith.truncf %53 : vector<2x128xf32> to vector<2x128xbf16>
    %c0_31 = arith.constant 0 : index
    %c0_32 = arith.constant 0 : index
    %55 = vector.load %arg9[%c0_31, %c0_32] : memref<128x128xbf16, #tpu.memory_space<vmem>>, vector<128x128xbf16>
    %cst_33 = arith.constant dense<0.000000e+00> : vector<2x128xf32>
    %56 = tpu.matmul %54, %55, %cst_33 {dimension_numbers = #tpu.dot_dimension_numbers<[1], [0], [0], [1], [0, 0, 1, 1], [], []>} : vector<2x128xbf16>, vector<128x128xbf16>, vector<2x128xf32> -> vector<2x128xf32>
    %c0_34 = arith.constant 0 : index
    %c0_35 = arith.constant 0 : index
    %57 = vector.load %arg10[%c0_34, %c0_35] : memref<1x128xf32, #tpu.memory_space<vmem>>, vector<1x128xf32>
    %58 = vector.broadcast %57 : vector<1x128xf32> to vector<2x128xf32>
    %59 = arith.addf %56, %58 : vector<2x128xf32>
    %60 = arith.truncf %37 : vector<2x512xf32> to vector<2x512xbf16>
    %c0_36 = arith.constant 0 : index
    %c0_37 = arith.constant 0 : index
    %61 = vector.load %arg11[%c0_36, %c0_37] : memref<512x128xbf16, #tpu.memory_space<vmem>>, vector<512x128xbf16>
    %cst_38 = arith.constant dense<0.000000e+00> : vector<2x128xf32>
    %62 = tpu.matmul %60, %61, %cst_38 {dimension_numbers = #tpu.dot_dimension_numbers<[1], [0], [0], [1], [0, 0, 1, 1], [], []>} : vector<2x512xbf16>, vector<512x128xbf16>, vector<2x128xf32> -> vector<2x128xf32>
    %c0_39 = arith.constant 0 : index
    %c0_40 = arith.constant 0 : index
    %63 = vector.load %arg12[%c0_39, %c0_40] : memref<1x128xf32, #tpu.memory_space<vmem>>, vector<1x128xf32>
    %64 = vector.broadcast %63 : vector<1x128xf32> to vector<2x128xf32>
    %65 = arith.addf %62, %64 : vector<2x128xf32>
    %cst_41 = arith.constant 0.000000e+00 : f32
    %66 = vector.broadcast %cst_41 : f32 to vector<2x128xf32>
    %67 = arith.maximumf %65, %66 : vector<2x128xf32>
    %68 = arith.truncf %67 : vector<2x128xf32> to vector<2x128xbf16>
    %c0_42 = arith.constant 0 : index
    %c0_43 = arith.constant 0 : index
    %69 = vector.load %arg13[%c0_42, %c0_43] : memref<128x128xbf16, #tpu.memory_space<vmem>>, vector<128x128xbf16>
    %cst_44 = arith.constant dense<0.000000e+00> : vector<2x128xf32>
    %70 = tpu.matmul %68, %69, %cst_44 {dimension_numbers = #tpu.dot_dimension_numbers<[1], [0], [0], [1], [0, 0, 1, 1], [], []>} : vector<2x128xbf16>, vector<128x128xbf16>, vector<2x128xf32> -> vector<2x128xf32>
    %c0_45 = arith.constant 0 : index
    %c0_46 = arith.constant 0 : index
    %71 = vector.load %arg14[%c0_45, %c0_46] : memref<1x128xf32, #tpu.memory_space<vmem>>, vector<1x128xf32>
    %72 = vector.broadcast %71 : vector<1x128xf32> to vector<2x128xf32>
    %73 = arith.addf %70, %72 : vector<2x128xf32>
    %74 = tpu.concatenate %59, %73 in 1 : vector<2x128xf32>, vector<2x128xf32> -> vector<2x256xf32>
    %c0_47 = arith.constant 0 : index
    %c0_48 = arith.constant 0 : index
    %75 = vector.load %arg15[%c0_47, %c0_48] : memref<2x256xf32, #tpu.memory_space<vmem>>, vector<2x256xf32>
    tpu.vector_store %arg15[%c0_47, %c0_48], %74 {strides = array<i32>} : memref<2x256xf32, #tpu.memory_space<vmem>>, vector<2x256xf32>,
    return
  }
}

</mosaic_0001>

<bundles_post_ra>
// kernel: multi_task_forward.1
= control target key start
LH: loop header
LB: loop body
LE: loop exit
PB: predicated region body
PF: predicated region fallthrough
CT: control target
= control target key end

     0   :  { %20 = vsyncpa [#allocation3], 0  ;;  %s8219_s0 = inlined_call_operand.hbm [shape: f32[2,8,256], index: 0, kind: input, shape index: {}]   ;;  %s8220_s1 = inlined_call_operand.hbm [shape: bf16[256,1024], index: 1, kind: input, shape index: {}]   ;;  %s8221_s2 = inlined_call_operand.hbm [shape: f32[1,1024], index: 2, kind: input, shape index: {}]   ;;  %s8222_s3 = inlined_call_operand.hbm [shape: bf16[1024,1024], index: 3, kind: input, shape index: {}]   ;;  %s8223_s4 = inlined_call_operand.hbm [shape: f32[1,1024], index: 4, kind: input, shape index: {}]   ;;  %s8224_s5 = inlined_call_operand.hbm [shape: bf16[512,256], index: 5, kind: input, shape index: {}]   ;;  %s8225_s6 = inlined_call_operand.hbm [shape: f32[1,256], index: 6, kind: input, shape index: {}]   ;;  %s8226_s7 = inlined_call_operand.hbm [shape: bf16[256,128], index: 7, kind: input, shape index: {}]   ;;  %s8227_s8 = inlined_call_operand.hbm [shape: f32[1,128], index: 8, kind: input, shape index: {}]   ;;  %s8228_s9 = inlined_call_operand.hbm [shape: bf16[128,128], index: 9, kind: input, shape index: {}]   ;;  %s8229_s10 = inlined_call_operand.hbm [shape: f32[1,128], index: 10, kind: input, shape index: {}]   ;;  %s8230_s11 = inlined_call_operand.hbm [shape: bf16[512,128], index: 11, kind: input, shape index: {}]   ;;  %s8231_s12 = inlined_call_operand.hbm [shape: f32[1,128], index: 12, kind: input, shape index: {}]   ;;  %s8232_s13 = inlined_call_operand.hbm [shape: bf16[128,128], index: 13, kind: input, shape index: {}]   ;;  %s8233_s14 = inlined_call_operand.hbm [shape: f32[1,128], index: 14, kind: input, shape index: {}]   ;;  %s8234_s15 = inlined_call_operand.vmem [shape: f32[2,256], index: 15, kind: output, shape index: {}]  }
   0x1   :  { %21 = vsyncpa [#allocation5], 0 }
   0x2   :  { %22 = vsyncpa [#allocation8], 0 }
   0x3   :  { %23 = vsyncpa [#allocation11], 0 }
   0x4   :  { %24 = vsyncpa [#allocation14], 0 }
   0x5   :  { %25 = vsyncpa [#allocation17], 0 }
   0x6   :  { %26 = vsyncpa [#allocation20], 0 }
   0x7   :  { %27 = vsyncpa [#allocation23], 0  ;;  %s7775_s18 = smov [#allocation4]  }
   0x8   :  { %s45_s19 = sshll.u32 %s7775_s18, 4  ;;  %s46_s19 = int_to_ptr.vmem [resolvable:$true] %s45_s19 }
   0x9   :  { %s7467_s20 = scalar_lea.vmem %s46_s19, 16384  ;;  %p7472_p1 = scmp.lt.s32.totalorder %s46_s19, %s46_s19 }
   0xa   :  { %p7468_p0 = scmp.ne.s32.totalorder %s46_s19, %s7467_s20  ;;  %p7473_p2 = scmp.lt.s32.totalorder %s7467_s20, %s7467_s20 }
   0xc   :  { %p7474_p3 = por %p7473_p2, %p7472_p1 }
   0xe   :  { %p7475_p4 = pnand %p7474_p3, %p7468_p0 }
  0x10   :  { %7478 = shalt.err (!%p7475_p4)
}
  0x11   :  { %s7776_s21 = smov 512   ;;  %s7777_s22 = smov 32  }
  0x12   :  { %51 = dma.hbm_to_vmem [thread:$0]  %s8220_s1, 16384, %s46_s19, [#allocation5], %s7776_s21, %s7776_s21, %s7777_s22  }
  0x13   :  { %s7778_s25 = smov [#allocation7]   ;;  %s7779_s27 = smov [#allocation10]  }
  0x14   :  { %s67_s26 = sshll.u32 %s7778_s25, 4  ;;  %s89_s28 = sshll.u32 %s7779_s27, 4  ;;  %s68_s26 = int_to_ptr.vmem [resolvable:$true] %s67_s26  ;;  %s90_s28 = int_to_ptr.vmem [resolvable:$true] %s89_s28 }
  0x15   :  { %s7487_s29 = scalar_lea.vmem %s68_s26, 65536  ;;  %p7492_p6 = scmp.lt.s32.totalorder %s68_s26, %s68_s26 }
  0x16   :  { %p7488_p5 = scmp.ne.s32.totalorder %s68_s26, %s7487_s29  ;;  %p7493_p7 = scmp.lt.s32.totalorder %s7487_s29, %s7487_s29 }
  0x18   :  { %p7494_p8 = por %p7493_p7, %p7492_p6 }
  0x1a   :  { %p7495_p9 = pnand %p7494_p8, %p7488_p5 }
  0x1c   :  { %7498 = shalt.err (!%p7495_p9)
}
  0x1d   :  { %73 = dma.hbm_to_vmem [thread:$0]  %s8222_s3, 65536, %s68_s26, [#allocation8], %s7776_s21, %s7776_s21, %s7777_s22  }
  0x1e   :  { %s7507_s17 = scalar_lea.vmem %s90_s28, 8192  ;;  %p7512_p11 = scmp.lt.s32.totalorder %s90_s28, %s90_s28 }
  0x1f   :  { %p7508_p10 = scmp.ne.s32.totalorder %s90_s28, %s7507_s17  ;;  %p7513_p12 = scmp.lt.s32.totalorder %s7507_s17, %s7507_s17 }
  0x21   :  { %p7514_p13 = por %p7513_p12, %p7512_p11 }
  0x23   :  { %p7515_p0 = pnand %p7514_p13, %p7508_p10 }
  0x25   :  { %7518 = shalt.err (!%p7515_p0)
}
  0x26   :  { %s7780_s1 = smov 128   ;;  %s7781_s18 = smov 8  }
  0x27   :  { %95 = dma.hbm_to_vmem [thread:$0]  %s8224_s5, 8192, %s90_s28, [#allocation11], %s7780_s1, %s7780_s1, %s7781_s18  }
  0x28   :  { %s7782_s23 = smov [#allocation13]  }
  0x29   :  { %s111_s24 = sshll.u32 %s7782_s23, 4  ;;  %s112_s24 = int_to_ptr.vmem [resolvable:$true] %s111_s24 }
  0x2a   :  { %s7527_s25 = scalar_lea.vmem %s112_s24, 2048  ;;  %p7532_p2 = scmp.lt.s32.totalorder %s112_s24, %s112_s24 }
  0x2b   :  { %p7528_p1 = scmp.ne.s32.totalorder %s112_s24, %s7527_s25  ;;  %p7533_p3 = scmp.lt.s32.totalorder %s7527_s25, %s7527_s25 }
  0x2d   :  { %p7534_p4 = por %p7533_p3, %p7532_p2 }
  0x2f   :  { %p7535_p5 = pnand %p7534_p4, %p7528_p1 }
  0x31   :  { %7538 = shalt.err (!%p7535_p5)
}
  0x32   :  { %s7783_s3 = smov 64   ;;  %s7784_s21 = smov 4  }
  0x33   :  { %117 = dma.hbm_to_vmem [thread:$0]  %s8226_s7, 2048, %s112_s24, [#allocation14], %s7783_s3, %s7783_s3, %s7784_s21  }
  0x34   :  { %s7785_s5 = smov [#allocation16]   ;;  %s7786_s28 = smov [#allocation19]  }
  0x35   :  { %s133_s27 = sshll.u32 %s7785_s5, 4  ;;  %s155_s29 = sshll.u32 %s7786_s28, 4  ;;  %s134_s27 = int_to_ptr.vmem [resolvable:$true] %s133_s27  ;;  %s156_s29 = int_to_ptr.vmem [resolvable:$true] %s155_s29 }
  0x36   :  { %s7547_s30 = scalar_lea.vmem %s134_s27, 1024  ;;  %p7552_p7 = scmp.lt.s32.totalorder %s134_s27, %s134_s27 }
  0x37   :  { %p7548_p6 = scmp.ne.s32.totalorder %s134_s27, %s7547_s30  ;;  %p7553_p8 = scmp.lt.s32.totalorder %s7547_s30, %s7547_s30 }
  0x39   :  { %p7554_p9 = por %p7553_p8, %p7552_p7 }
  0x3b   :  { %p7555_p10 = pnand %p7554_p9, %p7548_p6 }
  0x3d   :  { %7558 = shalt.err (!%p7555_p10)
}
  0x3e   :  { %139 = dma.hbm_to_vmem [thread:$0]  %s8228_s9, 1024, %s134_s27, [#allocation17], %s7783_s3, %s7783_s3, %s7784_s21  }
  0x3f   :  { %s7567_s7 = scalar_lea.vmem %s156_s29, 4096  ;;  %p7572_p12 = scmp.lt.s32.totalorder %s156_s29, %s156_s29 }
  0x40   :  { %p7568_p11 = scmp.ne.s32.totalorder %s156_s29, %s7567_s7  ;;  %p7573_p13 = scmp.lt.s32.totalorder %s7567_s7, %s7567_s7 }
  0x42   :  { %p7574_p0 = por %p7573_p13, %p7572_p12 }
  0x44   :  { %p7575_p1 = pnand %p7574_p0, %p7568_p11 }
  0x46   :  { %7578 = shalt.err (!%p7575_p1)
}
  0x47   :  { %161 = dma.hbm_to_vmem [thread:$0]  %s8230_s11, 4096, %s156_s29, [#allocation20], %s7783_s3, %s7783_s3, %s7784_s21  }
  0x48   :  { %s7787_s19 = smov [#allocation22]   ;;  %s7788_s23 = smov [#allocation2]  }
  0x49   :  { %s177_s20 = sshll.u32 %s7787_s19, 4  ;;  %s33_s24 = sshll.u32 %s7788_s23, 4  ;;  %s178_s20 = int_to_ptr.vmem [resolvable:$true] %s177_s20  ;;  %s34_s24 = int_to_ptr.vmem [resolvable:$true] %s33_s24 }
  0x4a   :  { %s7587_s9 = scalar_lea.vmem %s178_s20, 1024  ;;  %p7592_p3 = scmp.lt.s32.totalorder %s178_s20, %s178_s20 }
  0x4b   :  { %p7588_p2 = scmp.ne.s32.totalorder %s178_s20, %s7587_s9  ;;  %p7593_p4 = scmp.lt.s32.totalorder %s7587_s9, %s7587_s9 }
  0x4d   :  { %p7594_p5 = por %p7593_p4, %p7592_p3 }
  0x4f   :  { %p7595_p6 = pnand %p7594_p5, %p7588_p2 }
  0x51   :  { %7598 = shalt.err (!%p7595_p6)
}
  0x52   :  { %183 = dma.hbm_to_vmem [thread:$0]  %s8232_s13, 1024, %s178_s20, [#allocation23], %s7783_s3, %s7783_s3, %s7784_s21  }
  0x53   :  { %s7607_s11 = scalar_lea.vmem %s34_s24, 512  ;;  %p7612_p8 = scmp.lt.s32.totalorder %s34_s24, %s34_s24 }
  0x54   :  { %p7608_p7 = scmp.ne.s32.totalorder %s34_s24, %s7607_s11  ;;  %p7613_p9 = scmp.lt.s32.totalorder %s7607_s11, %s7607_s11 }
  0x56   :  { %p7614_p10 = por %p7613_p9, %p7612_p8 }
  0x58   :  { %p7615_p11 = pnand %p7614_p10, %p7608_p7 }
  0x5a   :  { %7618 = shalt.err (!%p7615_p11)
}
  0x5b   :  { %s7789_s26 = smov 256   ;;  %s7790_s5 = smov 16  }
  0x5c   :  { %39 = dma.hbm_to_vmem [thread:$0]  %s8219_s0, 512, %s34_s24, [#allocation3], %s7789_s26, %s7789_s26, %s7790_s5  }
  0x5d   :  { %s7791_s29 = smov [#allocation6]   ;;  %s7792_s16 = smov [#allocation9]  }
  0x5e   :  { %s58_s30 = sshll.u32 %s7791_s29, 4  ;;  %s80_s17 = sshll.u32 %s7792_s16, 4  ;;  %s59_s30 = int_to_ptr.vmem [resolvable:$true] %s58_s30  ;;  %s81_s17 = int_to_ptr.vmem [resolvable:$true] %s80_s17 }
  0x5f   :  { %s7627_s13 = scalar_lea.vmem %s59_s30, 128  ;;  %p7632_p13 = scmp.lt.s32.totalorder %s59_s30, %s59_s30 }
  0x60   :  { %p7628_p12 = scmp.ne.s32.totalorder %s59_s30, %s7627_s13  ;;  %p7633_p0 = scmp.lt.s32.totalorder %s7627_s13, %s7627_s13 }
  0x62   :  { %p7634_p1 = por %p7633_p0, %p7632_p13 }
  0x64   :  { %p7635_p2 = pnand %p7634_p1, %p7628_p12 }
  0x66   :  { %7638 = shalt.err (!%p7635_p2)
}
  0x67   :  { %61 = dma.hbm_to_vmem [thread:$0]  %s8221_s2, 128, %s59_s30, [#allocation5]  }
  0x68   :  { %s7647_s7 = scalar_lea.vmem %s81_s17, 128  ;;  %p7652_p4 = scmp.lt.s32.totalorder %s81_s17, %s81_s17 }
  0x69   :  { %p7648_p3 = scmp.ne.s32.totalorder %s81_s17, %s7647_s7  ;;  %p7653_p5 = scmp.lt.s32.totalorder %s7647_s7, %s7647_s7 }
  0x6b   :  { %p7654_p6 = por %p7653_p5, %p7652_p4 }
  0x6d   :  { %p7655_p7 = pnand %p7654_p6, %p7648_p3 }
  0x6f   :  { %7658 = shalt.err (!%p7655_p7)
}
  0x70   :  { %83 = dma.hbm_to_vmem [thread:$0]  %s8223_s4, 128, %s81_s17, [#allocation8]  }
  0x71   :  { %s7793_s18 = smov [#allocation12]   ;;  %s7794_s20 = smov [#allocation15]  }
  0x72   :  { %s102_s19 = sshll.u32 %s7793_s18, 4  ;;  %s124_s23 = sshll.u32 %s7794_s20, 4  ;;  %s103_s19 = int_to_ptr.vmem [resolvable:$true] %s102_s19  ;;  %s125_s23 = int_to_ptr.vmem [resolvable:$true] %s124_s23 }
  0x73   :  { %s7667_s24 = scalar_lea.vmem %s103_s19, 32  ;;  %p7672_p9 = scmp.lt.s32.totalorder %s103_s19, %s103_s19 }
  0x74   :  { %p7668_p8 = scmp.ne.s32.totalorder %s103_s19, %s7667_s24  ;;  %p7673_p10 = scmp.lt.s32.totalorder %s7667_s24, %s7667_s24 }
  0x76   :  { %p7674_p11 = por %p7673_p10, %p7672_p9 }
  0x78   :  { %p7675_p12 = pnand %p7674_p11, %p7668_p8 }
  0x7a   :  { %7678 = shalt.err (!%p7675_p12)
}
  0x7b   :  { %105 = dma.hbm_to_vmem [thread:$0]  %s8225_s6, 32, %s103_s19, [#allocation11]  }
  0x7c   :  { %s7687_s25 = scalar_lea.vmem %s125_s23, 16  ;;  %s7691_s4 = scalar_lea.vmem %s125_s23, 32 }
  0x7d   :  { %p7688_p13 = scmp.ne.s32.totalorder %s125_s23, %s7687_s25  ;;  %p7692_p0 = scmp.lt.s32.totalorder %s125_s23, %s125_s23 }
  0x7e   :  { %p7693_p1 = scmp.lt.s32.totalorder %s7691_s4, %s7687_s25 }
  0x80   :  { %p7694_p2 = por %p7693_p1, %p7692_p0 }
  0x82   :  { %p7695_p3 = pnand %p7694_p2, %p7688_p13 }
  0x84   :  { %7698 = shalt.err (!%p7695_p3)
}
  0x85   :  { %127 = dma.hbm_to_vmem [thread:$0]  %s8227_s8, 16, %s125_s23, [#allocation14]  }
  0x86   :  { %s7795_s26 = smov [#allocation18]   ;;  %s7796_s27 = smov [#allocation21]  }
  0x87   :  { %s146_s5 = sshll.u32 %s7795_s26, 4  ;;  %s168_s28 = sshll.u32 %s7796_s27, 4  ;;  %s147_s5 = int_to_ptr.vmem [resolvable:$true] %s146_s5  ;;  %s169_s28 = int_to_ptr.vmem [resolvable:$true] %s168_s28 }
  0x88   :  { %s7707_s29 = scalar_lea.vmem %s147_s5, 16  ;;  %s7711_s6 = scalar_lea.vmem %s147_s5, 32 }
  0x89   :  { %p7708_p4 = scmp.ne.s32.totalorder %s147_s5, %s7707_s29  ;;  %p7712_p5 = scmp.lt.s32.totalorder %s147_s5, %s147_s5 }
  0x8a   :  { %p7713_p6 = scmp.lt.s32.totalorder %s7711_s6, %s7707_s29 }
  0x8c   :  { %p7714_p7 = por %p7713_p6, %p7712_p5 }
  0x8e   :  { %p7715_p8 = pnand %p7714_p7, %p7708_p4 }
  0x90   :  { %7718 = shalt.err (!%p7715_p8)
}
  0x91   :  { %149 = dma.hbm_to_vmem [thread:$0]  %s8229_s10, 16, %s147_s5, [#allocation17]  }
  0x92   :  { %s7727_s17 = scalar_lea.vmem %s169_s28, 16  ;;  %s7731_s8 = scalar_lea.vmem %s169_s28, 32 }
  0x93   :  { %p7728_p9 = scmp.ne.s32.totalorder %s169_s28, %s7727_s17  ;;  %p7732_p10 = scmp.lt.s32.totalorder %s169_s28, %s169_s28 }
  0x94   :  { %p7733_p11 = scmp.lt.s32.totalorder %s7731_s8, %s7727_s17 }
  0x96   :  { %p7734_p12 = por %p7733_p11, %p7732_p10 }
  0x98   :  { %p7735_p13 = pnand %p7734_p12, %p7728_p9 }
  0x9a   :  { %7738 = shalt.err (!%p7735_p13)
}
  0x9b   :  { %171 = dma.hbm_to_vmem [thread:$0]  %s8231_s12, 16, %s169_s28, [#allocation20]  }
  0x9c   :  { %s7797_s21 = smov [#allocation24]  }
  0x9d   :  { %s190_s7 = sshll.u32 %s7797_s21, 4  ;;  %s191_s7 = int_to_ptr.vmem [resolvable:$true] %s190_s7 }
  0x9e   :  { %s7747_s0 = scalar_lea.vmem %s191_s7, 16  ;;  %s7751_s1 = scalar_lea.vmem %s191_s7, 32 }
  0x9f   :  { %p7748_p0 = scmp.ne.s32.totalorder %s191_s7, %s7747_s0  ;;  %p7752_p1 = scmp.lt.s32.totalorder %s191_s7, %s191_s7 }
  0xa0   :  { %p7753_p2 = scmp.lt.s32.totalorder %s7751_s1, %s7747_s0 }
  0xa2   :  { %p7754_p3 = por %p7753_p2, %p7752_p1 }
  0xa4   :  { %p7755_p4 = pnand %p7754_p3, %p7748_p0 }
  0xa6   :  { %7758 = shalt.err (!%p7755_p4)
}
  0xa7   :  { %193 = dma.hbm_to_vmem [thread:$0]  %s8233_s14, 16, %s191_s7, [#allocation23]  }
  0xa8   :  { %7759 = dma.done.wait [#allocation3], 512  }
  0xa9   :  { %7760 = vsyncadd [#allocation3], 4294966784 }
  0xaa   :  { %7761 = dma.done.wait [#allocation5], 16512  }
  0xab   :  { %7762 = vsyncadd [#allocation5], 4294950784 }
  0xac   :  { %7763 = dma.done.wait [#allocation8], 65664  }
  0xad   :  { %7764 = vsyncadd [#allocation8], 4294901632 }
  0xae   :  { %7765 = dma.done.wait [#allocation11], 8224  }
  0xaf   :  { %7766 = vsyncadd [#allocation11], 4294959072 }
  0xb0   :  { %7767 = dma.done.wait [#allocation14], 2064  }
  0xb1   :  { %7768 = vsyncadd [#allocation14], 4294965232 }
  0xb2   :  { %7769 = dma.done.wait [#allocation17], 1040  }
  0xb3   :  { %7770 = vsyncadd [#allocation17], 4294966256 }
  0xb4   :  { %7771 = dma.done.wait [#allocation20], 4112  }
  0xb5   :  { %7772 = vsyncadd [#allocation20], 4294963184 }
  0xb6   :  { %7773 = dma.done.wait [#allocation23], 1040  }
  0xb7   :  { %7774 = vsyncadd [#allocation23], 4294966256  ;;  %v333_v0 = vld [vmem:[#allocation4 + $0x1c0] sm:$0xff]  ;;  %v334_v2 = vld [vmem:[#allocation4 + $0x1c8] sm:$0xff]  ;;  %vm455_vm0 = vcmask 1041409   ;;  %vm1266_vm1 = vcmask 1041408  }
  0xb8   :  { %v337_v1 = vld [vmem:[#allocation4 + $0x1e0] sm:$0xff]  ;;  %v338_v4 = vld [vmem:[#allocation4 + $0x1e8] sm:$0xff]  ;;  %v243_v55 = vld [vmem:[#allocation2 + $0x18] sm:$0xff]  ;;  %vm7799_vm2 = vmmov 0  }
  0xb9   :  { %v6431_v3 = vcombine.high %v333_v0, %v337_v1  ;;  %v6430_v5 = vcombine.low %v333_v0, %v337_v1  ;;  %v325_v6 = vld [vmem:[#allocation4 + $0x180] sm:$0xff]  ;;  %v6433_v8 = vcombine.high %v334_v2, %v338_v4  ;;  %v6432_v9 = vcombine.low %v334_v2, %v338_v4  ;;  %v326_v11 = vld [vmem:[#allocation4 + $0x188] sm:$0xff]  ;;  %v242_v61 = vld [vmem:[#allocation2 + $0x10] sm:$0xff] }
  0xba   :  { %v329_v7 = vld [vmem:[#allocation4 + $0x1a0] sm:$0xff]  ;;  %v330_v12 = vld [vmem:[#allocation4 + $0x1a8] sm:$0xff]  ;;  %v262_v59 = vrot.slane %v243_v55, 4  ;;  %v256_v4 = vrot.slane %v242_v61, 4 }
  0xbb   :  { %v6423_v10 = vcombine.high %v325_v6, %v329_v7  ;;  %v317_v13 = vld [vmem:[#allocation4 + $0x140] sm:$0xff]  ;;  %1102 = vmatprep.subr.bf16.mxu0 %v6431_v3  ;;  %v6425_v14 = vcombine.high %v326_v11, %v330_v12  ;;  %v318_v16 = vld [vmem:[#allocation4 + $0x148] sm:$0xff]  ;;  %1143 = vmatprep.subr.bf16.mxu1 %v6433_v8  ;;  %v6422_v18 = vcombine.low %v325_v6, %v329_v7 }
  0xbc   :  { %v321_v15 = vld [vmem:[#allocation4 + $0x160] sm:$0xff]  ;;  %v322_v17 = vld [vmem:[#allocation4 + $0x168] sm:$0xff]  ;;  %1103 = vmatpush1.bf16.msra.mxu0 %v6430_v5  ;;  %1144 = vmatpush1.bf16.msra.mxu1 %v6432_v9  ;;  %v6424_v19 = vcombine.low %v326_v11, %v330_v12  ;;  %v263_v2 = vadd.f32 %v262_v59, %v243_v55 }
  0xbd   :  { %1104 = vmatprep.subr.bf16.mxu0 %v6423_v10  ;;  %v6415_v20 = vcombine.high %v317_v13, %v321_v15  ;;  %1145 = vmatprep.subr.bf16.mxu1 %v6425_v14  ;;  %v6417_v21 = vcombine.high %v318_v16, %v322_v17  ;;  %v309_v22 = vld [vmem:[#allocation4 + $0x100] sm:$0xff]  ;;  %v310_v24 = vld [vmem:[#allocation4 + $0x108] sm:$0xff]  ;;  %v6414_v26 = vcombine.low %v317_v13, %v321_v15 }
  0xbe   :  { %v313_v23 = vld [vmem:[#allocation4 + $0x120] sm:$0xff]  ;;  %v314_v25 = vld [vmem:[#allocation4 + $0x128] sm:$0xff]  ;;  %v6416_v27 = vcombine.low %v318_v16, %v322_v17  ;;  %v264_v11 = vrot.slane %v263_v2, 2 }
  0xbf   :  { %v6407_v28 = vcombine.high %v309_v22, %v313_v23  ;;  %v6409_v29 = vcombine.high %v310_v24, %v314_v25  ;;  %v301_v30 = vld [vmem:[#allocation4 + $0xc0] sm:$0xff]  ;;  %v302_v32 = vld [vmem:[#allocation4 + $0xc8] sm:$0xff]  ;;  %v6406_v34 = vcombine.low %v309_v22, %v313_v23  ;;  %v6408_v35 = vcombine.low %v310_v24, %v314_v25 }
  0xc0   :  { %1105 = vmatpush1.bf16.msra.mxu0 %v6422_v18  ;;  %1146 = vmatpush1.bf16.msra.mxu1 %v6424_v19  ;;  %v305_v31 = vld [vmem:[#allocation4 + $0xe0] sm:$0xff]  ;;  %v306_v33 = vld [vmem:[#allocation4 + $0xe8] sm:$0xff]  ;;  %v265_v16 = vadd.f32 %v264_v11, %v263_v2  ;;  %v257_v18 = vadd.f32 %v256_v4, %v242_v61 }
  0xc1   :  { %1106 = vmatprep.subr.bf16.mxu0 %v6415_v20  ;;  %1147 = vmatprep.subr.bf16.mxu1 %v6417_v21  ;;  %v6399_v36 = vcombine.high %v301_v30, %v305_v31  ;;  %v6401_v37 = vcombine.high %v302_v32, %v306_v33  ;;  %v293_v38 = vld [vmem:[#allocation4 + $0x80] sm:$0xff]  ;;  %v294_v40 = vld [vmem:[#allocation4 + $0x88] sm:$0xff]  ;;  %v6398_v42 = vcombine.low %v301_v30, %v305_v31 }
  0xc2   :  { %v297_v39 = vld [vmem:[#allocation4 + $0xa0] sm:$0xff]  ;;  %v298_v41 = vld [vmem:[#allocation4 + $0xa8] sm:$0xff]  ;;  %v6400_v43 = vcombine.low %v302_v32, %v306_v33  ;;  %v266_v25 = vrot.slane %v265_v16, 1  ;;  %v258_v32 = vrot.slane %v257_v18, 2 }
  0xc3   :  { %v6391_v44 = vcombine.high %v293_v38, %v297_v39  ;;  %v6393_v45 = vcombine.high %v294_v40, %v298_v41  ;;  %v285_v46 = vld [vmem:[#allocation4 + $0x40] sm:$0xff]  ;;  %v286_v48 = vld [vmem:[#allocation4 + $0x48] sm:$0xff]  ;;  %v6390_v50 = vcombine.low %v293_v38, %v297_v39  ;;  %v6392_v51 = vcombine.low %v294_v40, %v298_v41 }
  0xc4   :  { %1107 = vmatpush1.bf16.msra.mxu0 %v6414_v26  ;;  %1148 = vmatpush1.bf16.msra.mxu1 %v6416_v27  ;;  %v289_v47 = vld [vmem:[#allocation4 + $0x60] sm:$0xff]  ;;  %v290_v49 = vld [vmem:[#allocation4 + $0x68] sm:$0xff]  ;;  %v267_v30 = vadd.f32 %v266_v25, %v265_v16 }
  0xc5   :  { %1108 = vmatprep.subr.bf16.mxu0 %v6407_v28  ;;  %1149 = vmatprep.subr.bf16.mxu1 %v6409_v29  ;;  %v6383_v52 = vcombine.high %v285_v46, %v289_v47  ;;  %v277_v53 = vld [vmem:[#allocation4] sm:$0xff]  ;;  %v241_v54 = vld [vmem:[#allocation2 + $0x8] sm:$0xff]  ;;  %v6385_v56 = vcombine.high %v286_v48, %v290_v49  ;;  %v6382_v62 = vcombine.low %v285_v46, %v289_v47 }
  0xc6   :  { %v281_v57 = vld [vmem:[#allocation4 + $0x20] sm:$0xff]  ;;  %v250_v58 = vrot.slane %v241_v54, 4  ;;  %v278_v63 = vld [vmem:[#allocation4 + $0x8] sm:$0xff]  ;;  %v6384_v5 = vcombine.low %v286_v48, %v290_v49  ;;  %v272_v39 = vmul.f32 0.125, %v267_v30  ;;  %v259_v46 = vadd.f32 %v258_v32, %v257_v18 }
  0xc7   :  { %v240_v60 = vld [vmem:[#allocation2] sm:$0xff]  ;;  %v282_v0 = vld [vmem:[#allocation4 + $0x28] sm:$0xff]  ;;  %v6375_v6 = vcombine.high %v277_v53, %v281_v57  ;;  %v6374_v12 = vcombine.low %v277_v53, %v281_v57 }
  0xc8   :  { %1109 = vmatpush1.bf16.msra.mxu0 %v6406_v34  ;;  %1150 = vmatpush1.bf16.msra.mxu1 %v6408_v35  ;;  %v251_v1 = vadd.f32 %v250_v58, %v241_v54  ;;  %v244_v3 = vrot.slane %v240_v60, 4  ;;  %v6377_v7 = vcombine.high %v278_v63, %v282_v0  ;;  %v397_v8 = vld [vmem:[#allocation4 + $0x3c0] sm:$0xff]  ;;  %v398_v13 = vld [vmem:[#allocation4 + $0x3c8] sm:$0xff]  ;;  %v6376_v19 = vcombine.low %v278_v63, %v282_v0 }
  0xc9   :  { %1110 = vmatprep.subr.bf16.mxu0 %v6399_v36  ;;  %1151 = vmatprep.subr.bf16.mxu1 %v6401_v37  ;;  %v401_v9 = vld [vmem:[#allocation4 + $0x3e0] sm:$0xff]  ;;  %v402_v14 = vld [vmem:[#allocation4 + $0x3e8] sm:$0xff]  ;;  %v260_v59 = vrot.slane %v259_v46, 1 }
  0xca   :  { %v252_v10 = vrot.slane %v251_v1, 2  ;;  %v245_v17 = vadd.f32 %v244_v3, %v240_v60  ;;  %v6495_v20 = vcombine.high %v397_v8, %v401_v9  ;;  %v6497_v21 = vcombine.high %v398_v13, %v402_v14  ;;  %v389_v22 = vld [vmem:[#allocation4 + $0x380] sm:$0xff]  ;;  %v390_v27 = vld [vmem:[#allocation4 + $0x388] sm:$0xff] }
  0xcb   :  { %v393_v23 = vld [vmem:[#allocation4 + $0x3a0] sm:$0xff]  ;;  %v6494_v26 = vcombine.low %v397_v8, %v401_v9  ;;  %v394_v28 = vld [vmem:[#allocation4 + $0x3a8] sm:$0xff]  ;;  %v6496_v33 = vcombine.low %v398_v13, %v402_v14  ;;  %v261_v8 = vadd.f32 %v260_v59, %v259_v46  ;;  %v327_v46 = vld [vmem:[#allocation4 + $0x190] sm:$0xff] }
  0xcc   :  { %1111 = vmatpush1.bf16.msra.mxu0 %v6398_v42  ;;  %1152 = vmatpush1.bf16.msra.mxu1 %v6400_v43  ;;  %v253_v15 = vadd.f32 %v252_v10, %v251_v1  ;;  %v246_v31 = vrot.slane %v245_v17, 2  ;;  %v6487_v34 = vcombine.high %v389_v22, %v393_v23  ;;  %v6489_v35 = vcombine.high %v390_v27, %v394_v28  ;;  %v381_v36 = vld [vmem:[#allocation4 + $0x340] sm:$0xff]  ;;  %v382_v41 = vld [vmem:[#allocation4 + $0x348] sm:$0xff]  ;;  %v320_v59 = vld [vmem:[#allocation4 + $0x158] sm:$0xff] }
  0xcd   :  { %1112 = vmatprep.subr.bf16.mxu0 %v6391_v44  ;;  %1153 = vmatprep.subr.bf16.mxu1 %v6393_v45  ;;  %v385_v37 = vld [vmem:[#allocation4 + $0x360] sm:$0xff]  ;;  %v6486_v40 = vcombine.low %v389_v22, %v393_v23  ;;  %v386_v42 = vld [vmem:[#allocation4 + $0x368] sm:$0xff]  ;;  %v276_v44 = vpack.c.bf16 %v272_v39, %v272_v39  ;;  %v6488_v47 = vcombine.low %v390_v27, %v394_v28  ;;  %v271_v18 = vmul.f32 0.125, %v261_v8  ;;  %v303_v8 = vld [vmem:[#allocation4 + $0xd0] sm:$0xff] }
  0xce   :  { %v254_v24 = vrot.slane %v253_v15, 1  ;;  %v247_v45 = vadd.f32 %v246_v31, %v245_v17  ;;  %v6479_v48 = vcombine.high %v381_v36, %v385_v37  ;;  %v6481_v49 = vcombine.high %v382_v41, %v386_v42  ;;  %v374_v54 = vld [vmem:[#allocation4 + $0x308] sm:$0xff]  ;;  %v365_v0 = vld [vmem:[#allocation4 + $0x2c0] sm:$0xff] }
  0xcf   :  { %v454_v53 = vunpack.c.l.b16 %v276_v44  ;;  %v378_v55 = vld [vmem:[#allocation4 + $0x328] sm:$0xff]  ;;  %v6480_v60 = vcombine.low %v382_v41, %v386_v42  ;;  %v369_v1 = vld [vmem:[#allocation4 + $0x2e0] sm:$0xff]  ;;  %v275_v28 = vpack.c.bf16 %v271_v18, %v271_v18  ;;  %v336_v41 = vld [vmem:[#allocation4 + $0x1d8] sm:$0xff] }
  0xd0   :  { %1113 = vmatpush1.bf16.msra.mxu0 %v6390_v50  ;;  %1154 = vmatpush1.bf16.msra.mxu1 %v6392_v51  ;;  %v255_v29 = vadd.f32 %v254_v24, %v253_v15  ;;  %v373_v50 = vld [vmem:[#allocation4 + $0x300] sm:$0xff]  ;;  %v248_v58 = vrot.slane %v247_v45, 1  ;;  %v6473_v63 = vcombine.high %v374_v54, %v378_v55  ;;  %v366_v2 = vld [vmem:[#allocation4 + $0x2c8] sm:$0xff]  ;;  %v6472_v9 = vcombine.low %v374_v54, %v378_v55  ;;  %v340_v42 = vld [vmem:[#allocation4 + $0x1f8] sm:$0xff] }
  0xd1   :  { %1114 = vmatprep.subr.bf16.mxu0 %v6383_v52  ;;  %1155 = vmatprep.subr.bf16.mxu1 %v6385_v56  ;;  %v377_v51 = vld [vmem:[#allocation4 + $0x320] sm:$0xff]  ;;  %v6478_v56 = vcombine.low %v381_v36, %v385_v37  ;;  %v370_v3 = vld [vmem:[#allocation4 + $0x2e8] sm:$0xff]  ;;  %v6463_v10 = vcombine.high %v365_v0, %v369_v1  ;;  %v6462_v14 = vcombine.low %v365_v0, %v369_v1  ;;  %v453_v36 = vunpack.c.l.b16 %v275_v28  ;;  %v335_v37 = vld [vmem:[#allocation4 + $0x1d0] sm:$0xff] }
  0xd2   :  { %v270_v38 = vmul.f32 0.125, %v255_v29  ;;  %v6471_v61 = vcombine.high %v373_v50, %v377_v51  ;;  %v6470_v4 = vcombine.low %v373_v50, %v377_v51  ;;  %v358_v11 = vld [vmem:[#allocation4 + $0x288] sm:$0xff]  ;;  %v6465_v13 = vcombine.high %v366_v2, %v370_v3  ;;  %v349_v15 = vld [vmem:[#allocation4 + $0x240] sm:$0xff]  ;;  %v328_v50 = vld [vmem:[#allocation4 + $0x198] sm:$0xff] }
  0xd3   :  { %v353_v16 = vld [vmem:[#allocation4 + $0x260] sm:$0xff]  ;;  %v354_v22 = vld [vmem:[#allocation4 + $0x268] sm:$0xff]  ;;  %v332_v51 = vld [vmem:[#allocation4 + $0x1b8] sm:$0xff] }
  0xd4   :  { %1115 = vmatpush1.bf16.msra.mxu0 %v6382_v62  ;;  %1156 = vmatpush1.bf16.msra.mxu1 %v6384_v5  ;;  %v274_v43 = vpack.c.bf16 %v270_v38, %v270_v38  ;;  %v357_v5 = vld [vmem:[#allocation4 + $0x280] sm:$0xff]  ;;  %v6447_v30 = vcombine.high %v349_v15, %v353_v16  ;;  %v342_v31 = vld [vmem:[#allocation4 + $0x208] sm:$0xff]  ;;  %v339_v38 = vld [vmem:[#allocation4 + $0x1f0] sm:$0xff] }
  0xd5   :  { %1116 = vmatprep.subr.bf16.mxu0 %v6375_v6  ;;  %1157 = vmatprep.subr.bf16.mxu1 %v6377_v7  ;;  %v361_v6 = vld [vmem:[#allocation4 + $0x2a0] sm:$0xff]  ;;  %v249_v7 = vadd.f32 %v248_v58, %v247_v45  ;;  %v346_v32 = vld [vmem:[#allocation4 + $0x228] sm:$0xff]  ;;  %v6434_v54 = vcombine.low %v335_v37, %v339_v38  ;;  %v319_v55 = vld [vmem:[#allocation4 + $0x150] sm:$0xff] }
  0xd6   :  { %v452_v52 = vunpack.c.l.b16 %v274_v43  ;;  %v6454_v24 = vcombine.low %v357_v5, %v361_v6  ;;  %v341_v25 = vld [vmem:[#allocation4 + $0x200] sm:$0xff]  ;;  %v6441_v43 = vcombine.high %v342_v31, %v346_v32  ;;  %v311_v0 = vld [vmem:[#allocation4 + $0x110] sm:$0xff]  ;;  %v292_v28 = vld [vmem:[#allocation4 + $0x78] sm:$0xff] }
  0xd7   :  { %v269_v17 = vmul.f32 0.125, %v249_v7  ;;  %v315_v1 = vld [vmem:[#allocation4 + $0x130] sm:$0xff] }
  0xd8   :  { %1117 = vmatpush1.bf16.msra.mxu0 %v6374_v12  ;;  %1158 = vmatpush1.bf16.msra.mxu1 %v6376_v19  ;;  %v457_v57 = vsel %vm455_vm0, %v454_v53, %v452_v52  ;;  %v362_v12 = vld [vmem:[#allocation4 + $0x2a8] sm:$0xff]  ;;  %v6464_v19 = vcombine.low %v366_v2, %v370_v3  ;;  %v6437_v52 = vcombine.high %v336_v41, %v340_v42 }
  0xd9   :  { %1118 = vmatprep.subr.bf16.mxu0 %v6495_v20  ;;  %1159 = vmatprep.subr.bf16.mxu1 %v6497_v21  ;;  %v7938_v62 = vpack.c.b16 %v457_v57, %v457_v57  ;;  %v6455_v20 = vcombine.high %v357_v5, %v361_v6  ;;  %v350_v21 = vld [vmem:[#allocation4 + $0x248] sm:$0xff]  ;;  %v6457_v23 = vcombine.high %v358_v11, %v362_v12  ;;  %v316_v5 = vld [vmem:[#allocation4 + $0x138] sm:$0xff] }
  0xda   :  { %v273_v27 = vpack.c.bf16 %v269_v17, %v269_v17  ;;  %v6456_v29 = vcombine.low %v358_v11, %v362_v12  ;;  %v6448_v39 = vcombine.low %v350_v21, %v354_v22  ;;  %v6436_v57 = vcombine.low %v336_v41, %v340_v42  ;;  %v304_v12 = vld [vmem:[#allocation4 + $0xd8] sm:$0xff]  ;;  %v299_v17 = vld [vmem:[#allocation4 + $0xb0] sm:$0xff] }
  0xdb   :  { %1134 = vmatprep.mubr.bf16.mxu0 %v7938_v62  ;;  %1175 = vmatprep.mubr.bf16.mxu1 %v7938_v62  ;;  %v6428_v2 = vcombine.low %v328_v50, %v332_v51  ;;  %v6411_v11 = vcombine.high %v311_v0, %v315_v1 }
  0xdc   :  { %1119 = vmatpush2.bf16.msra.mxu0 %v6494_v26  ;;  %1160 = vmatpush2.bf16.msra.mxu1 %v6496_v33  ;;  %v345_v26 = vld [vmem:[#allocation4 + $0x220] sm:$0xff]  ;;  %v6449_v33 = vcombine.high %v350_v21, %v354_v22 }
  0xdd   :  { %1120 = vmatprep.subr.bf16.mxu0 %v6487_v34  ;;  %1161 = vmatprep.subr.bf16.mxu1 %v6489_v35  ;;  %v6446_v34 = vcombine.low %v349_v15, %v353_v16  ;;  %v451_v35 = vunpack.c.l.b16 %v273_v27  ;;  %v6438_v44 = vcombine.low %v341_v25, %v345_v26  ;;  %v6410_v15 = vcombine.low %v311_v0, %v315_v1  ;;  %v295_v16 = vld [vmem:[#allocation4 + $0x90] sm:$0xff]  ;;  %v288_v27 = vld [vmem:[#allocation4 + $0x58] sm:$0xff] }
  0xde   :  { %v6388_v41 = vcombine.low %v288_v27, %v292_v28  ;;  %v375_v1 = vld [vmem:[#allocation4 + $0x310] sm:$0xff] }
  0xdf   :  { %v456_v45 = vsel %vm455_vm0, %v453_v36, %v451_v35  ;;  %v280_v35 = vld [vmem:[#allocation4 + $0x18] sm:$0xff] }
  0xe0   :  { %1121 = vmatpush2.bf16.msra.mxu0 %v6486_v40  ;;  %1162 = vmatpush2.bf16.msra.mxu1 %v6488_v47  ;;  %v6439_v40 = vcombine.high %v341_v25, %v345_v26  ;;  %v331_v47 = vld [vmem:[#allocation4 + $0x1b0] sm:$0xff]  ;;  %v7943_v53 = vpack.c.b16 %v456_v45, %v456_v45  ;;  %v6395_v26 = vcombine.high %v295_v16, %v299_v17  ;;  %v284_v36 = vld [vmem:[#allocation4 + $0x38] sm:$0xff] }
  0xe1   :  { %1122 = vmatprep.subr.bf16.mxu0 %v6479_v48  ;;  %1163 = vmatprep.subr.bf16.mxu1 %v6481_v49  ;;  %v6440_v48 = vcombine.low %v342_v31, %v346_v32  ;;  %v6435_v49 = vcombine.high %v335_v37, %v339_v38  ;;  %v6427_v58 = vcombine.high %v327_v46, %v331_v47  ;;  %v279_v31 = vld [vmem:[#allocation4 + $0x10] sm:$0xff] }
  0xe2   :  { %v283_v32 = vld [vmem:[#allocation4 + $0x30] sm:$0xff]  ;;  %v6389_v37 = vcombine.high %v288_v27, %v292_v28  ;;  %v6381_v45 = vcombine.high %v280_v35, %v284_v36 }
  0xe3   :  { %v6379_v42 = vcombine.high %v279_v31, %v283_v32  ;;  %v351_v27 = vld [vmem:[#allocation4 + $0x250] sm:$0xff] }
  0xe4   :  { %1123 = vmatpush2.bf16.msra.mxu0 %v6478_v56  ;;  %1164 = vmatpush2.bf16.msra.mxu1 %v6480_v60  ;;  %v323_v56 = vld [vmem:[#allocation4 + $0x170] sm:$0xff]  ;;  %v324_v60 = vld [vmem:[#allocation4 + $0x178] sm:$0xff] }
  0xe5   :  { %1124 = vmatprep.subr.bf16.mxu0 %v6471_v61  ;;  %1165 = vmatprep.subr.bf16.mxu1 %v6473_v63  ;;  %v6429_v61 = vcombine.high %v328_v50, %v332_v51  ;;  %v6426_v63 = vcombine.low %v327_v46, %v331_v47  ;;  %v6419_v3 = vcombine.high %v319_v55, %v323_v56  ;;  %v391_v47 = vld [vmem:[#allocation4 + $0x390] sm:$0xff]  ;;  %v392_v51 = vld [vmem:[#allocation4 + $0x398] sm:$0xff] }
  0xe6   :  { %v6421_v6 = vcombine.high %v320_v59, %v324_v60  ;;  %v6418_v7 = vcombine.low %v319_v55, %v323_v56  ;;  %v6378_v46 = vcombine.low %v279_v31, %v283_v32  ;;  %v383_v56 = vld [vmem:[#allocation4 + $0x350] sm:$0xff] }
  0xe7   :  { %v355_v28 = vld [vmem:[#allocation4 + $0x270] sm:$0xff] }
  0xe8   :  { %1125 = vmatpush2.bf16.msra.mxu0 %v6470_v4  ;;  %1166 = vmatpush2.bf16.msra.mxu1 %v6472_v9  ;;  %v312_v4 = vld [vmem:[#allocation4 + $0x118] sm:$0xff]  ;;  %v307_v9 = vld [vmem:[#allocation4 + $0xf0] sm:$0xff] }
  0xe9   :  { %1126 = vmatprep.subr.bf16.mxu0 %v6463_v10  ;;  %1167 = vmatprep.subr.bf16.mxu1 %v6465_v13  ;;  %v6420_v10 = vcombine.low %v320_v59, %v324_v60  ;;  %v308_v13 = vld [vmem:[#allocation4 + $0xf8] sm:$0xff]  ;;  %v6412_v18 = vcombine.low %v312_v4, %v316_v5  ;;  %v6402_v22 = vcombine.low %v303_v8, %v307_v9 }
  0xea   :  { %v6405_v21 = vcombine.high %v304_v12, %v308_v13  ;;  %v6404_v25 = vcombine.low %v304_v12, %v308_v13  ;;  %v384_v60 = vld [vmem:[#allocation4 + $0x358] sm:$0xff] }
  0xeb   :  { %v368_v13 = vld [vmem:[#allocation4 + $0x2d8] sm:$0xff] }
  0xec   :  { %1127 = vmatpush2.bf16.msra.mxu0 %v6462_v14  ;;  %1168 = vmatpush2.bf16.msra.mxu1 %v6464_v19  ;;  %v6413_v14 = vcombine.high %v312_v4, %v316_v5  ;;  %v296_v19 = vld [vmem:[#allocation4 + $0x98] sm:$0xff] }
  0xed   :  { %1128 = vmatprep.subr.bf16.mxu0 %v6455_v20  ;;  %1169 = vmatprep.subr.bf16.mxu1 %v6457_v23  ;;  %v300_v20 = vld [vmem:[#allocation4 + $0xb8] sm:$0xff]  ;;  %v287_v23 = vld [vmem:[#allocation4 + $0x50] sm:$0xff] }
  0xee   :  { %v376_v5 = vld [vmem:[#allocation4 + $0x318] sm:$0xff] }
  0xf0   :  { %1129 = vmatpush2.bf16.msra.mxu0 %v6454_v24  ;;  %1170 = vmatpush2.bf16.msra.mxu1 %v6456_v29  ;;  %v291_v24 = vld [vmem:[#allocation4 + $0x70] sm:$0xff]  ;;  %v6397_v29 = vcombine.high %v296_v19, %v300_v20 }
  0xf1   :  { %1130 = vmatprep.subr.bf16.mxu0 %v6447_v30  ;;  %1171 = vmatprep.subr.bf16.mxu1 %v6449_v33  ;;  %v6394_v30 = vcombine.low %v295_v16, %v299_v17  ;;  %v6396_v33 = vcombine.low %v296_v19, %v300_v20  ;;  %v6386_v38 = vcombine.low %v287_v23, %v291_v24  ;;  %v359_v19 = vld [vmem:[#allocation4 + $0x290] sm:$0xff] }
  0xf2   :  { %v363_v20 = vld [vmem:[#allocation4 + $0x2b0] sm:$0xff] }
  0xf3   :  { %v6458_v31 = vcombine.low %v359_v19, %v363_v20 }
  0xf4   :  { %1131 = vmatpush2.bf16.msra.mxu0 %v6446_v34  ;;  %1172 = vmatpush2.bf16.msra.mxu1 %v6448_v39  ;;  %v6387_v34 = vcombine.high %v287_v23, %v291_v24  ;;  %v399_v39 = vld [vmem:[#allocation4 + $0x3d0] sm:$0xff] }
  0xf5   :  { %1132 = vmatprep.subr.bf16.mxu0 %v6439_v40  ;;  %1173 = vmatprep.subr.bf16.mxu1 %v6441_v43  ;;  %v403_v40 = vld [vmem:[#allocation4 + $0x3f0] sm:$0xff]  ;;  %v400_v43 = vld [vmem:[#allocation4 + $0x3d8] sm:$0xff] }
  0xf6   :  { %v6499_v50 = vcombine.high %v399_v39, %v403_v40  ;;  %v6498_v55 = vcombine.low %v399_v39, %v403_v40  ;;  %v6450_v39 = vcombine.low %v351_v27, %v355_v28 }
  0xf8   :  { %1133 = vmatpush2.bf16.msra.mxu0 %v6438_v44  ;;  %1174 = vmatpush2.bf16.msra.mxu1 %v6440_v48  ;;  %v404_v44 = vld [vmem:[#allocation4 + $0x3f8] sm:$0xff]  ;;  %v395_v48 = vld [vmem:[#allocation4 + $0x3b0] sm:$0xff] }
  0xf9   :  { %1184 = vmatprep.subr.bf16.mxu0 %v6435_v49  ;;  %1225 = vmatprep.subr.bf16.mxu1 %v6437_v52  ;;  %v6380_v49 = vcombine.low %v280_v35, %v284_v36  ;;  %v396_v52 = vld [vmem:[#allocation4 + $0x3b8] sm:$0xff]  ;;  %v6491_v59 = vcombine.high %v391_v47, %v395_v48  ;;  %v6490_v0 = vcombine.low %v391_v47, %v395_v48  ;;  %v343_v35 = vld [vmem:[#allocation4 + $0x210] sm:$0xff] }
  0xfa   :  { %v347_v36 = vld [vmem:[#allocation4 + $0x230] sm:$0xff] }
  0xfb   :  { %1135 = vmatmul.mubr.bf16.vlgmr.msra.gmra.mxu0 %v7943_v53  ;;  %1176 = vmatmul.mubr.bf16.vlgmr.msra.gmra.mxu1 %v7943_v53 }
  0xfc   :  { %1185 = vmatpush1.bf16.msra.mxu0 %v6434_v54  ;;  %1226 = vmatpush1.bf16.msra.mxu1 %v6436_v57  ;;  %v6501_v54 = vcombine.high %v400_v43, %v404_v44  ;;  %v387_v57 = vld [vmem:[#allocation4 + $0x370] sm:$0xff] }
  0xfd   :  { %1186 = vmatprep.subr.bf16.mxu0 %v6427_v58  ;;  %1227 = vmatprep.subr.bf16.mxu1 %v6429_v61  ;;  %v6500_v58 = vcombine.low %v400_v43, %v404_v44  ;;  %v388_v61 = vld [vmem:[#allocation4 + $0x378] sm:$0xff]  ;;  %v6483_v4 = vcombine.high %v383_v56, %v387_v57  ;;  %v6442_v43 = vcombine.low %v343_v35, %v347_v36 }
  0xfe   :  { %1216 = vmatprep.mubr.bf16.mxu0 %v7938_v62  ;;  %1257 = vmatprep.mubr.bf16.mxu1 %v7938_v62  ;;  %v6403_v62 = vcombine.high %v303_v8, %v307_v9  ;;  %v6482_v8 = vcombine.low %v383_v56, %v387_v57  ;;  %v367_v9 = vld [vmem:[#allocation4 + $0x2d0] sm:$0xff] }
 0x100   :  { %1187 = vmatpush1.bf16.msra.mxu0 %v6426_v63  ;;  %1228 = vmatpush1.bf16.msra.mxu1 %v6428_v2  ;;  %v6493_v63 = vcombine.high %v392_v51, %v396_v52  ;;  %v379_v2 = vld [vmem:[#allocation4 + $0x330] sm:$0xff] }
 0x101   :  { %1188 = vmatprep.subr.bf16.mxu0 %v6419_v3  ;;  %1229 = vmatprep.subr.bf16.mxu1 %v6421_v6  ;;  %v6492_v3 = vcombine.low %v392_v51, %v396_v52  ;;  %v380_v6 = vld [vmem:[#allocation4 + $0x338] sm:$0xff]  ;;  %v6475_v12 = vcombine.high %v375_v1, %v379_v2  ;;  %v6474_v16 = vcombine.low %v375_v1, %v379_v2 }
 0x102   :  { %v6476_v17 = vcombine.low %v376_v5, %v380_v6 }
 0x104   :  { %1189 = vmatpush1.bf16.msra.mxu0 %v6418_v7  ;;  %1230 = vmatpush1.bf16.msra.mxu1 %v6420_v10  ;;  %v6485_v7 = vcombine.high %v384_v60, %v388_v61  ;;  %v371_v10 = vld [vmem:[#allocation4 + $0x2f0] sm:$0xff] }
 0x105   :  { %1190 = vmatprep.subr.bf16.mxu0 %v6411_v11  ;;  %1231 = vmatprep.subr.bf16.mxu1 %v6413_v14  ;;  %v6484_v11 = vcombine.low %v384_v60, %v388_v61  ;;  %v372_v14 = vld [vmem:[#allocation4 + $0x2f8] sm:$0xff]  ;;  %v6466_v23 = vcombine.low %v367_v9, %v371_v10 }
 0x106   :  { %v6468_v24 = vcombine.low %v368_v13, %v372_v14 }
 0x108   :  { %1191 = vmatpush1.bf16.msra.mxu0 %v6410_v15  ;;  %1232 = vmatpush1.bf16.msra.mxu1 %v6412_v18  ;;  %v6477_v15 = vcombine.high %v376_v5, %v380_v6  ;;  %v6467_v18 = vcombine.high %v367_v9, %v371_v10 }
 0x109   :  { %1192 = vmatprep.subr.bf16.mxu0 %v6403_v62  ;;  %1233 = vmatprep.subr.bf16.mxu1 %v6405_v21  ;;  %v6469_v62 = vcombine.high %v368_v13, %v372_v14  ;;  %v360_v21 = vld [vmem:[#allocation4 + $0x298] sm:$0xff] }
 0x10c   :  { %1193 = vmatpush1.bf16.msra.mxu0 %v6402_v22  ;;  %1234 = vmatpush1.bf16.msra.mxu1 %v6404_v25  ;;  %v364_v22 = vld [vmem:[#allocation4 + $0x2b8] sm:$0xff]  ;;  %v6459_v25 = vcombine.high %v359_v19, %v363_v20 }
 0x10d   :  { %1194 = vmatprep.subr.bf16.mxu0 %v6395_v26  ;;  %1235 = vmatprep.subr.bf16.mxu1 %v6397_v29  ;;  %v6461_v26 = vcombine.high %v360_v21, %v364_v22  ;;  %v352_v29 = vld [vmem:[#allocation4 + $0x258] sm:$0xff]  ;;  %v6460_v32 = vcombine.low %v360_v21, %v364_v22 }
 0x110   :  { %1195 = vmatpush1.bf16.msra.mxu0 %v6394_v30  ;;  %1236 = vmatpush1.bf16.msra.mxu1 %v6396_v33  ;;  %v356_v30 = vld [vmem:[#allocation4 + $0x278] sm:$0xff]  ;;  %v6451_v33 = vcombine.high %v351_v27, %v355_v28 }
 0x111   :  { %1196 = vmatprep.subr.bf16.mxu0 %v6387_v34  ;;  %1237 = vmatprep.subr.bf16.mxu1 %v6389_v37  ;;  %v6453_v34 = vcombine.high %v352_v29, %v356_v30  ;;  %v344_v37 = vld [vmem:[#allocation4 + $0x218] sm:$0xff]  ;;  %v6452_v40 = vcombine.low %v352_v29, %v356_v30 }
 0x114   :  { %1197 = vmatpush1.bf16.msra.mxu0 %v6386_v38  ;;  %1238 = vmatpush1.bf16.msra.mxu1 %v6388_v41  ;;  %v348_v38 = vld [vmem:[#allocation4 + $0x238] sm:$0xff]  ;;  %v6443_v41 = vcombine.high %v343_v35, %v347_v36 }
 0x115   :  { %1198 = vmatprep.subr.bf16.mxu0 %v6379_v42  ;;  %1239 = vmatprep.subr.bf16.mxu1 %v6381_v45  ;;  %v6445_v42 = vcombine.high %v344_v37, %v348_v38  ;;  %v6444_v44 = vcombine.low %v344_v37, %v348_v38 }
 0x118   :  { %1199 = vmatpush1.bf16.msra.mxu0 %v6378_v46  ;;  %1240 = vmatpush1.bf16.msra.mxu1 %v6380_v49 }
 0x119   :  { %1200 = vmatprep.subr.bf16.mxu0 %v6499_v50  ;;  %1241 = vmatprep.subr.bf16.mxu1 %v6501_v54  ;;  %v407_v54 = vlaneseq }
 0x11c   :  { %1201 = vmatpush2.bf16.msra.mxu0 %v6498_v55  ;;  %1242 = vmatpush2.bf16.msra.mxu1 %v6500_v58  ;;  %v7951_v55 = vshrl.u32 %v407_v54, 7  ;;  %v405_v58 = vld [vmem:[#allocation6] sm:$0xff] }
 0x11d   :  { %1202 = vmatprep.subr.bf16.mxu0 %v6491_v59  ;;  %1243 = vmatprep.subr.bf16.mxu1 %v6493_v63 }
 0x11e   :  { %v7954_v56 = vsub.s32 0, %v7951_v55  ;;  %v7957_v57 = vsub.s32 1, %v7951_v55  ;;  %v417_v59 = vsub.s32 2, %v7951_v55  ;;  %v421_v1 = vsub.s32 3, %v7951_v55 }
 0x11f   :  { %v425_v6 = vsub.s32 4, %v7951_v55  ;;  %v437_v13 = vsub.s32 7, %v7951_v55 }
 0x120   :  { %1203 = vmatpush2.bf16.msra.mxu0 %v6490_v0  ;;  %1244 = vmatpush2.bf16.msra.mxu1 %v6492_v3  ;;  %v414_v60 = vrot.slane %v405_v58, %v7957_v57  ;;  %v418_v63 = vrot.slane %v405_v58, %v417_v59  ;;  %v422_v5 = vrot.slane %v405_v58, %v421_v1 }
 0x121   :  { %1204 = vmatprep.subr.bf16.mxu0 %v6483_v4  ;;  %1245 = vmatprep.subr.bf16.mxu1 %v6485_v7  ;;  %v438_v20 = vrot.slane %v405_v58, %v437_v13 }
 0x124   :  { %1205 = vmatpush2.bf16.msra.mxu0 %v6482_v8  ;;  %1246 = vmatpush2.bf16.msra.mxu1 %v6484_v11  ;;  %v433_v8 = vsub.s32 6, %v7951_v55  ;;  %v429_v11 = vsub.s32 5, %v7951_v55 }
 0x125   :  { %1206 = vmatprep.subr.bf16.mxu0 %v6475_v12  ;;  %1247 = vmatprep.subr.bf16.mxu1 %v6477_v15  ;;  %v426_v12 = vrot.slane %v405_v58, %v425_v6 }
 0x126   :  { %v434_v15 = vrot.slane %v405_v58, %v433_v8 }
 0x128   :  { %1207 = vmatpush2.bf16.msra.mxu0 %v6474_v16  ;;  %1248 = vmatpush2.bf16.msra.mxu1 %v6476_v17  ;;  %v430_v17 = vrot.slane %v405_v58, %v429_v11 }
 0x129   :  { %1208 = vmatprep.subr.bf16.mxu0 %v6467_v18  ;;  %1249 = vmatprep.subr.bf16.mxu1 %v6469_v62 }
 0x12c   :  { %1209 = vmatpush2.bf16.msra.mxu0 %v6466_v23  ;;  %1250 = vmatpush2.bf16.msra.mxu1 %v6468_v24 }
 0x12d   :  { %1210 = vmatprep.subr.bf16.mxu0 %v6459_v25  ;;  %1251 = vmatprep.subr.bf16.mxu1 %v6461_v26 }
 0x130   :  { %1211 = vmatpush2.bf16.msra.mxu0 %v6458_v31  ;;  %1252 = vmatpush2.bf16.msra.mxu1 %v6460_v32 }
 0x131   :  { %1212 = vmatprep.subr.bf16.mxu0 %v6451_v33  ;;  %1253 = vmatprep.subr.bf16.mxu1 %v6453_v34 }
 0x134   :  { %1213 = vmatpush2.bf16.msra.mxu0 %v6450_v39  ;;  %1254 = vmatpush2.bf16.msra.mxu1 %v6452_v40  ;;  %v1394_v39 = vld [vmem:[#allocation7 + $0x1c0] sm:$0xff] }
 0x135   :  { %1214 = vmatprep.subr.bf16.mxu0 %v6443_v41  ;;  %1255 = vmatprep.subr.bf16.mxu1 %v6445_v42  ;;  %v1398_v40 = vld [vmem:[#allocation7 + $0x1e0] sm:$0xff] }
 0x136   :  { %v1522_v41 = vld [vmem:[#allocation7 + $0x5c0] sm:$0xff]  ;;  %v6558_v42 = vcombine.low %v1394_v39, %v1398_v40 }
 0x138   :  { %1215 = vmatpush2.bf16.msra.mxu0 %v6442_v43  ;;  %1256 = vmatpush2.bf16.msra.mxu1 %v6444_v44  ;;  %v6559_v43 = vcombine.high %v1394_v39, %v1398_v40  ;;  %v1526_v44 = vld [vmem:[#allocation7 + $0x5e0] sm:$0xff] }
 0x139   :  { %v1350_v39 = vld [vmem:[#allocation7 + $0x60] sm:$0xff] }
 0x13a   :  { %4452 = vmatprep.subr.bf16.mxu0 %v6559_v43  ;;  %v1474_v40 = vld [vmem:[#allocation7 + $0x440] sm:$0xff] }
 0x13b   :  { %1217 = vmatmul.mubr.bf16.vlgmr.msra.gmra.mxu0 %v7943_v53  ;;  %1258 = vmatmul.mubr.bf16.vlgmr.msra.gmra.mxu1 %v7943_v53  ;;  %v410_v53 = vrot.slane %v405_v58, %v7954_v56  ;;  %v1382_v58 = vld [vmem:[#allocation7 + $0x160] sm:$0xff] }
 0x13c   :  { %4453 = vmatpush1.bf16.msra.mxu0 %v6558_v42 }
 0x1bb   :  { %v1136_v45 = vpop.f32.mrf.mxu0  ;;  %v1177_v46 = vpop.f32.mrf.mxu1 }
 0x1bc   :  { %v7962_v61 = vadd.f32 %v1136_v45, %v410_v53  ;;  %v7971_v3 = vadd.f32 %v1177_v46, %v418_v63  ;;  %v1386_v45 = vld [vmem:[#allocation7 + $0x180] sm:$0xff] }
 0x1bd   :  { %v1138_v47 = vpop.f32.mrf.mxu0  ;;  %v1179_v48 = vpop.f32.mrf.mxu1  ;;  %v1390_v46 = vld [vmem:[#allocation7 + $0x1a0] sm:$0xff] }
 0x1be   :  { %v7966_v0 = vadd.f32 %v1138_v47, %v414_v60  ;;  %v1267_v2 = vsel %vm1266_vm1, %v7962_v61, 0.0  ;;  %v1270_v9 = vsel %vm1266_vm1, %v7971_v3, 0.0  ;;  %v7981_v10 = vadd.f32 %v1179_v48, %v422_v5  ;;  %v1506_v53 = vld [vmem:[#allocation7 + $0x540] sm:$0xff] }
 0x1bf   :  { %v1140_v49 = vpop.f32.mrf.mxu0  ;;  %v1181_v50 = vpop.f32.mrf.mxu1  ;;  %v6686_v47 = vcombine.low %v1522_v41, %v1526_v44  ;;  %v6687_v48 = vcombine.high %v1522_v41, %v1526_v44  ;;  %v1510_v60 = vld [vmem:[#allocation7 + $0x560] sm:$0xff]  ;;  %v6550_v63 = vcombine.low %v1386_v45, %v1390_v46 }
 0x1c0   :  { %v1268_v4 = vsel %vm1266_vm1, %v7966_v0, 0.0  ;;  %v1272_v16 = vsel %vm1266_vm1, %v7981_v10, 0.0  ;;  %v6551_v49 = vcombine.high %v1386_v45, %v1390_v46  ;;  %v1514_v50 = vld [vmem:[#allocation7 + $0x580] sm:$0xff]  ;;  %v6671_v5 = vcombine.high %v1506_v53, %v1510_v60 }
 0x1c1   :  { %v1141_v51 = vpop.f32.mrf.mxu0  ;;  %v1182_v52 = vpop.f32.mrf.mxu1  ;;  %v1269_v7 = vadd.f32 %v1268_v4, %v1267_v2  ;;  %4493 = vmatprep.subr.bf16.mxu1 %v6687_v48  ;;  %v1478_v41 = vld [vmem:[#allocation7 + $0x460] sm:$0xff] }
 0x1c2   :  { %v1518_v51 = vld [vmem:[#allocation7 + $0x5a0] sm:$0xff]  ;;  %4494 = vmatpush1.bf16.msra.mxu1 %v6686_v47  ;;  %4454 = vmatprep.subr.bf16.mxu0 %v6551_v49  ;;  %v6639_v45 = vcombine.high %v1474_v40, %v1478_v41 }
 0x1c3   :  { %v1271_v14 = vadd.f32 %v1270_v9, %v1269_v7  ;;  %v1378_v52 = vld [vmem:[#allocation7 + $0x140] sm:$0xff]  ;;  %v6679_v54 = vcombine.high %v1514_v50, %v1518_v51  ;;  %v6678_v2 = vcombine.low %v1514_v50, %v1518_v51  ;;  %4455 = vmatpush1.bf16.msra.mxu0 %v6550_v63  ;;  %v6638_v51 = vcombine.low %v1474_v40, %v1478_v41 }
 0x1c4   :  { %v6543_v4 = vcombine.high %v1378_v52, %v1382_v58  ;;  %v1370_v7 = vld [vmem:[#allocation7 + $0x100] sm:$0xff] }
 0x1c5   :  { %v1273_v21 = vadd.f32 %v1272_v16, %v1271_v14  ;;  %4495 = vmatprep.subr.bf16.mxu1 %v6679_v54  ;;  %v1374_v9 = vld [vmem:[#allocation7 + $0x120] sm:$0xff]  ;;  %v6670_v16 = vcombine.low %v1506_v53, %v1510_v60 }
 0x1c6   :  { %v1502_v14 = vld [vmem:[#allocation7 + $0x520] sm:$0xff]  ;;  %4496 = vmatpush1.bf16.msra.mxu1 %v6678_v2  ;;  %4456 = vmatprep.subr.bf16.mxu0 %v6543_v4 }
 0x1c7   :  { %4497 = vmatprep.subr.bf16.mxu1 %v6671_v5  ;;  %v1338_v46 = vld [vmem:[#allocation7] sm:$0xff] }
 0x1c8   :  { %v1342_v47 = vld [vmem:[#allocation7 + $0x20] sm:$0xff] }
 0x1c9   :  { %v1466_v48 = vld [vmem:[#allocation7 + $0x400] sm:$0xff]  ;;  %v6502_v2 = vcombine.low %v1338_v46, %v1342_v47 }
 0x1ca   :  { %4498 = vmatpush1.bf16.msra.mxu1 %v6670_v16  ;;  %v1470_v49 = vld [vmem:[#allocation7 + $0x420] sm:$0xff] }
 0x1cb   :  { %v6631_v54 = vcombine.high %v1466_v48, %v1470_v49  ;;  %v1462_v53 = vld [vmem:[#allocation7 + $0x3e0] sm:$0xff]  ;;  %v6630_v4 = vcombine.low %v1466_v48, %v1470_v49 }
 0x1cc   :  { %v1586_v60 = vld [vmem:[#allocation7 + $0x7c0] sm:$0xff] }
 0x1cd   :  { %v1590_v63 = vld [vmem:[#allocation7 + $0x7e0] sm:$0xff] }
 0x1fb   :  { %v1218_v18 = vpop.f32.mrf.mxu0  ;;  %v1259_v19 = vpop.f32.mrf.mxu1 }
 0x1fc   :  { %v7993_v62 = vadd.f32 %v1218_v18, %v426_v12  ;;  %v7997_v22 = vadd.f32 %v1259_v19, %v434_v15  ;;  %v1498_v12 = vld [vmem:[#allocation7 + $0x500] sm:$0xff]  ;;  %v6542_v15 = vcombine.low %v1378_v52, %v1382_v58  ;;  %v6503_v52 = vcombine.high %v1338_v46, %v1342_v47 }
 0x1fd   :  { %v1220_v23 = vpop.f32.mrf.mxu0  ;;  %v1261_v26 = vpop.f32.mrf.mxu1  ;;  %v6663_v18 = vcombine.high %v1498_v12, %v1502_v14  ;;  %v1362_v19 = vld [vmem:[#allocation7 + $0xc0] sm:$0xff] }
 0x1fe   :  { %v1274_v24 = vsel %vm1266_vm1, %v7993_v62, 0.0  ;;  %v8001_v25 = vadd.f32 %v1220_v23, %v430_v17  ;;  %v1278_v29 = vsel %vm1266_vm1, %v7997_v22, 0.0  ;;  %v8007_v31 = vadd.f32 %v1261_v26, %v438_v20  ;;  %v1366_v20 = vld [vmem:[#allocation7 + $0xe0] sm:$0xff]  ;;  %4457 = vmatpush1.bf16.msra.mxu0 %v6542_v15 }
 0x1ff   :  { %v1275_v27 = vadd.f32 %v1274_v24, %v1273_v21  ;;  %v1222_v28 = vpop.f32.mrf.mxu0  ;;  %v1263_v32 = vpop.f32.mrf.mxu1  ;;  %v6535_v17 = vcombine.high %v1370_v7, %v1374_v9  ;;  %v1490_v21 = vld [vmem:[#allocation7 + $0x4c0] sm:$0xff]  ;;  %v6534_v24 = vcombine.low %v1370_v7, %v1374_v9  ;;  %v6662_v26 = vcombine.low %v1498_v12, %v1502_v14  ;;  %4499 = vmatprep.subr.bf16.mxu1 %v6663_v18 }
 0x200   :  { %v1276_v30 = vsel %vm1266_vm1, %v8001_v25, 0.0  ;;  %v1280_v37 = vsel %vm1266_vm1, %v8007_v31, 0.0  ;;  %v1494_v23 = vld [vmem:[#allocation7 + $0x4e0] sm:$0xff]  ;;  %v6751_v7 = vcombine.high %v1586_v60, %v1590_v63 }
 0x201   :  { %v1277_v33 = vadd.f32 %v1276_v30, %v1275_v27  ;;  %v1223_v34 = vpop.f32.mrf.mxu0  ;;  %v1264_v35 = vpop.f32.mrf.mxu1  ;;  %4458 = vmatprep.subr.bf16.mxu0 %v6535_v17  ;;  %v6527_v27 = vcombine.high %v1362_v19, %v1366_v20  ;;  %v6655_v28 = vcombine.high %v1490_v21, %v1494_v23  ;;  %v1358_v30 = vld [vmem:[#allocation7 + $0xa0] sm:$0xff]  ;;  %4500 = vmatpush1.bf16.msra.mxu1 %v6662_v26 }
 0x202   :  { %v1482_v32 = vld [vmem:[#allocation7 + $0x480] sm:$0xff]  ;;  %4459 = vmatpush1.bf16.msra.mxu0 %v6534_v24  ;;  %v6526_v34 = vcombine.low %v1362_v19, %v1366_v20  ;;  %v6654_v35 = vcombine.low %v1490_v21, %v1494_v23  ;;  %v6750_v17 = vcombine.low %v1586_v60, %v1590_v63 }
 0x203   :  { %v1279_v36 = vadd.f32 %v1278_v29, %v1277_v33  ;;  %v1354_v29 = vld [vmem:[#allocation7 + $0x80] sm:$0xff]  ;;  %4460 = vmatprep.subr.bf16.mxu0 %v6527_v27  ;;  %4501 = vmatprep.subr.bf16.mxu1 %v6655_v28 }
 0x204   :  { %v1486_v33 = vld [vmem:[#allocation7 + $0x4a0] sm:$0xff]  ;;  %v6518_v42 = vcombine.low %v1354_v29, %v1358_v30 }
 0x205   :  { %v1281_v38 = vadd.f32 %v1280_v37, %v1279_v36  ;;  %v6519_v36 = vcombine.high %v1354_v29, %v1358_v30  ;;  %v6647_v37 = vcombine.high %v1482_v32, %v1486_v33  ;;  %4502 = vmatpush1.bf16.msra.mxu1 %v6654_v35  ;;  %v6646_v43 = vcombine.low %v1482_v32, %v1486_v33  ;;  %v1458_v58 = vld [vmem:[#allocation7 + $0x3c0] sm:$0xff] }
 0x206   :  { %4461 = vmatpush1.bf16.msra.mxu0 %v6526_v34  ;;  %v6623_v5 = vcombine.high %v1458_v58, %v1462_v53  ;;  %v1450_v9 = vld [vmem:[#allocation7 + $0x380] sm:$0xff]  ;;  %v6622_v16 = vcombine.low %v1458_v58, %v1462_v53 }
 0x207   :  { %1282 = vadd.xlane.f32.xlu0 %v1281_v38  ;;  %v1346_v38 = vld [vmem:[#allocation7 + $0x40] sm:$0xff]  ;;  %4462 = vmatprep.subr.bf16.mxu0 %v6519_v36 }
 0x208   :  { %v6511_v44 = vcombine.high %v1346_v38, %v1350_v39  ;;  %4503 = vmatprep.subr.bf16.mxu1 %v6647_v37  ;;  %v6510_v50 = vcombine.low %v1346_v38, %v1350_v39  ;;  %v1454_v12 = vld [vmem:[#allocation7 + $0x3a0] sm:$0xff] }
 0x209   :  { %4504 = vmatpush1.bf16.msra.mxu1 %v6646_v43  ;;  %v1578_v14 = vld [vmem:[#allocation7 + $0x780] sm:$0xff]  ;;  %v6615_v18 = vcombine.high %v1450_v9, %v1454_v12  ;;  %v6614_v26 = vcombine.low %v1450_v9, %v1454_v12 }
 0x20a   :  { %4463 = vmatpush1.bf16.msra.mxu0 %v6518_v42  ;;  %4505 = vmatprep.subr.bf16.mxu1 %v6639_v45  ;;  %v1582_v15 = vld [vmem:[#allocation7 + $0x7a0] sm:$0xff] }
 0x20b   :  { %4464 = vmatprep.subr.bf16.mxu0 %v6511_v44  ;;  %v6743_v19 = vcombine.high %v1578_v14, %v1582_v15  ;;  %v1442_v20 = vld [vmem:[#allocation7 + $0x340] sm:$0xff]  ;;  %v6742_v27 = vcombine.low %v1578_v14, %v1582_v15 }
 0x20c   :  { %v1446_v21 = vld [vmem:[#allocation7 + $0x360] sm:$0xff] }
 0x20d   :  { %4506 = vmatpush1.bf16.msra.mxu1 %v6638_v51  ;;  %v1570_v23 = vld [vmem:[#allocation7 + $0x740] sm:$0xff]  ;;  %v6607_v28 = vcombine.high %v1442_v20, %v1446_v21  ;;  %v6606_v30 = vcombine.low %v1442_v20, %v1446_v21 }
 0x20e   :  { %4465 = vmatpush1.bf16.msra.mxu0 %v6510_v50  ;;  %4507 = vmatprep.subr.bf16.mxu1 %v6631_v54  ;;  %v1574_v24 = vld [vmem:[#allocation7 + $0x760] sm:$0xff] }
 0x20f   :  { %4466 = vmatprep.subr.bf16.mxu0 %v6503_v52  ;;  %v6735_v29 = vcombine.high %v1570_v23, %v1574_v24  ;;  %v6734_v32 = vcombine.low %v1570_v23, %v1574_v24  ;;  %v1566_v9 = vld [vmem:[#allocation7 + $0x720] sm:$0xff] }
 0x210   :  { %v1558_v21 = vld [vmem:[#allocation7 + $0x6e0] sm:$0xff] }
 0x211   :  { %4508 = vmatpush1.bf16.msra.mxu1 %v6630_v4  ;;  %v1438_v4 = vld [vmem:[#allocation7 + $0x320] sm:$0xff] }
 0x212   :  { %4467 = vmatpush1.bf16.msra.mxu0 %v6502_v2  ;;  %4509 = vmatprep.subr.bf16.mxu1 %v6751_v7  ;;  %v1434_v2 = vld [vmem:[#allocation7 + $0x300] sm:$0xff] }
 0x213   :  { %4468 = vmatprep.subr.bf16.mxu0 %v6623_v5  ;;  %v1562_v5 = vld [vmem:[#allocation7 + $0x700] sm:$0xff]  ;;  %v6599_v7 = vcombine.high %v1434_v2, %v1438_v4  ;;  %v6598_v12 = vcombine.low %v1434_v2, %v1438_v4 }
 0x214   :  { %v6726_v14 = vcombine.low %v1562_v5, %v1566_v9  ;;  %v6727_v15 = vcombine.high %v1562_v5, %v1566_v9  ;;  %v1418_v23 = vld [vmem:[#allocation7 + $0x280] sm:$0xff] }
 0x215   :  { %4510 = vmatpush2.bf16.msra.mxu1 %v6750_v17  ;;  %v1430_v17 = vld [vmem:[#allocation7 + $0x2e0] sm:$0xff] }
 0x216   :  { %4469 = vmatpush2.bf16.msra.mxu0 %v6622_v16  ;;  %4511 = vmatprep.subr.bf16.mxu1 %v6743_v19  ;;  %v1426_v16 = vld [vmem:[#allocation7 + $0x2c0] sm:$0xff] }
 0x217   :  { %4470 = vmatprep.subr.bf16.mxu0 %v6615_v18  ;;  %v1554_v18 = vld [vmem:[#allocation7 + $0x6c0] sm:$0xff]  ;;  %v6590_v19 = vcombine.low %v1426_v16, %v1430_v17  ;;  %v6591_v20 = vcombine.high %v1426_v16, %v1430_v17 }
 0x218   :  { %v1422_v24 = vld [vmem:[#allocation7 + $0x2a0] sm:$0xff] }
 0x219   :  { %4512 = vmatpush2.bf16.msra.mxu1 %v6742_v27  ;;  %v6719_v27 = vcombine.high %v1554_v18, %v1558_v21  ;;  %v1642_v17 = vld [vmem:[#allocation7 + $0x980] sm:$0xff] }
 0x21a   :  { %4471 = vmatpush2.bf16.msra.mxu0 %v6614_v26  ;;  %4513 = vmatprep.subr.bf16.mxu1 %v6735_v29  ;;  %v6718_v26 = vcombine.low %v1554_v18, %v1558_v21  ;;  %v1546_v29 = vld [vmem:[#allocation7 + $0x680] sm:$0xff] }
 0x21b   :  { %4472 = vmatprep.subr.bf16.mxu0 %v6607_v28  ;;  %v6583_v28 = vcombine.high %v1418_v23, %v1422_v24  ;;  %v1770_v21 = vld [vmem:[#allocation7 + $0xd80] sm:$0xff] }
 0x21d   :  { %4514 = vmatpush2.bf16.msra.mxu1 %v6734_v32 }
 0x21e   :  { %4473 = vmatpush2.bf16.msra.mxu0 %v6606_v30  ;;  %4515 = vmatprep.subr.bf16.mxu1 %v6727_v15  ;;  %v1550_v30 = vld [vmem:[#allocation7 + $0x6a0] sm:$0xff] }
 0x21f   :  { %4474 = vmatprep.subr.bf16.mxu0 %v6599_v7  ;;  %v6711_v32 = vcombine.high %v1546_v29, %v1550_v30 }
 0x221   :  { %4516 = vmatpush2.bf16.msra.mxu1 %v6726_v14 }
 0x222   :  { %4475 = vmatpush2.bf16.msra.mxu0 %v6598_v12  ;;  %4517 = vmatprep.subr.bf16.mxu1 %v6719_v27  ;;  %v1638_v27 = vld [vmem:[#allocation7 + $0x960] sm:$0xff] }
 0x223   :  { %4476 = vmatprep.subr.bf16.mxu0 %v6591_v20  ;;  %v1646_v20 = vld [vmem:[#allocation7 + $0x9a0] sm:$0xff] }
 0x225   :  { %4518 = vmatpush2.bf16.msra.mxu1 %v6718_v26  ;;  %v1634_v26 = vld [vmem:[#allocation7 + $0x940] sm:$0xff] }
 0x226   :  { %4477 = vmatpush2.bf16.msra.mxu0 %v6590_v19  ;;  %4519 = vmatprep.subr.bf16.mxu1 %v6711_v32  ;;  %v6806_v32 = vcombine.low %v1642_v17, %v1646_v20 }
 0x227   :  { %4478 = vmatprep.subr.bf16.mxu0 %v6583_v28  ;;  %v1766_v28 = vld [vmem:[#allocation7 + $0xd60] sm:$0xff] }
 0x290   :  { %v1283_v33 = vpop.xlane.xlu0 %1282 }
 0x291   :  { %v1285_v34 = vmul.f32 0.0009765625, %v1283_v33  ;;  %v1410_v33 = vld [vmem:[#allocation7 + $0x240] sm:$0xff] }
 0x293   :  { %v8012_v35 = vsub.f32 %v7962_v61, %v1285_v34  ;;  %v8015_v36 = vsub.f32 %v7966_v0, %v1285_v34  ;;  %v8018_v37 = vsub.f32 %v7971_v3, %v1285_v34  ;;  %v8021_v38 = vsub.f32 %v7981_v10, %v1285_v34 }
 0x294   :  { %v8024_v39 = vsub.f32 %v7993_v62, %v1285_v34  ;;  %v8033_v0 = vsub.f32 %v8001_v25, %v1285_v34  ;;  %v8040_v43 = vsub.f32 %v7997_v22, %v1285_v34  ;;  %v8046_v25 = vsub.f32 %v8007_v31, %v1285_v34  ;;  %v1414_v34 = vld [vmem:[#allocation7 + $0x260] sm:$0xff] }
 0x295   :  { %v1294_v40 = vmul.f32 %v8012_v35, %v8012_v35  ;;  %v1295_v41 = vmul.f32 %v8015_v36, %v8015_v36  ;;  %v1296_v61 = vmul.f32 %v8018_v37, %v8018_v37  ;;  %v1297_v3 = vmul.f32 %v8021_v38, %v8021_v38 }
 0x296   :  { %v1298_v44 = vmul.f32 %v8024_v39, %v8024_v39  ;;  %v1299_v47 = vmul.f32 %v8033_v0, %v8033_v0  ;;  %v1300_v50 = vmul.f32 %v8040_v43, %v8040_v43  ;;  %v1301_v52 = vmul.f32 %v8046_v25, %v8046_v25 }
 0x297   :  { %v1302_v10 = vsel %vm1266_vm1, %v1294_v40, 0.0  ;;  %v1303_v62 = vsel %vm1266_vm1, %v1295_v41, 0.0  ;;  %v1305_v45 = vsel %vm1266_vm1, %v1296_v61, 0.0  ;;  %v1307_v48 = vsel %vm1266_vm1, %v1297_v3, 0.0  ;;  %v1538_v40 = vld [vmem:[#allocation7 + $0x640] sm:$0xff] }
 0x298   :  { %v1304_v42 = vadd.f32 %v1303_v62, %v1302_v10  ;;  %v1309_v22 = vsel %vm1266_vm1, %v1298_v44, 0.0  ;;  %v1311_v54 = vsel %vm1266_vm1, %v1299_v47, 0.0  ;;  %v1313_v31 = vsel %vm1266_vm1, %v1300_v50, 0.0  ;;  %v1542_v41 = vld [vmem:[#allocation7 + $0x660] sm:$0xff] }
 0x299   :  { %v1315_v60 = vsel %vm1266_vm1, %v1301_v52, 0.0  ;;  %v6582_v61 = vcombine.low %v1418_v23, %v1422_v24  ;;  %v6710_v3 = vcombine.low %v1546_v29, %v1550_v30  ;;  %v6575_v10 = vcombine.high %v1410_v33, %v1414_v34  ;;  %v1406_v44 = vld [vmem:[#allocation7 + $0x220] sm:$0xff] }
 0x29a   :  { %v1306_v46 = vadd.f32 %v1305_v45, %v1304_v42  ;;  %v6703_v62 = vcombine.high %v1538_v40, %v1542_v41  ;;  %v1402_v42 = vld [vmem:[#allocation7 + $0x200] sm:$0xff]  ;;  %v6574_v47 = vcombine.low %v1410_v33, %v1414_v34  ;;  %v6799_v34 = vcombine.high %v1634_v26, %v1638_v27 }
 0x29b   :  { %v1530_v45 = vld [vmem:[#allocation7 + $0x600] sm:$0xff]  ;;  %4479 = vmatpush2.bf16.msra.mxu0 %v6582_v61  ;;  %4520 = vmatpush2.bf16.msra.mxu1 %v6710_v3 }
 0x29c   :  { %v1308_v49 = vadd.f32 %v1307_v48, %v1306_v46  ;;  %v1534_v46 = vld [vmem:[#allocation7 + $0x620] sm:$0xff]  ;;  %4480 = vmatprep.subr.bf16.mxu0 %v6575_v10  ;;  %v6702_v48 = vcombine.low %v1538_v40, %v1542_v41  ;;  %4521 = vmatprep.subr.bf16.mxu1 %v6703_v62  ;;  %v6798_v62 = vcombine.low %v1634_v26, %v1638_v27 }
 0x29d   :  { %v6695_v50 = vcombine.high %v1530_v45, %v1534_v46  ;;  %v1650_v52 = vld [vmem:[#allocation7 + $0x9c0] sm:$0xff] }
 0x29e   :  { %v1310_v51 = vadd.f32 %v1309_v22, %v1308_v49  ;;  %v6567_v49 = vcombine.high %v1402_v42, %v1406_v44  ;;  %v6566_v22 = vcombine.low %v1402_v42, %v1406_v44  ;;  %v1774_v23 = vld [vmem:[#allocation7 + $0xda0] sm:$0xff] }
 0x29f   :  { %4481 = vmatpush2.bf16.msra.mxu0 %v6574_v47  ;;  %4522 = vmatpush2.bf16.msra.mxu1 %v6702_v48  ;;  %v6934_v33 = vcombine.low %v1770_v21, %v1774_v23  ;;  %v1626_v41 = vld [vmem:[#allocation7 + $0x900] sm:$0xff] }
 0x2a0   :  { %v1312_v58 = vadd.f32 %v1311_v54, %v1310_v51  ;;  %4482 = vmatprep.subr.bf16.mxu0 %v6567_v49  ;;  %v6694_v51 = vcombine.low %v1530_v45, %v1534_v46  ;;  %4523 = vmatprep.subr.bf16.mxu1 %v6695_v50  ;;  %v1654_v54 = vld [vmem:[#allocation7 + $0x9e0] sm:$0xff] }
 0x2a1   :  { %v1630_v61 = vld [vmem:[#allocation7 + $0x920] sm:$0xff] }
 0x2a2   :  { %v1314_v53 = vadd.f32 %v1313_v31, %v1312_v58  ;;  %v1778_v58 = vld [vmem:[#allocation7 + $0xdc0] sm:$0xff]  ;;  %v6814_v31 = vcombine.low %v1650_v52, %v1654_v54  ;;  %v6791_v44 = vcombine.high %v1626_v41, %v1630_v61  ;;  %v6790_v50 = vcombine.low %v1626_v41, %v1630_v61 }
 0x2a3   :  { %4483 = vmatpush2.bf16.msra.mxu0 %v6566_v22  ;;  %4524 = vmatpush2.bf16.msra.mxu1 %v6694_v51  ;;  %v1754_v3 = vld [vmem:[#allocation7 + $0xd00] sm:$0xff] }
 0x2a4   :  { %v1316_v63 = vadd.f32 %v1315_v60, %v1314_v53  ;;  %v6815_v53 = vcombine.high %v1650_v52, %v1654_v54  ;;  %v1782_v60 = vld [vmem:[#allocation7 + $0xde0] sm:$0xff] }
 0x2a5   :  { %v6943_v2 = vcombine.high %v1778_v58, %v1782_v60  ;;  %v1758_v10 = vld [vmem:[#allocation7 + $0xd20] sm:$0xff] }
 0x2a6   :  { %1317 = vadd.xlane.f32.xlu0 %v1316_v63  ;;  %v6942_v63 = vcombine.low %v1778_v58, %v1782_v60  ;;  %4534 = vmatprep.subr.bf16.mxu0 %v6815_v53  ;;  %v6919_v45 = vcombine.high %v1754_v3, %v1758_v10  ;;  %v1618_v46 = vld [vmem:[#allocation7 + $0x8c0] sm:$0xff]  ;;  %v6918_v22 = vcombine.low %v1754_v3, %v1758_v10 }
 0x2a7   :  { %4575 = vmatprep.subr.bf16.mxu1 %v6943_v2  ;;  %v1622_v47 = vld [vmem:[#allocation7 + $0x8e0] sm:$0xff] }
 0x2a8   :  { %v1746_v48 = vld [vmem:[#allocation7 + $0xcc0] sm:$0xff]  ;;  %v6783_v51 = vcombine.high %v1618_v46, %v1622_v47  ;;  %v6782_v60 = vcombine.low %v1618_v46, %v1622_v47 }
 0x2a9   :  { %v1750_v49 = vld [vmem:[#allocation7 + $0xce0] sm:$0xff] }
 0x2aa   :  { %v6911_v52 = vcombine.high %v1746_v48, %v1750_v49  ;;  %v1610_v54 = vld [vmem:[#allocation7 + $0x880] sm:$0xff] }
 0x2ab   :  { %v1614_v58 = vld [vmem:[#allocation7 + $0x8a0] sm:$0xff] }
 0x2ac   :  { %v1742_v53 = vld [vmem:[#allocation7 + $0xca0] sm:$0xff]  ;;  %v6775_v2 = vcombine.high %v1610_v54, %v1614_v58 }
 0x2ad   :  { %v1706_v3 = vld [vmem:[#allocation7 + $0xb80] sm:$0xff] }
 0x2ae   :  { %v1710_v10 = vld [vmem:[#allocation7 + $0xba0] sm:$0xff] }
 0x2af   :  { %v6871_v46 = vcombine.high %v1706_v3, %v1710_v10 }
 0x32f   :  { %v1318_v4 = vpop.xlane.xlu0 %1317 }
 0x330   :  { %v1319_v5 = vmul.f32 0.0009765625, %v1318_v4 }
 0x332   :  { %v1320_v7 = vadd.f32 1e-05, %v1319_v5  ;;  %v1602_v5 = vld [vmem:[#allocation7 + $0x840] sm:$0xff] }
 0x334   :  { %7456 = vrsqrt.f32 %v1320_v7  ;;  %v1606_v7 = vld [vmem:[#allocation7 + $0x860] sm:$0xff] }
 0x335   :  { %v6766_v26 = vcombine.low %v1602_v5, %v1606_v7 }
 0x341   :  { %v8059_v9 = vpop.eup %7456 }
 0x342   :  { %v1323_v12 = vmul.f32 %v8059_v9, %v8015_v36  ;;  %v1325_v14 = vmul.f32 %v8059_v9, %v8021_v38  ;;  %v1322_v15 = vmul.f32 %v8059_v9, %v8012_v35  ;;  %v1324_v16 = vmul.f32 %v8059_v9, %v8018_v37 }
 0x343   :  { %v1327_v18 = vmul.f32 %v8059_v9, %v8033_v0  ;;  %v1329_v19 = vmul.f32 %v8059_v9, %v8046_v25  ;;  %v6807_v37 = vcombine.high %v1642_v17, %v1646_v20  ;;  %v6935_v0 = vcombine.high %v1770_v21, %v1774_v23  ;;  %v1762_v25 = vld [vmem:[#allocation7 + $0xd40] sm:$0xff] }
 0x344   :  { %v8073_v36 = vpack.c.bf16 %v1323_v12, %v1323_v12  ;;  %v8075_v24 = vpack.c.bf16 %v1325_v14, %v1325_v14  ;;  %v8077_v38 = vpack.c.bf16 %v1322_v15, %v1322_v15  ;;  %v8079_v35 = vpack.c.bf16 %v1324_v16, %v1324_v16  ;;  %v1730_v12 = vld [vmem:[#allocation7 + $0xc40] sm:$0xff] }
 0x345   :  { %v8085_v29 = vpack.c.bf16 %v1327_v18, %v1327_v18  ;;  %v8087_v30 = vpack.c.bf16 %v1329_v19, %v1329_v19  ;;  %v6927_v40 = vcombine.high %v1762_v25, %v1766_v28  ;;  %v6926_v42 = vcombine.low %v1762_v25, %v1766_v28  ;;  %v1734_v14 = vld [vmem:[#allocation7 + $0xc60] sm:$0xff] }
 0x346   :  { %4484 = vmatprep.mubr.bf16.mxu0 %v8073_v36  ;;  %4525 = vmatprep.mubr.bf16.mxu1 %v8075_v24  ;;  %v6774_v15 = vcombine.low %v1610_v54, %v1614_v58  ;;  %v6767_v17 = vcombine.high %v1602_v5, %v1606_v7  ;;  %v6895_v18 = vcombine.high %v1730_v12, %v1734_v14  ;;  %v1594_v19 = vld [vmem:[#allocation7 + $0x800] sm:$0xff] }
 0x347   :  { %4485 = vmatmul.mubr.bf16.vlgmr.msra.gmra.mxu0 %v8077_v38  ;;  %4526 = vmatmul.mubr.bf16.vlgmr.msra.gmra.mxu1 %v8079_v35  ;;  %v1598_v20 = vld [vmem:[#allocation7 + $0x820] sm:$0xff] }
 0x348   :  { %4535 = vmatpush1.bf16.msra.mxu0 %v6814_v31  ;;  %4576 = vmatpush1.bf16.msra.mxu1 %v6942_v63  ;;  %v1738_v31 = vld [vmem:[#allocation7 + $0xc80] sm:$0xff]  ;;  %v6910_v63 = vcombine.low %v1746_v48, %v1750_v49 }
 0x349   :  { %4566 = vmatprep.mubr.bf16.mxu0 %v8085_v29  ;;  %4607 = vmatprep.mubr.bf16.mxu1 %v8087_v30  ;;  %v6903_v4 = vcombine.high %v1738_v31, %v1742_v53  ;;  %v6902_v16 = vcombine.low %v1738_v31, %v1742_v53  ;;  %v1722_v21 = vld [vmem:[#allocation7 + $0xc00] sm:$0xff] }
 0x34a   :  { %4536 = vmatprep.subr.bf16.mxu0 %v6807_v37  ;;  %4577 = vmatprep.subr.bf16.mxu1 %v6935_v0  ;;  %v1726_v23 = vld [vmem:[#allocation7 + $0xc20] sm:$0xff]  ;;  %v6894_v37 = vcombine.low %v1730_v12, %v1734_v14  ;;  %v6759_v0 = vcombine.high %v1594_v19, %v1598_v20 }
 0x34b   :  { %v6887_v27 = vcombine.high %v1722_v21, %v1726_v23  ;;  %v1714_v25 = vld [vmem:[#allocation7 + $0xbc0] sm:$0xff] }
 0x34c   :  { %4537 = vmatpush1.bf16.msra.mxu0 %v6806_v32  ;;  %4578 = vmatpush1.bf16.msra.mxu1 %v6934_v33  ;;  %v1718_v28 = vld [vmem:[#allocation7 + $0xbe0] sm:$0xff] }
 0x34d   :  { %4538 = vmatprep.subr.bf16.mxu0 %v6799_v34  ;;  %4579 = vmatprep.subr.bf16.mxu1 %v6927_v40  ;;  %v1842_v32 = vld [vmem:[#allocation7 + $0xfc0] sm:$0xff]  ;;  %v6758_v34 = vcombine.low %v1594_v19, %v1598_v20  ;;  %v6886_v40 = vcombine.low %v1722_v21, %v1726_v23  ;;  %v6879_v41 = vcombine.high %v1714_v25, %v1718_v28 }
 0x34e   :  { %v1846_v33 = vld [vmem:[#allocation7 + $0xfe0] sm:$0xff] }
 0x34f   :  { %v7007_v61 = vcombine.high %v1842_v32, %v1846_v33  ;;  %v1698_v48 = vld [vmem:[#allocation7 + $0xb40] sm:$0xff] }
 0x350   :  { %4539 = vmatpush1.bf16.msra.mxu0 %v6798_v62  ;;  %4580 = vmatpush1.bf16.msra.mxu1 %v6926_v42  ;;  %v1834_v62 = vld [vmem:[#allocation7 + $0xf80] sm:$0xff] }
 0x351   :  { %4540 = vmatprep.subr.bf16.mxu0 %v6791_v44  ;;  %4581 = vmatprep.subr.bf16.mxu1 %v6919_v45  ;;  %v1838_v42 = vld [vmem:[#allocation7 + $0xfa0] sm:$0xff]  ;;  %v6878_v44 = vcombine.low %v1714_v25, %v1718_v28  ;;  %v7006_v45 = vcombine.low %v1842_v32, %v1846_v33 }
 0x352   :  { %v6999_v47 = vcombine.high %v1834_v62, %v1838_v42  ;;  %v1702_v49 = vld [vmem:[#allocation7 + $0xb60] sm:$0xff] }
 0x353   :  { %v6863_v54 = vcombine.high %v1698_v48, %v1702_v49  ;;  %v1690_v31 = vld [vmem:[#allocation7 + $0xb00] sm:$0xff] }
 0x354   :  { %4541 = vmatpush1.bf16.msra.mxu0 %v6790_v50  ;;  %4582 = vmatpush1.bf16.msra.mxu1 %v6918_v22  ;;  %v1826_v50 = vld [vmem:[#allocation7 + $0xf40] sm:$0xff] }
 0x355   :  { %4542 = vmatprep.subr.bf16.mxu0 %v6783_v51  ;;  %4583 = vmatprep.subr.bf16.mxu1 %v6911_v52  ;;  %v1830_v22 = vld [vmem:[#allocation7 + $0xf60] sm:$0xff]  ;;  %v6870_v51 = vcombine.low %v1706_v3, %v1710_v10  ;;  %v6998_v52 = vcombine.low %v1834_v62, %v1838_v42 }
 0x356   :  { %v6991_v58 = vcombine.high %v1826_v50, %v1830_v22  ;;  %v1694_v53 = vld [vmem:[#allocation7 + $0xb20] sm:$0xff] }
 0x357   :  { %v6855_v5 = vcombine.high %v1690_v31, %v1694_v53  ;;  %v1682_v12 = vld [vmem:[#allocation7 + $0xac0] sm:$0xff] }
 0x358   :  { %4543 = vmatpush1.bf16.msra.mxu0 %v6782_v60  ;;  %4584 = vmatpush1.bf16.msra.mxu1 %v6910_v63  ;;  %v1818_v60 = vld [vmem:[#allocation7 + $0xf00] sm:$0xff] }
 0x359   :  { %4544 = vmatprep.subr.bf16.mxu0 %v6775_v2  ;;  %4585 = vmatprep.subr.bf16.mxu1 %v6903_v4  ;;  %v1822_v63 = vld [vmem:[#allocation7 + $0xf20] sm:$0xff]  ;;  %v6862_v2 = vcombine.low %v1698_v48, %v1702_v49  ;;  %v6990_v4 = vcombine.low %v1826_v50, %v1830_v22  ;;  %v1395_v50 = vld [vmem:[#allocation7 + $0x1c8] sm:$0xff] }
 0x35a   :  { %v6983_v7 = vcombine.high %v1818_v60, %v1822_v63  ;;  %v1686_v14 = vld [vmem:[#allocation7 + $0xae0] sm:$0xff]  ;;  %v1399_v22 = vld [vmem:[#allocation7 + $0x1e8] sm:$0xff] }
 0x35b   :  { %v6847_v19 = vcombine.high %v1682_v12, %v1686_v14  ;;  %v1674_v21 = vld [vmem:[#allocation7 + $0xa80] sm:$0xff] }
 0x35c   :  { %4545 = vmatpush1.bf16.msra.mxu0 %v6774_v15  ;;  %4586 = vmatpush1.bf16.msra.mxu1 %v6902_v16  ;;  %v1810_v15 = vld [vmem:[#allocation7 + $0xec0] sm:$0xff] }
 0x35d   :  { %4546 = vmatprep.subr.bf16.mxu0 %v6767_v17  ;;  %4587 = vmatprep.subr.bf16.mxu1 %v6895_v18  ;;  %v1814_v16 = vld [vmem:[#allocation7 + $0xee0] sm:$0xff]  ;;  %v6854_v17 = vcombine.low %v1690_v31, %v1694_v53  ;;  %v6982_v18 = vcombine.low %v1818_v60, %v1822_v63  ;;  %v6561_v31 = vcombine.high %v1395_v50, %v1399_v22 }
 0x35e   :  { %v6975_v20 = vcombine.high %v1810_v15, %v1814_v16  ;;  %v1678_v23 = vld [vmem:[#allocation7 + $0xaa0] sm:$0xff]  ;;  %v1326_v53 = vmul.f32 %v8059_v9, %v8024_v39  ;;  %v1328_v60 = vmul.f32 %v8059_v9, %v8040_v43  ;;  %v1507_v43 = vld [vmem:[#allocation7 + $0x548] sm:$0xff] }
 0x35f   :  { %v6839_v25 = vcombine.high %v1674_v21, %v1678_v23  ;;  %v1666_v32 = vld [vmem:[#allocation7 + $0xa40] sm:$0xff]  ;;  %v1511_v9 = vld [vmem:[#allocation7 + $0x568] sm:$0xff] }
 0x360   :  { %4547 = vmatpush1.bf16.msra.mxu0 %v6766_v26  ;;  %4588 = vmatpush1.bf16.msra.mxu1 %v6894_v37  ;;  %v1802_v26 = vld [vmem:[#allocation7 + $0xe80] sm:$0xff] }
 0x361   :  { %4548 = vmatprep.subr.bf16.mxu0 %v6759_v0  ;;  %4589 = vmatprep.subr.bf16.mxu1 %v6887_v27  ;;  %v1806_v37 = vld [vmem:[#allocation7 + $0xea0] sm:$0xff]  ;;  %v6846_v0 = vcombine.low %v1682_v12, %v1686_v14  ;;  %v6974_v27 = vcombine.low %v1810_v15, %v1814_v16  ;;  %v6560_v12 = vcombine.low %v1395_v50, %v1399_v22 }
 0x362   :  { %v6967_v28 = vcombine.high %v1802_v26, %v1806_v37  ;;  %v1670_v33 = vld [vmem:[#allocation7 + $0xa60] sm:$0xff]  ;;  %v8095_v14 = vpack.c.bf16 %v1326_v53, %v1326_v53  ;;  %v8097_v15 = vpack.c.bf16 %v1328_v60, %v1328_v60 }
 0x363   :  { %v6831_v3 = vcombine.high %v1666_v32, %v1670_v33  ;;  %v1658_v62 = vld [vmem:[#allocation7 + $0xa00] sm:$0xff] }
 0x364   :  { %4549 = vmatpush1.bf16.msra.mxu0 %v6758_v34  ;;  %4590 = vmatpush1.bf16.msra.mxu1 %v6886_v40  ;;  %v1794_v34 = vld [vmem:[#allocation7 + $0xe40] sm:$0xff] }
 0x365   :  { %4550 = vmatprep.subr.bf16.mxu0 %v6879_v41  ;;  %4591 = vmatprep.subr.bf16.mxu1 %v7007_v61  ;;  %v1798_v40 = vld [vmem:[#allocation7 + $0xe60] sm:$0xff]  ;;  %v6838_v41 = vcombine.low %v1674_v21, %v1678_v23  ;;  %v6966_v61 = vcombine.low %v1802_v26, %v1806_v37  ;;  %v6673_v26 = vcombine.high %v1507_v43, %v1511_v9  ;;  %v1371_v37 = vld [vmem:[#allocation7 + $0x108] sm:$0xff] }
 0x366   :  { %v6959_v10 = vcombine.high %v1794_v34, %v1798_v40  ;;  %v1662_v42 = vld [vmem:[#allocation7 + $0xa20] sm:$0xff] }
 0x367   :  { %v6823_v48 = vcombine.high %v1658_v62, %v1662_v42 }
 0x368   :  { %4551 = vmatpush2.bf16.msra.mxu0 %v6878_v44  ;;  %4592 = vmatpush2.bf16.msra.mxu1 %v7006_v45  ;;  %v1786_v44 = vld [vmem:[#allocation7 + $0xe00] sm:$0xff] }
 0x369   :  { %4552 = vmatprep.subr.bf16.mxu0 %v6871_v46  ;;  %4593 = vmatprep.subr.bf16.mxu1 %v6999_v47  ;;  %v1790_v45 = vld [vmem:[#allocation7 + $0xe20] sm:$0xff]  ;;  %v6830_v46 = vcombine.low %v1666_v32, %v1670_v33  ;;  %v6958_v47 = vcombine.low %v1794_v34, %v1798_v40  ;;  %v6672_v32 = vcombine.low %v1507_v43, %v1511_v9  ;;  %v1363_v40 = vld [vmem:[#allocation7 + $0xc8] sm:$0xff] }
 0x36a   :  { %v6951_v49 = vcombine.high %v1786_v44, %v1790_v45  ;;  %v1463_v43 = vld [vmem:[#allocation7 + $0x3e8] sm:$0xff] }
 0x36b   :  { %v1587_v9 = vld [vmem:[#allocation7 + $0x7c8] sm:$0xff] }
 0x36c   :  { %4553 = vmatpush2.bf16.msra.mxu0 %v6870_v51  ;;  %4594 = vmatpush2.bf16.msra.mxu1 %v6998_v52  ;;  %v1523_v51 = vld [vmem:[#allocation7 + $0x5c8] sm:$0xff] }
 0x36d   :  { %4554 = vmatprep.subr.bf16.mxu0 %v6863_v54  ;;  %4595 = vmatprep.subr.bf16.mxu1 %v6991_v58  ;;  %v1527_v52 = vld [vmem:[#allocation7 + $0x5e8] sm:$0xff]  ;;  %v6822_v54 = vcombine.low %v1658_v62, %v1662_v42  ;;  %v6950_v58 = vcombine.low %v1786_v44, %v1790_v45 }
 0x36e   :  { %v6689_v63 = vcombine.high %v1523_v51, %v1527_v52  ;;  %v6688_v16 = vcombine.low %v1523_v51, %v1527_v52  ;;  %v1355_v45 = vld [vmem:[#allocation7 + $0x88] sm:$0xff] }
 0x36f   :  { %v1347_v52 = vld [vmem:[#allocation7 + $0x48] sm:$0xff] }
 0x370   :  { %4555 = vmatpush2.bf16.msra.mxu0 %v6862_v2  ;;  %4596 = vmatpush2.bf16.msra.mxu1 %v6990_v4  ;;  %v1387_v2 = vld [vmem:[#allocation7 + $0x188] sm:$0xff] }
 0x371   :  { %4556 = vmatprep.subr.bf16.mxu0 %v6855_v5  ;;  %4597 = vmatprep.subr.bf16.mxu1 %v6983_v7  ;;  %v1391_v4 = vld [vmem:[#allocation7 + $0x1a8] sm:$0xff] }
 0x372   :  { %v1515_v5 = vld [vmem:[#allocation7 + $0x588] sm:$0xff] }
 0x373   :  { %v1519_v7 = vld [vmem:[#allocation7 + $0x5a8] sm:$0xff] }
 0x374   :  { %4557 = vmatpush2.bf16.msra.mxu0 %v6854_v17  ;;  %4598 = vmatpush2.bf16.msra.mxu1 %v6982_v18  ;;  %v6553_v17 = vcombine.high %v1387_v2, %v1391_v4  ;;  %v6681_v39 = vcombine.high %v1515_v5, %v1519_v7  ;;  %v1379_v18 = vld [vmem:[#allocation7 + $0x148] sm:$0xff]  ;;  %v6680_v21 = vcombine.low %v1515_v5, %v1519_v7 }
 0x375   :  { %4558 = vmatprep.subr.bf16.mxu0 %v6847_v19  ;;  %4599 = vmatprep.subr.bf16.mxu1 %v6975_v20  ;;  %v1383_v19 = vld [vmem:[#allocation7 + $0x168] sm:$0xff]  ;;  %v6552_v20 = vcombine.low %v1387_v2, %v1391_v4 }
 0x376   :  { %v6545_v23 = vcombine.high %v1379_v18, %v1383_v19  ;;  %v1339_v4 = vld [vmem:[#allocation7 + $0x8] sm:$0xff] }
 0x377   :  { %v1343_v5 = vld [vmem:[#allocation7 + $0x28] sm:$0xff] }
 0x378   :  { %4559 = vmatpush2.bf16.msra.mxu0 %v6846_v0  ;;  %4600 = vmatpush2.bf16.msra.mxu1 %v6974_v27  ;;  %v1375_v0 = vld [vmem:[#allocation7 + $0x128] sm:$0xff] }
 0x379   :  { %4560 = vmatprep.subr.bf16.mxu0 %v6839_v25  ;;  %4601 = vmatprep.subr.bf16.mxu1 %v6967_v28  ;;  %v1499_v27 = vld [vmem:[#allocation7 + $0x508] sm:$0xff]  ;;  %v6544_v28 = vcombine.low %v1379_v18, %v1383_v19  ;;  %v6537_v33 = vcombine.high %v1371_v37, %v1375_v0 }
 0x37a   :  { %v1503_v25 = vld [vmem:[#allocation7 + $0x528] sm:$0xff] }
 0x37b   :  { %v6665_v34 = vcombine.high %v1499_v27, %v1503_v25  ;;  %v6664_v62 = vcombine.low %v1499_v27, %v1503_v25  ;;  %v1467_v7 = vld [vmem:[#allocation7 + $0x408] sm:$0xff] }
 0x37c   :  { %4561 = vmatpush2.bf16.msra.mxu0 %v6838_v41  ;;  %4602 = vmatpush2.bf16.msra.mxu1 %v6966_v61  ;;  %v1367_v41 = vld [vmem:[#allocation7 + $0xe8] sm:$0xff] }
 0x37d   :  { %4562 = vmatprep.subr.bf16.mxu0 %v6831_v3  ;;  %4603 = vmatprep.subr.bf16.mxu1 %v6959_v10  ;;  %v1491_v61 = vld [vmem:[#allocation7 + $0x4c8] sm:$0xff]  ;;  %v6536_v10 = vcombine.low %v1371_v37, %v1375_v0  ;;  %v6529_v42 = vcombine.high %v1363_v40, %v1367_v41 }
 0x37e   :  { %v1495_v3 = vld [vmem:[#allocation7 + $0x4e8] sm:$0xff] }
 0x37f   :  { %v6657_v44 = vcombine.high %v1491_v61, %v1495_v3  ;;  %v6656_v50 = vcombine.low %v1491_v61, %v1495_v3  ;;  %v1459_v19 = vld [vmem:[#allocation7 + $0x3c8] sm:$0xff] }
 0x380   :  { %4563 = vmatpush2.bf16.msra.mxu0 %v6830_v46  ;;  %4604 = vmatpush2.bf16.msra.mxu1 %v6958_v47  ;;  %v1359_v46 = vld [vmem:[#allocation7 + $0xa8] sm:$0xff] }
 0x381   :  { %4564 = vmatprep.subr.bf16.mxu0 %v6823_v48  ;;  %4605 = vmatprep.subr.bf16.mxu1 %v6951_v49  ;;  %v1483_v47 = vld [vmem:[#allocation7 + $0x488] sm:$0xff]  ;;  %v6528_v49 = vcombine.low %v1363_v40, %v1367_v41  ;;  %v6521_v22 = vcombine.high %v1355_v45, %v1359_v46  ;;  %v6520_v53 = vcombine.low %v1355_v45, %v1359_v46 }
 0x382   :  { %v1487_v48 = vld [vmem:[#allocation7 + $0x4a8] sm:$0xff] }
 0x383   :  { %v6649_v51 = vcombine.high %v1483_v47, %v1487_v48  ;;  %v6648_v60 = vcombine.low %v1483_v47, %v1487_v48  ;;  %v1451_v0 = vld [vmem:[#allocation7 + $0x388] sm:$0xff] }
 0x384   :  { %4565 = vmatpush2.bf16.msra.mxu0 %v6822_v54  ;;  %4606 = vmatpush2.bf16.msra.mxu1 %v6950_v58  ;;  %v1351_v54 = vld [vmem:[#allocation7 + $0x68] sm:$0xff] }
 0x385   :  { %4616 = vmatprep.subr.bf16.mxu0 %v6561_v31  ;;  %4657 = vmatprep.subr.bf16.mxu1 %v6689_v63  ;;  %v1475_v58 = vld [vmem:[#allocation7 + $0x448] sm:$0xff]  ;;  %v6513_v63 = vcombine.high %v1347_v52, %v1351_v54 }
 0x386   :  { %v1479_v31 = vld [vmem:[#allocation7 + $0x468] sm:$0xff] }
 0x387   :  { %4567 = vmatmul.mubr.bf16.vlgmr.msra.gmra.mxu0 %v8095_v14  ;;  %4608 = vmatmul.mubr.bf16.vlgmr.msra.gmra.mxu1 %v8097_v15  ;;  %v6641_v2 = vcombine.high %v1475_v58, %v1479_v31  ;;  %v1455_v27 = vld [vmem:[#allocation7 + $0x3a8] sm:$0xff] }
 0x388   :  { %4617 = vmatpush1.bf16.msra.mxu0 %v6560_v12  ;;  %4648 = vmatprep.mubr.bf16.mxu0 %v8073_v36  ;;  %v1471_v12 = vld [vmem:[#allocation7 + $0x428] sm:$0xff] }
 0x389   :  { %4658 = vmatpush1.bf16.msra.mxu1 %v6688_v16  ;;  %4689 = vmatprep.mubr.bf16.mxu1 %v8075_v24  ;;  %v6512_v16 = vcombine.low %v1347_v52, %v1351_v54  ;;  %v6633_v18 = vcombine.high %v1467_v7, %v1471_v12  ;;  %v1579_v25 = vld [vmem:[#allocation7 + $0x788] sm:$0xff] }
 0x38a   :  { %4618 = vmatprep.subr.bf16.mxu0 %v6553_v17  ;;  %4659 = vmatprep.subr.bf16.mxu1 %v6681_v39  ;;  %v6640_v17 = vcombine.low %v1475_v58, %v1479_v31  ;;  %v6505_v39 = vcombine.high %v1339_v4, %v1343_v5  ;;  %v1443_v41 = vld [vmem:[#allocation7 + $0x348] sm:$0xff] }
 0x38b   :  { %v1447_v61 = vld [vmem:[#allocation7 + $0x368] sm:$0xff] }
 0x38c   :  { %4619 = vmatpush1.bf16.msra.mxu0 %v6552_v20  ;;  %v1591_v20 = vld [vmem:[#allocation7 + $0x7e8] sm:$0xff] }
 0x38d   :  { %4660 = vmatpush1.bf16.msra.mxu1 %v6680_v21  ;;  %4620 = vmatprep.subr.bf16.mxu0 %v6545_v23  ;;  %v6504_v21 = vcombine.low %v1339_v4, %v1343_v5  ;;  %v6632_v23 = vcombine.low %v1467_v7, %v1471_v12  ;;  %v6753_v37 = vcombine.high %v1587_v9, %v1591_v20  ;;  %v1571_v3 = vld [vmem:[#allocation7 + $0x748] sm:$0xff] }
 0x38e   :  { %4661 = vmatprep.subr.bf16.mxu1 %v6673_v26  ;;  %v6625_v26 = vcombine.high %v1459_v19, %v1463_v43  ;;  %v1435_v46 = vld [vmem:[#allocation7 + $0x308] sm:$0xff] }
 0x38f   :  { %v1439_v47 = vld [vmem:[#allocation7 + $0x328] sm:$0xff] }
 0x390   :  { %4621 = vmatpush1.bf16.msra.mxu0 %v6544_v28  ;;  %v1583_v28 = vld [vmem:[#allocation7 + $0x7a8] sm:$0xff] }
 0x391   :  { %4662 = vmatpush1.bf16.msra.mxu1 %v6672_v32  ;;  %4622 = vmatprep.subr.bf16.mxu0 %v6537_v33  ;;  %v6624_v32 = vcombine.low %v1459_v19, %v1463_v43  ;;  %v6752_v33 = vcombine.low %v1587_v9, %v1591_v20  ;;  %v6745_v40 = vcombine.high %v1579_v25, %v1583_v28  ;;  %v1563_v48 = vld [vmem:[#allocation7 + $0x708] sm:$0xff] }
 0x392   :  { %4663 = vmatprep.subr.bf16.mxu1 %v6665_v34  ;;  %v6617_v34 = vcombine.high %v1451_v0, %v1455_v27  ;;  %v1427_v54 = vld [vmem:[#allocation7 + $0x2c8] sm:$0xff] }
 0x393   :  { %v1431_v58 = vld [vmem:[#allocation7 + $0x2e8] sm:$0xff] }
 0x394   :  { %4623 = vmatpush1.bf16.msra.mxu0 %v6536_v10  ;;  %v1575_v10 = vld [vmem:[#allocation7 + $0x768] sm:$0xff] }
 0x395   :  { %4664 = vmatpush1.bf16.msra.mxu1 %v6664_v62  ;;  %4624 = vmatprep.subr.bf16.mxu0 %v6529_v42  ;;  %v6616_v62 = vcombine.low %v1451_v0, %v1455_v27  ;;  %v6744_v42 = vcombine.low %v1579_v25, %v1583_v28  ;;  %v6737_v45 = vcombine.high %v1571_v3, %v1575_v10  ;;  %v1555_v31 = vld [vmem:[#allocation7 + $0x6c8] sm:$0xff] }
 0x396   :  { %4665 = vmatprep.subr.bf16.mxu1 %v6657_v44  ;;  %v6609_v44 = vcombine.high %v1443_v41, %v1447_v61  ;;  %v1419_v5 = vld [vmem:[#allocation7 + $0x288] sm:$0xff] }
 0x397   :  { %v1423_v7 = vld [vmem:[#allocation7 + $0x2a8] sm:$0xff] }
 0x398   :  { %4625 = vmatpush1.bf16.msra.mxu0 %v6528_v49  ;;  %v1567_v49 = vld [vmem:[#allocation7 + $0x728] sm:$0xff] }
 0x399   :  { %4666 = vmatpush1.bf16.msra.mxu1 %v6656_v50  ;;  %4626 = vmatprep.subr.bf16.mxu0 %v6521_v22  ;;  %v6608_v50 = vcombine.low %v1443_v41, %v1447_v61  ;;  %v6736_v22 = vcombine.low %v1571_v3, %v1575_v10  ;;  %v6729_v52 = vcombine.high %v1563_v48, %v1567_v49  ;;  %v1547_v12 = vld [vmem:[#allocation7 + $0x688] sm:$0xff] }
 0x39a   :  { %4667 = vmatprep.subr.bf16.mxu1 %v6649_v51  ;;  %v6601_v51 = vcombine.high %v1435_v46, %v1439_v47  ;;  %v1411_v43 = vld [vmem:[#allocation7 + $0x248] sm:$0xff] }
 0x39b   :  { %v1415_v9 = vld [vmem:[#allocation7 + $0x268] sm:$0xff] }
 0x39c   :  { %4627 = vmatpush1.bf16.msra.mxu0 %v6520_v53  ;;  %v1559_v53 = vld [vmem:[#allocation7 + $0x6e8] sm:$0xff] }
 0x39d   :  { %4668 = vmatpush1.bf16.msra.mxu1 %v6648_v60  ;;  %4628 = vmatprep.subr.bf16.mxu0 %v6513_v63  ;;  %v6600_v60 = vcombine.low %v1435_v46, %v1439_v47  ;;  %v6728_v63 = vcombine.low %v1563_v48, %v1567_v49  ;;  %v6721_v4 = vcombine.high %v1555_v31, %v1559_v53  ;;  %v1539_v20 = vld [vmem:[#allocation7 + $0x648] sm:$0xff] }
 0x39e   :  { %4669 = vmatprep.subr.bf16.mxu1 %v6641_v2  ;;  %v6593_v2 = vcombine.high %v1427_v54, %v1431_v58  ;;  %v1403_v27 = vld [vmem:[#allocation7 + $0x208] sm:$0xff] }
 0x39f   :  { %v1407_v25 = vld [vmem:[#allocation7 + $0x228] sm:$0xff] }
 0x3a0   :  { %4629 = vmatpush1.bf16.msra.mxu0 %v6512_v16  ;;  %v1551_v16 = vld [vmem:[#allocation7 + $0x6a8] sm:$0xff] }
 0x3a1   :  { %4670 = vmatpush1.bf16.msra.mxu1 %v6640_v17  ;;  %4630 = vmatprep.subr.bf16.mxu0 %v6505_v39  ;;  %v6592_v17 = vcombine.low %v1427_v54, %v1431_v58  ;;  %v6720_v39 = vcombine.low %v1555_v31, %v1559_v53  ;;  %v6713_v19 = vcombine.high %v1547_v12, %v1551_v16  ;;  %v1531_v28 = vld [vmem:[#allocation7 + $0x608] sm:$0xff] }
 0x3a2   :  { %4671 = vmatprep.subr.bf16.mxu1 %v6633_v18  ;;  %v6585_v18 = vcombine.high %v1419_v5, %v1423_v7  ;;  %v1651_v61 = vld [vmem:[#allocation7 + $0x9c8] sm:$0xff] }
 0x3a3   :  { %v1655_v3 = vld [vmem:[#allocation7 + $0x9e8] sm:$0xff] }
 0x3a4   :  { %4631 = vmatpush1.bf16.msra.mxu0 %v6504_v21  ;;  %v1543_v21 = vld [vmem:[#allocation7 + $0x668] sm:$0xff]  ;;  %v6816_v49 = vcombine.low %v1651_v61, %v1655_v3 }
 0x3a5   :  { %4672 = vmatpush1.bf16.msra.mxu1 %v6632_v23  ;;  %4632 = vmatprep.subr.bf16.mxu0 %v6625_v26  ;;  %v6584_v23 = vcombine.low %v1419_v5, %v1423_v7  ;;  %v6712_v26 = vcombine.low %v1547_v12, %v1551_v16  ;;  %v6705_v0 = vcombine.high %v1539_v20, %v1543_v21  ;;  %v1779_v10 = vld [vmem:[#allocation7 + $0xdc8] sm:$0xff] }
 0x3a6   :  { %4673 = vmatprep.subr.bf16.mxu1 %v6753_v37  ;;  %v6577_v37 = vcombine.high %v1411_v43, %v1415_v9  ;;  %v1643_v47 = vld [vmem:[#allocation7 + $0x988] sm:$0xff] }
 0x3a7   :  { %v1647_v48 = vld [vmem:[#allocation7 + $0x9a8] sm:$0xff] }
 0x3a8   :  { %4633 = vmatpush2.bf16.msra.mxu0 %v6624_v32  ;;  %v1535_v32 = vld [vmem:[#allocation7 + $0x628] sm:$0xff] }
 0x3a9   :  { %4674 = vmatpush2.bf16.msra.mxu1 %v6752_v33  ;;  %4634 = vmatprep.subr.bf16.mxu0 %v6617_v34  ;;  %v6576_v33 = vcombine.low %v1411_v43, %v1415_v9  ;;  %v6704_v34 = vcombine.low %v1539_v20, %v1543_v21  ;;  %v6697_v41 = vcombine.high %v1531_v28, %v1535_v32  ;;  %v1635_v54 = vld [vmem:[#allocation7 + $0x948] sm:$0xff] }
 0x3aa   :  { %4675 = vmatprep.subr.bf16.mxu1 %v6745_v40  ;;  %v6569_v40 = vcombine.high %v1403_v27, %v1407_v25  ;;  %v1639_v58 = vld [vmem:[#allocation7 + $0x968] sm:$0xff] }
 0x3ab   :  { %v1763_v53 = vld [vmem:[#allocation7 + $0xd48] sm:$0xff] }
 0x3ac   :  { %4635 = vmatpush2.bf16.msra.mxu0 %v6616_v62  ;;  %v1783_v62 = vld [vmem:[#allocation7 + $0xde8] sm:$0xff] }
 0x3ad   :  { %4676 = vmatpush2.bf16.msra.mxu1 %v6744_v42  ;;  %4636 = vmatprep.subr.bf16.mxu0 %v6609_v44  ;;  %v6568_v42 = vcombine.low %v1403_v27, %v1407_v25  ;;  %v6696_v44 = vcombine.low %v1531_v28, %v1535_v32  ;;  %v6945_v46 = vcombine.high %v1779_v10, %v1783_v62  ;;  %v1627_v7 = vld [vmem:[#allocation7 + $0x908] sm:$0xff] }
 0x3ae   :  { %4677 = vmatprep.subr.bf16.mxu1 %v6737_v45  ;;  %v6817_v45 = vcombine.high %v1651_v61, %v1655_v3  ;;  %v1631_v12 = vld [vmem:[#allocation7 + $0x928] sm:$0xff] }
 0x3af   :  { %v1755_v16 = vld [vmem:[#allocation7 + $0xd08] sm:$0xff] }
 0x3b0   :  { %4637 = vmatpush2.bf16.msra.mxu0 %v6608_v50  ;;  %v1771_v50 = vld [vmem:[#allocation7 + $0xd88] sm:$0xff] }
 0x3b1   :  { %4678 = vmatpush2.bf16.msra.mxu1 %v6736_v22  ;;  %4638 = vmatprep.subr.bf16.mxu0 %v6601_v51  ;;  %v1775_v22 = vld [vmem:[#allocation7 + $0xda8] sm:$0xff]  ;;  %v6944_v51 = vcombine.low %v1779_v10, %v1783_v62 }
 0x3b2   :  { %4679 = vmatprep.subr.bf16.mxu1 %v6729_v52  ;;  %v6809_v52 = vcombine.high %v1643_v47, %v1647_v48  ;;  %v6937_v31 = vcombine.high %v1771_v50, %v1775_v22  ;;  %v1619_v9 = vld [vmem:[#allocation7 + $0x8c8] sm:$0xff] }
 0x3b3   :  { %v1623_v20 = vld [vmem:[#allocation7 + $0x8e8] sm:$0xff] }
 0x3b4   :  { %4639 = vmatpush2.bf16.msra.mxu0 %v6600_v60  ;;  %v1767_v60 = vld [vmem:[#allocation7 + $0xd68] sm:$0xff] }
 0x3b5   :  { %4680 = vmatpush2.bf16.msra.mxu1 %v6728_v63  ;;  %4640 = vmatprep.subr.bf16.mxu0 %v6593_v2  ;;  %v6808_v63 = vcombine.low %v1643_v47, %v1647_v48  ;;  %v6936_v2 = vcombine.low %v1771_v50, %v1775_v22  ;;  %v6929_v5 = vcombine.high %v1763_v53, %v1767_v60  ;;  %v1747_v21 = vld [vmem:[#allocation7 + $0xcc8] sm:$0xff] }
 0x3b6   :  { %4681 = vmatprep.subr.bf16.mxu1 %v6721_v4  ;;  %v6801_v4 = vcombine.high %v1635_v54, %v1639_v58  ;;  %v1611_v25 = vld [vmem:[#allocation7 + $0x888] sm:$0xff] }
 0x3b7   :  { %v1615_v28 = vld [vmem:[#allocation7 + $0x8a8] sm:$0xff] }
 0x3b8   :  { %4641 = vmatpush2.bf16.msra.mxu0 %v6592_v17  ;;  %v1759_v17 = vld [vmem:[#allocation7 + $0xd28] sm:$0xff] }
 0x3b9   :  { %4682 = vmatpush2.bf16.msra.mxu1 %v6720_v39  ;;  %4642 = vmatprep.subr.bf16.mxu0 %v6585_v18  ;;  %v6800_v39 = vcombine.low %v1635_v54, %v1639_v58  ;;  %v6928_v18 = vcombine.low %v1763_v53, %v1767_v60  ;;  %v6921_v43 = vcombine.high %v1755_v16, %v1759_v17  ;;  %v1739_v32 = vld [vmem:[#allocation7 + $0xc88] sm:$0xff] }
 0x3ba   :  { %4683 = vmatprep.subr.bf16.mxu1 %v6713_v19  ;;  %v6793_v19 = vcombine.high %v1627_v7, %v1631_v12  ;;  %v1603_v3 = vld [vmem:[#allocation7 + $0x848] sm:$0xff] }
 0x3bb   :  { %v1607_v10 = vld [vmem:[#allocation7 + $0x868] sm:$0xff] }
 0x3bc   :  { %4643 = vmatpush2.bf16.msra.mxu0 %v6584_v23  ;;  %v1751_v23 = vld [vmem:[#allocation7 + $0xce8] sm:$0xff] }
 0x3bd   :  { %4684 = vmatpush2.bf16.msra.mxu1 %v6712_v26  ;;  %4644 = vmatprep.subr.bf16.mxu0 %v6577_v37  ;;  %v6792_v26 = vcombine.low %v1627_v7, %v1631_v12  ;;  %v6920_v37 = vcombine.low %v1755_v16, %v1759_v17  ;;  %v6913_v27 = vcombine.high %v1747_v21, %v1751_v23  ;;  %v1731_v62 = vld [vmem:[#allocation7 + $0xc48] sm:$0xff] }
 0x3be   :  { %4685 = vmatprep.subr.bf16.mxu1 %v6705_v0  ;;  %v6785_v0 = vcombine.high %v1619_v9, %v1623_v20  ;;  %v1595_v48 = vld [vmem:[#allocation7 + $0x808] sm:$0xff] }
 0x3bf   :  { %v1723_v50 = vld [vmem:[#allocation7 + $0xc08] sm:$0xff] }
 0x3c0   :  { %4645 = vmatpush2.bf16.msra.mxu0 %v6576_v33  ;;  %v1743_v33 = vld [vmem:[#allocation7 + $0xca8] sm:$0xff] }
 0x3c1   :  { %4686 = vmatpush2.bf16.msra.mxu1 %v6704_v34  ;;  %4646 = vmatprep.subr.bf16.mxu0 %v6569_v40  ;;  %v6784_v34 = vcombine.low %v1619_v9, %v1623_v20  ;;  %v6912_v40 = vcombine.low %v1747_v21, %v1751_v23  ;;  %v6905_v61 = vcombine.high %v1739_v32, %v1743_v33  ;;  %v1727_v22 = vld [vmem:[#allocation7 + $0xc28] sm:$0xff] }
 0x3c2   :  { %4687 = vmatprep.subr.bf16.mxu1 %v6697_v41  ;;  %v6777_v41 = vcombine.high %v1611_v25, %v1615_v28  ;;  %v6889_v58 = vcombine.high %v1723_v50, %v1727_v22  ;;  %v1719_v53 = vld [vmem:[#allocation7 + $0xbe8] sm:$0xff] }
 0x3c3   :  { %v1843_v60 = vld [vmem:[#allocation7 + $0xfc8] sm:$0xff] }
 0x3c4   :  { %4647 = vmatpush2.bf16.msra.mxu0 %v6568_v42  ;;  %v1735_v42 = vld [vmem:[#allocation7 + $0xc68] sm:$0xff] }
 0x3c5   :  { %4688 = vmatpush2.bf16.msra.mxu1 %v6696_v44  ;;  %4698 = vmatprep.subr.bf16.mxu0 %v6817_v45  ;;  %v6776_v44 = vcombine.low %v1611_v25, %v1615_v28  ;;  %v6904_v45 = vcombine.low %v1739_v32, %v1743_v33  ;;  %v6897_v47 = vcombine.high %v1731_v62, %v1735_v42  ;;  %v1707_v12 = vld [vmem:[#allocation7 + $0xb88] sm:$0xff] }
 0x3c6   :  { %4739 = vmatprep.subr.bf16.mxu1 %v6945_v46  ;;  %v6769_v46 = vcombine.high %v1603_v3, %v1607_v10  ;;  %v1711_v16 = vld [vmem:[#allocation7 + $0xba8] sm:$0xff] }
 0x3c7   :  { %4649 = vmatmul.mubr.bf16.vlgmr.msra.gmra.mxu0 %v8077_v38  ;;  %v1835_v17 = vld [vmem:[#allocation7 + $0xf88] sm:$0xff] }
 0x3c8   :  { %4690 = vmatmul.mubr.bf16.vlgmr.msra.gmra.mxu1 %v8079_v35  ;;  %4699 = vmatpush1.bf16.msra.mxu0 %v6816_v49  ;;  %v1599_v49 = vld [vmem:[#allocation7 + $0x828] sm:$0xff] }
 0x3c9   :  { %4730 = vmatprep.mubr.bf16.mxu0 %v8085_v29  ;;  %4740 = vmatpush1.bf16.msra.mxu1 %v6944_v51  ;;  %v6768_v51 = vcombine.low %v1603_v3, %v1607_v10  ;;  %v6761_v54 = vcombine.high %v1595_v48, %v1599_v49  ;;  %v1699_v20 = vld [vmem:[#allocation7 + $0xb48] sm:$0xff] }
 0x3ca   :  { %4771 = vmatprep.mubr.bf16.mxu1 %v8087_v30  ;;  %4700 = vmatprep.subr.bf16.mxu0 %v6809_v52  ;;  %v6896_v52 = vcombine.low %v1731_v62, %v1735_v42  ;;  %v1703_v21 = vld [vmem:[#allocation7 + $0xb68] sm:$0xff] }
 0x3cb   :  { %4741 = vmatprep.subr.bf16.mxu1 %v6937_v31  ;;  %v1715_v31 = vld [vmem:[#allocation7 + $0xbc8] sm:$0xff] }
 0x3cc   :  { %4701 = vmatpush1.bf16.msra.mxu0 %v6808_v63  ;;  %v1847_v63 = vld [vmem:[#allocation7 + $0xfe8] sm:$0xff] }
 0x3cd   :  { %4742 = vmatpush1.bf16.msra.mxu1 %v6936_v2  ;;  %4702 = vmatprep.subr.bf16.mxu0 %v6801_v4  ;;  %v6760_v2 = vcombine.low %v1595_v48, %v1599_v49  ;;  %v6888_v4 = vcombine.low %v1723_v50, %v1727_v22  ;;  %v7009_v7 = vcombine.high %v1843_v60, %v1847_v63  ;;  %v1827_v23 = vld [vmem:[#allocation7 + $0xf48] sm:$0xff] }
 0x3ce   :  { %4743 = vmatprep.subr.bf16.mxu1 %v6929_v5  ;;  %v6881_v5 = vcombine.high %v1715_v31, %v1719_v53  ;;  %v1691_v28 = vld [vmem:[#allocation7 + $0xb08] sm:$0xff] }
 0x3cf   :  { %v1695_v32 = vld [vmem:[#allocation7 + $0xb28] sm:$0xff] }
 0x3d0   :  { %4703 = vmatpush1.bf16.msra.mxu0 %v6800_v39  ;;  %v1839_v39 = vld [vmem:[#allocation7 + $0xfa8] sm:$0xff] }
 0x3d1   :  { %4744 = vmatpush1.bf16.msra.mxu1 %v6928_v18  ;;  %4704 = vmatprep.subr.bf16.mxu0 %v6793_v19  ;;  %v6880_v18 = vcombine.low %v1715_v31, %v1719_v53  ;;  %v7008_v19 = vcombine.low %v1843_v60, %v1847_v63  ;;  %v7001_v9 = vcombine.high %v1835_v17, %v1839_v39  ;;  %v1819_v33 = vld [vmem:[#allocation7 + $0xf08] sm:$0xff] }
 0x3d2   :  { %4745 = vmatprep.subr.bf16.mxu1 %v6921_v43  ;;  %v6873_v43 = vcombine.high %v1707_v12, %v1711_v16  ;;  %v1683_v10 = vld [vmem:[#allocation7 + $0xac8] sm:$0xff] }
 0x3d3   :  { %v1687_v62 = vld [vmem:[#allocation7 + $0xae8] sm:$0xff] }
 0x3d4   :  { %4705 = vmatpush1.bf16.msra.mxu0 %v6792_v26  ;;  %v1831_v26 = vld [vmem:[#allocation7 + $0xf68] sm:$0xff] }
 0x3d5   :  { %4746 = vmatpush1.bf16.msra.mxu1 %v6920_v37  ;;  %4706 = vmatprep.subr.bf16.mxu0 %v6785_v0  ;;  %v6872_v37 = vcombine.low %v1707_v12, %v1711_v16  ;;  %v7000_v0 = vcombine.low %v1835_v17, %v1839_v39  ;;  %v6993_v25 = vcombine.high %v1827_v23, %v1831_v26  ;;  %v1811_v42 = vld [vmem:[#allocation7 + $0xec8] sm:$0xff] }
 0x3d6   :  { %4747 = vmatprep.subr.bf16.mxu1 %v6913_v27  ;;  %v6865_v27 = vcombine.high %v1699_v20, %v1703_v21  ;;  %v1675_v49 = vld [vmem:[#allocation7 + $0xa88] sm:$0xff] }
 0x3d7   :  { %v1679_v50 = vld [vmem:[#allocation7 + $0xaa8] sm:$0xff] }
 0x3d8   :  { %4707 = vmatpush1.bf16.msra.mxu0 %v6784_v34  ;;  %v1823_v34 = vld [vmem:[#allocation7 + $0xf28] sm:$0xff] }
 0x3d9   :  { %4748 = vmatpush1.bf16.msra.mxu1 %v6912_v40  ;;  %4708 = vmatprep.subr.bf16.mxu0 %v6777_v41  ;;  %v6864_v40 = vcombine.low %v1699_v20, %v1703_v21  ;;  %v6992_v41 = vcombine.low %v1827_v23, %v1831_v26  ;;  %v6985_v3 = vcombine.high %v1819_v33, %v1823_v34  ;;  %v1803_v22 = vld [vmem:[#allocation7 + $0xe88] sm:$0xff]  ;;  %v1396_v21 = vld [vmem:[#allocation7 + $0x1d0] sm:$0xff] }
 0x3da   :  { %4749 = vmatprep.subr.bf16.mxu1 %v6905_v61  ;;  %v6857_v61 = vcombine.high %v1691_v28, %v1695_v32  ;;  %v1667_v53 = vld [vmem:[#allocation7 + $0xa48] sm:$0xff]  ;;  %v1400_v23 = vld [vmem:[#allocation7 + $0x1f0] sm:$0xff] }
 0x3db   :  { %v1671_v60 = vld [vmem:[#allocation7 + $0xa68] sm:$0xff]  ;;  %v1524_v26 = vld [vmem:[#allocation7 + $0x5d0] sm:$0xff] }
 0x3dc   :  { %4709 = vmatpush1.bf16.msra.mxu0 %v6776_v44  ;;  %v1815_v44 = vld [vmem:[#allocation7 + $0xee8] sm:$0xff] }
 0x3dd   :  { %4750 = vmatpush1.bf16.msra.mxu1 %v6904_v45  ;;  %4710 = vmatprep.subr.bf16.mxu0 %v6769_v46  ;;  %v6856_v45 = vcombine.low %v1691_v28, %v1695_v32  ;;  %v6984_v46 = vcombine.low %v1819_v33, %v1823_v34  ;;  %v6977_v48 = vcombine.high %v1811_v42, %v1815_v44  ;;  %v1795_v63 = vld [vmem:[#allocation7 + $0xe48] sm:$0xff]  ;;  %v8107_v28 = vld [vmem:[#allocation9] sm:$0xff]  ;;  %v1388_v33 = vld [vmem:[#allocation7 + $0x190] sm:$0xff] }
 0x3de   :  { %4751 = vmatprep.subr.bf16.mxu1 %v6897_v47  ;;  %v6849_v47 = vcombine.high %v1683_v10, %v1687_v62  ;;  %v1659_v16 = vld [vmem:[#allocation7 + $0xa08] sm:$0xff]  ;;  %v1392_v34 = vld [vmem:[#allocation7 + $0x1b0] sm:$0xff] }
 0x3df   :  { %v1663_v17 = vld [vmem:[#allocation7 + $0xa28] sm:$0xff] }
 0x3e0   :  { %4711 = vmatpush1.bf16.msra.mxu0 %v6768_v51  ;;  %v1807_v51 = vld [vmem:[#allocation7 + $0xea8] sm:$0xff] }
 0x3e1   :  { %4752 = vmatpush1.bf16.msra.mxu1 %v6896_v52  ;;  %4712 = vmatprep.subr.bf16.mxu0 %v6761_v54  ;;  %v6848_v52 = vcombine.low %v1683_v10, %v1687_v62  ;;  %v6976_v54 = vcombine.low %v1811_v42, %v1815_v44  ;;  %v6969_v31 = vcombine.high %v1803_v22, %v1807_v51  ;;  %v1787_v39 = vld [vmem:[#allocation7 + $0xe08] sm:$0xff]  ;;  %v1380_v44 = vld [vmem:[#allocation7 + $0x150] sm:$0xff] }
 0x3e2   :  { %4753 = vmatprep.subr.bf16.mxu1 %v6889_v58  ;;  %v6841_v58 = vcombine.high %v1675_v49, %v1679_v50  ;;  %v1859_v62 = vrot.slane %v8107_v28, %v7957_v57  ;;  %v6555_v42 = vcombine.high %v1388_v33, %v1392_v34 }
 0x3e4   :  { %4713 = vmatpush1.bf16.msra.mxu0 %v6760_v2  ;;  %v1799_v2 = vld [vmem:[#allocation7 + $0xe68] sm:$0xff] }
 0x3e5   :  { %4754 = vmatpush1.bf16.msra.mxu1 %v6888_v4  ;;  %4714 = vmatprep.subr.bf16.mxu0 %v6881_v5  ;;  %v6840_v4 = vcombine.low %v1675_v49, %v1679_v50  ;;  %v6968_v5 = vcombine.low %v1803_v22, %v1807_v51  ;;  %v6961_v12 = vcombine.high %v1795_v63, %v1799_v2  ;;  %v1508_v49 = vld [vmem:[#allocation7 + $0x550] sm:$0xff] }
 0x3e6   :  { %4755 = vmatprep.subr.bf16.mxu1 %v7009_v7  ;;  %v6833_v7 = vcombine.high %v1667_v53, %v1671_v60  ;;  %v1512_v50 = vld [vmem:[#allocation7 + $0x570] sm:$0xff]  ;;  %v6554_v51 = vcombine.low %v1388_v33, %v1392_v34 }
 0x3e7   :  { %v1356_v33 = vld [vmem:[#allocation7 + $0x90] sm:$0xff] }
 0x3e8   :  { %4715 = vmatpush2.bf16.msra.mxu0 %v6880_v18  ;;  %v1791_v18 = vld [vmem:[#allocation7 + $0xe28] sm:$0xff]  ;;  %v1360_v34 = vld [vmem:[#allocation7 + $0xb0] sm:$0xff] }
 0x3e9   :  { %4756 = vmatpush2.bf16.msra.mxu1 %v7008_v19  ;;  %4716 = vmatprep.subr.bf16.mxu0 %v6873_v43  ;;  %v6832_v19 = vcombine.low %v1667_v53, %v1671_v60  ;;  %v6960_v43 = vcombine.low %v1795_v63, %v1799_v2  ;;  %v6953_v20 = vcombine.high %v1787_v39, %v1791_v18  ;;  %v1372_v2 = vld [vmem:[#allocation7 + $0x110] sm:$0xff] }
 0x3ea   :  { %4757 = vmatprep.subr.bf16.mxu1 %v7001_v9  ;;  %v6825_v9 = vcombine.high %v1659_v16, %v1663_v17  ;;  %v6675_v63 = vcombine.high %v1508_v49, %v1512_v50 }
 0x3ec   :  { %4717 = vmatpush2.bf16.msra.mxu0 %v6872_v37  ;;  %v1528_v37 = vld [vmem:[#allocation7 + $0x5f0] sm:$0xff] }
 0x3ed   :  { %4758 = vmatpush2.bf16.msra.mxu1 %v7000_v0  ;;  %4718 = vmatprep.subr.bf16.mxu0 %v6865_v27  ;;  %v6824_v0 = vcombine.low %v1659_v16, %v1663_v17  ;;  %v6952_v27 = vcombine.low %v1787_v39, %v1791_v18  ;;  %v6691_v32 = vcombine.high %v1524_v26, %v1528_v37  ;;  %v1504_v16 = vld [vmem:[#allocation7 + $0x530] sm:$0xff] }
 0x3ee   :  { %4759 = vmatprep.subr.bf16.mxu1 %v6993_v25  ;;  %v6563_v25 = vcombine.high %v1396_v21, %v1400_v23  ;;  %v6690_v10 = vcombine.low %v1524_v26, %v1528_v37  ;;  %v1492_v26 = vld [vmem:[#allocation7 + $0x4d0] sm:$0xff] }
 0x3ef   :  { %v1496_v37 = vld [vmem:[#allocation7 + $0x4f0] sm:$0xff] }
 0x3f0   :  { %4719 = vmatpush2.bf16.msra.mxu0 %v6864_v40  ;;  %v6562_v40 = vcombine.low %v1396_v21, %v1400_v23  ;;  %v1364_v21 = vld [vmem:[#allocation7 + $0xd0] sm:$0xff] }
 0x3f1   :  { %4760 = vmatpush2.bf16.msra.mxu1 %v6992_v41  ;;  %4720 = vmatprep.subr.bf16.mxu0 %v6857_v61  ;;  %v1855_v41 = vrot.slane %v8107_v28, %v7954_v56  ;;  %v1516_v61 = vld [vmem:[#allocation7 + $0x590] sm:$0xff] }
 0x3f2   :  { %4761 = vmatprep.subr.bf16.mxu1 %v6985_v3  ;;  %v1520_v3 = vld [vmem:[#allocation7 + $0x5b0] sm:$0xff] }
 0x3f3   :  { %v1368_v23 = vld [vmem:[#allocation7 + $0xf0] sm:$0xff] }
 0x3f4   :  { %4721 = vmatpush2.bf16.msra.mxu0 %v6856_v45  ;;  %v1384_v45 = vld [vmem:[#allocation7 + $0x170] sm:$0xff] }
 0x3f5   :  { %4762 = vmatpush2.bf16.msra.mxu1 %v6984_v46  ;;  %4722 = vmatprep.subr.bf16.mxu0 %v6849_v47  ;;  %v6546_v39 = vcombine.low %v1380_v44, %v1384_v45 }
 0x3f6   :  { %4763 = vmatprep.subr.bf16.mxu1 %v6977_v48  ;;  %v6683_v48 = vcombine.high %v1516_v61, %v1520_v3 }
 0x3f8   :  { %4723 = vmatpush2.bf16.msra.mxu0 %v6848_v52 }
 0x3f9   :  { %4764 = vmatpush2.bf16.msra.mxu1 %v6976_v54  ;;  %4724 = vmatprep.subr.bf16.mxu0 %v6841_v58  ;;  %v6682_v58 = vcombine.low %v1516_v61, %v1520_v3  ;;  %v6530_v61 = vcombine.low %v1364_v21, %v1368_v23  ;;  %v6658_v3 = vcombine.low %v1492_v26, %v1496_v37 }
 0x3fa   :  { %4765 = vmatprep.subr.bf16.mxu1 %v6969_v31  ;;  %v6547_v31 = vcombine.high %v1380_v44, %v1384_v45  ;;  %v1352_v44 = vld [vmem:[#allocation7 + $0x70] sm:$0xff] }
 0x3fb   :  { %v1476_v45 = vld [vmem:[#allocation7 + $0x450] sm:$0xff] }
 0x3fc   :  { %4725 = vmatpush2.bf16.msra.mxu0 %v6840_v4  ;;  %v1376_v4 = vld [vmem:[#allocation7 + $0x130] sm:$0xff] }
 0x3fd   :  { %4766 = vmatpush2.bf16.msra.mxu1 %v6968_v5  ;;  %4726 = vmatprep.subr.bf16.mxu0 %v6833_v7 }
 0x3fe   :  { %4767 = vmatprep.subr.bf16.mxu1 %v6961_v12  ;;  %v1500_v12 = vld [vmem:[#allocation7 + $0x510] sm:$0xff] }
 0x400   :  { %4727 = vmatpush2.bf16.msra.mxu0 %v6832_v19 }
 0x401   :  { %4768 = vmatpush2.bf16.msra.mxu1 %v6960_v43  ;;  %4728 = vmatprep.subr.bf16.mxu0 %v6825_v9  ;;  %v6674_v43 = vcombine.low %v1508_v49, %v1512_v50  ;;  %v6539_v9 = vcombine.high %v1372_v2, %v1376_v4 }
 0x402   :  { %4769 = vmatprep.subr.bf16.mxu1 %v6953_v20  ;;  %v6667_v20 = vcombine.high %v1500_v12, %v1504_v16 }
 0x404   :  { %4729 = vmatpush2.bf16.msra.mxu0 %v6824_v0  ;;  %v6538_v0 = vcombine.low %v1372_v2, %v1376_v4  ;;  %v1460_v2 = vld [vmem:[#allocation7 + $0x3d0] sm:$0xff] }
 0x405   :  { %4770 = vmatpush2.bf16.msra.mxu1 %v6952_v27  ;;  %4780 = vmatprep.subr.bf16.mxu0 %v6563_v25  ;;  %v6666_v27 = vcombine.low %v1500_v12, %v1504_v16  ;;  %v6531_v25 = vcombine.high %v1364_v21, %v1368_v23  ;;  %v1464_v4 = vld [vmem:[#allocation7 + $0x3f0] sm:$0xff] }
 0x406   :  { %4821 = vmatprep.subr.bf16.mxu1 %v6691_v32  ;;  %v6659_v32 = vcombine.high %v1492_v26, %v1496_v37  ;;  %v6626_v21 = vcombine.low %v1460_v2, %v1464_v4 }
 0x407   :  { %4731 = vmatmul.mubr.bf16.vlgmr.msra.gmra.mxu0 %v8095_v14  ;;  %v4486_v46 = vpop.f32.mrf.mxu0  ;;  %v4527_v47 = vpop.f32.mrf.mxu1 }
 0x408   :  { %4772 = vmatmul.mubr.bf16.vlgmr.msra.gmra.mxu1 %v8097_v15  ;;  %v4487_v22 = vadd.f32 %v4486_v46, %v1855_v41  ;;  %4781 = vmatpush1.bf16.msra.mxu0 %v6562_v40  ;;  %v1484_v40 = vld [vmem:[#allocation7 + $0x490] sm:$0xff] }
 0x409   :  { %4812 = vmatprep.mubr.bf16.mxu0 %v8073_v36  ;;  %4822 = vmatpush1.bf16.msra.mxu1 %v6690_v10  ;;  %v4488_v52 = vpop.f32.mrf.mxu0  ;;  %v4529_v54 = vpop.f32.mrf.mxu1  ;;  %v1488_v41 = vld [vmem:[#allocation7 + $0x4b0] sm:$0xff]  ;;  %v6523_v10 = vcombine.high %v1356_v33, %v1360_v34 }
 0x40a   :  { %v8116_v53 = vadd.f32 %v4527_v47, %v4487_v22  ;;  %4853 = vmatprep.mubr.bf16.mxu1 %v8075_v24  ;;  %v4489_v60 = vadd.f32 %v4488_v52, %v1859_v62  ;;  %4782 = vmatprep.subr.bf16.mxu0 %v6555_v42  ;;  %v6651_v62 = vcombine.high %v1484_v40, %v1488_v41  ;;  %v1348_v42 = vld [vmem:[#allocation7 + $0x50] sm:$0xff] }
 0x40b   :  { %4823 = vmatprep.subr.bf16.mxu1 %v6683_v48  ;;  %v4490_v5 = vpop.f32.mrf.mxu0  ;;  %v4531_v7 = vpop.f32.mrf.mxu1  ;;  %v1480_v46 = vld [vmem:[#allocation7 + $0x470] sm:$0xff]  ;;  %v6522_v47 = vcombine.low %v1356_v33, %v1360_v34  ;;  %v6650_v48 = vcombine.low %v1484_v40, %v1488_v41  ;;  %v6515_v49 = vcombine.high %v1348_v42, %v1352_v44 }
 0x40c   :  { %v8119_v17 = vadd.f32 %v4529_v54, %v4489_v60  ;;  %4783 = vmatpush1.bf16.msra.mxu0 %v6554_v51  ;;  %v6643_v50 = vcombine.high %v1476_v45, %v1480_v46  ;;  %v1340_v22 = vld [vmem:[#allocation7 + $0x10] sm:$0xff] }
 0x40d   :  { %4824 = vmatpush1.bf16.msra.mxu1 %v6682_v58  ;;  %v4491_v18 = vpop.f32.mrf.mxu0  ;;  %v4532_v19 = vpop.f32.mrf.mxu1  ;;  %4784 = vmatprep.subr.bf16.mxu0 %v6547_v31  ;;  %v1344_v51 = vld [vmem:[#allocation7 + $0x30] sm:$0xff]  ;;  %v6514_v58 = vcombine.low %v1348_v42, %v1352_v44  ;;  %v6642_v31 = vcombine.low %v1476_v45, %v1480_v46 }
 0x40e   :  { %4825 = vmatprep.subr.bf16.mxu1 %v6675_v63  ;;  %v1468_v52 = vld [vmem:[#allocation7 + $0x410] sm:$0xff]  ;;  %v6507_v60 = vcombine.high %v1340_v22, %v1344_v51  ;;  %v6506_v12 = vcombine.low %v1340_v22, %v1344_v51 }
 0x40f   :  { %v1472_v54 = vld [vmem:[#allocation7 + $0x430] sm:$0xff] }
 0x410   :  { %4785 = vmatpush1.bf16.msra.mxu0 %v6546_v39  ;;  %v6635_v63 = vcombine.high %v1468_v52, %v1472_v54  ;;  %v1588_v5 = vld [vmem:[#allocation7 + $0x7d0] sm:$0xff]  ;;  %v6634_v16 = vcombine.low %v1468_v52, %v1472_v54  ;;  %v6627_v39 = vcombine.high %v1460_v2, %v1464_v4 }
 0x411   :  { %4826 = vmatpush1.bf16.msra.mxu1 %v6674_v43  ;;  %4786 = vmatprep.subr.bf16.mxu0 %v6539_v9  ;;  %v1592_v7 = vld [vmem:[#allocation7 + $0x7f0] sm:$0xff] }
 0x412   :  { %4827 = vmatprep.subr.bf16.mxu1 %v6667_v20  ;;  %v6755_v18 = vcombine.high %v1588_v5, %v1592_v7  ;;  %v1452_v19 = vld [vmem:[#allocation7 + $0x390] sm:$0xff]  ;;  %v6754_v23 = vcombine.low %v1588_v5, %v1592_v7 }
 0x413   :  { %v1456_v43 = vld [vmem:[#allocation7 + $0x3b0] sm:$0xff] }
 0x414   :  { %4787 = vmatpush1.bf16.msra.mxu0 %v6538_v0  ;;  %v1580_v9 = vld [vmem:[#allocation7 + $0x790] sm:$0xff]  ;;  %v6619_v26 = vcombine.high %v1452_v19, %v1456_v43  ;;  %v6618_v33 = vcombine.low %v1452_v19, %v1456_v43 }
 0x415   :  { %4828 = vmatpush1.bf16.msra.mxu1 %v6666_v27  ;;  %4788 = vmatprep.subr.bf16.mxu0 %v6531_v25  ;;  %v1584_v20 = vld [vmem:[#allocation7 + $0x7b0] sm:$0xff] }
 0x416   :  { %4829 = vmatprep.subr.bf16.mxu1 %v6659_v32  ;;  %v6747_v37 = vcombine.high %v1580_v9, %v1584_v20  ;;  %v1444_v0 = vld [vmem:[#allocation7 + $0x350] sm:$0xff]  ;;  %v6746_v34 = vcombine.low %v1580_v9, %v1584_v20 }
 0x417   :  { %v1448_v27 = vld [vmem:[#allocation7 + $0x370] sm:$0xff] }
 0x418   :  { %4789 = vmatpush1.bf16.msra.mxu0 %v6530_v61  ;;  %v1572_v25 = vld [vmem:[#allocation7 + $0x750] sm:$0xff]  ;;  %v6611_v40 = vcombine.high %v1444_v0, %v1448_v27  ;;  %v6610_v42 = vcombine.low %v1444_v0, %v1448_v27 }
 0x419   :  { %4830 = vmatpush1.bf16.msra.mxu1 %v6658_v3  ;;  %4790 = vmatprep.subr.bf16.mxu0 %v6523_v10  ;;  %v1576_v32 = vld [vmem:[#allocation7 + $0x770] sm:$0xff] }
 0x41a   :  { %4831 = vmatprep.subr.bf16.mxu1 %v6651_v62  ;;  %v6739_v41 = vcombine.high %v1572_v25, %v1576_v32  ;;  %v1436_v61 = vld [vmem:[#allocation7 + $0x310] sm:$0xff]  ;;  %v6738_v44 = vcombine.low %v1572_v25, %v1576_v32 }
 0x41b   :  { %v1440_v3 = vld [vmem:[#allocation7 + $0x330] sm:$0xff] }
 0x41c   :  { %4791 = vmatpush1.bf16.msra.mxu0 %v6522_v47  ;;  %v1564_v10 = vld [vmem:[#allocation7 + $0x710] sm:$0xff]  ;;  %v6603_v45 = vcombine.high %v1436_v61, %v1440_v3  ;;  %v6602_v22 = vcombine.low %v1436_v61, %v1440_v3 }
 0x41d   :  { %4832 = vmatpush1.bf16.msra.mxu1 %v6650_v48  ;;  %4792 = vmatprep.subr.bf16.mxu0 %v6515_v49  ;;  %v1568_v62 = vld [vmem:[#allocation7 + $0x730] sm:$0xff] }
 0x41e   :  { %4833 = vmatprep.subr.bf16.mxu1 %v6643_v50  ;;  %v6731_v46 = vcombine.high %v1564_v10, %v1568_v62  ;;  %v1428_v47 = vld [vmem:[#allocation7 + $0x2d0] sm:$0xff]  ;;  %v6730_v51 = vcombine.low %v1564_v10, %v1568_v62 }
 0x41f   :  { %v1432_v48 = vld [vmem:[#allocation7 + $0x2f0] sm:$0xff] }
 0x420   :  { %4793 = vmatpush1.bf16.msra.mxu0 %v6514_v58  ;;  %v1556_v49 = vld [vmem:[#allocation7 + $0x6d0] sm:$0xff]  ;;  %v6595_v52 = vcombine.high %v1428_v47, %v1432_v48  ;;  %v6594_v2 = vcombine.low %v1428_v47, %v1432_v48 }
 0x421   :  { %4834 = vmatpush1.bf16.msra.mxu1 %v6642_v31  ;;  %4794 = vmatprep.subr.bf16.mxu0 %v6507_v60  ;;  %v1560_v50 = vld [vmem:[#allocation7 + $0x6f0] sm:$0xff] }
 0x422   :  { %4835 = vmatprep.subr.bf16.mxu1 %v6635_v63  ;;  %v6723_v54 = vcombine.high %v1556_v49, %v1560_v50  ;;  %v1420_v58 = vld [vmem:[#allocation7 + $0x290] sm:$0xff]  ;;  %v6722_v4 = vcombine.low %v1556_v49, %v1560_v50 }
 0x423   :  { %v1424_v31 = vld [vmem:[#allocation7 + $0x2b0] sm:$0xff] }
 0x424   :  { %4795 = vmatpush1.bf16.msra.mxu0 %v6506_v12  ;;  %v1548_v60 = vld [vmem:[#allocation7 + $0x690] sm:$0xff]  ;;  %v6587_v5 = vcombine.high %v1420_v58, %v1424_v31  ;;  %v6586_v19 = vcombine.low %v1420_v58, %v1424_v31 }
 0x425   :  { %4836 = vmatpush1.bf16.msra.mxu1 %v6634_v16  ;;  %4796 = vmatprep.subr.bf16.mxu0 %v6627_v39  ;;  %v1552_v63 = vld [vmem:[#allocation7 + $0x6b0] sm:$0xff] }
 0x426   :  { %4837 = vmatprep.subr.bf16.mxu1 %v6755_v18  ;;  %v6715_v7 = vcombine.high %v1548_v60, %v1552_v63  ;;  %v1412_v12 = vld [vmem:[#allocation7 + $0x250] sm:$0xff]  ;;  %v6714_v43 = vcombine.low %v1548_v60, %v1552_v63 }
 0x427   :  { %v1416_v16 = vld [vmem:[#allocation7 + $0x270] sm:$0xff] }
 0x428   :  { %4797 = vmatpush2.bf16.msra.mxu0 %v6626_v21  ;;  %v1540_v39 = vld [vmem:[#allocation7 + $0x650] sm:$0xff]  ;;  %v6579_v9 = vcombine.high %v1412_v12, %v1416_v16  ;;  %v6578_v0 = vcombine.low %v1412_v12, %v1416_v16 }
 0x429   :  { %4838 = vmatpush2.bf16.msra.mxu1 %v6754_v23  ;;  %4798 = vmatprep.subr.bf16.mxu0 %v6619_v26  ;;  %v1544_v18 = vld [vmem:[#allocation7 + $0x670] sm:$0xff] }
 0x42a   :  { %4839 = vmatprep.subr.bf16.mxu1 %v6747_v37  ;;  %v6707_v20 = vcombine.high %v1540_v39, %v1544_v18  ;;  %v1404_v21 = vld [vmem:[#allocation7 + $0x210] sm:$0xff]  ;;  %v6706_v27 = vcombine.low %v1540_v39, %v1544_v18 }
 0x42b   :  { %v1408_v23 = vld [vmem:[#allocation7 + $0x230] sm:$0xff] }
 0x42c   :  { %4799 = vmatpush2.bf16.msra.mxu0 %v6618_v33  ;;  %v1532_v26 = vld [vmem:[#allocation7 + $0x610] sm:$0xff]  ;;  %v6571_v25 = vcombine.high %v1404_v21, %v1408_v23  ;;  %v6570_v61 = vcombine.low %v1404_v21, %v1408_v23 }
 0x42d   :  { %4840 = vmatpush2.bf16.msra.mxu1 %v6746_v34  ;;  %4800 = vmatprep.subr.bf16.mxu0 %v6611_v40  ;;  %v1536_v37 = vld [vmem:[#allocation7 + $0x630] sm:$0xff] }
 0x42e   :  { %4841 = vmatprep.subr.bf16.mxu1 %v6739_v41  ;;  %v6699_v32 = vcombine.high %v1532_v26, %v1536_v37  ;;  %v1652_v33 = vld [vmem:[#allocation7 + $0x9d0] sm:$0xff]  ;;  %v6698_v3 = vcombine.low %v1532_v26, %v1536_v37 }
 0x42f   :  { %v1656_v34 = vld [vmem:[#allocation7 + $0x9f0] sm:$0xff] }
 0x430   :  { %4801 = vmatpush2.bf16.msra.mxu0 %v6610_v42  ;;  %v1780_v40 = vld [vmem:[#allocation7 + $0xdd0] sm:$0xff]  ;;  %v6819_v10 = vcombine.high %v1652_v33, %v1656_v34 }
 0x431   :  { %4842 = vmatpush2.bf16.msra.mxu1 %v6738_v44  ;;  %4802 = vmatprep.subr.bf16.mxu0 %v6603_v45  ;;  %v1784_v41 = vld [vmem:[#allocation7 + $0xdf0] sm:$0xff]  ;;  %v6818_v45 = vcombine.low %v1652_v33, %v1656_v34 }
 0x432   :  { %4843 = vmatprep.subr.bf16.mxu1 %v6731_v46  ;;  %v6947_v62 = vcombine.high %v1780_v40, %v1784_v41  ;;  %v1644_v42 = vld [vmem:[#allocation7 + $0x990] sm:$0xff]  ;;  %v6946_v48 = vcombine.low %v1780_v40, %v1784_v41 }
 0x433   :  { %v1648_v44 = vld [vmem:[#allocation7 + $0x9b0] sm:$0xff] }
 0x434   :  { %4803 = vmatpush2.bf16.msra.mxu0 %v6602_v22  ;;  %v1772_v46 = vld [vmem:[#allocation7 + $0xd90] sm:$0xff]  ;;  %v6811_v49 = vcombine.high %v1644_v42, %v1648_v44  ;;  %v6810_v63 = vcombine.low %v1644_v42, %v1648_v44 }
 0x435   :  { %4844 = vmatpush2.bf16.msra.mxu1 %v6730_v51  ;;  %4804 = vmatprep.subr.bf16.mxu0 %v6595_v52  ;;  %v1776_v47 = vld [vmem:[#allocation7 + $0xdb0] sm:$0xff] }
 0x436   :  { %4845 = vmatprep.subr.bf16.mxu1 %v6723_v54  ;;  %v1636_v50 = vld [vmem:[#allocation7 + $0x950] sm:$0xff]  ;;  %v6939_v54 = vcombine.high %v1772_v46, %v1776_v47 }
 0x437   :  { %v1640_v22 = vld [vmem:[#allocation7 + $0x970] sm:$0xff] }
 0x438   :  { %4805 = vmatpush2.bf16.msra.mxu0 %v6594_v2  ;;  %v1764_v58 = vld [vmem:[#allocation7 + $0xd50] sm:$0xff]  ;;  %v6802_v23 = vcombine.low %v1636_v50, %v1640_v22 }
 0x439   :  { %4846 = vmatpush2.bf16.msra.mxu1 %v6722_v4  ;;  %4806 = vmatprep.subr.bf16.mxu0 %v6587_v5  ;;  %v1768_v31 = vld [vmem:[#allocation7 + $0xd70] sm:$0xff]  ;;  %v6938_v5 = vcombine.low %v1772_v46, %v1776_v47 }
 0x43a   :  { %4847 = vmatprep.subr.bf16.mxu1 %v6715_v7  ;;  %v6803_v7 = vcombine.high %v1636_v50, %v1640_v22  ;;  %v6931_v39 = vcombine.high %v1764_v58, %v1768_v31  ;;  %v1632_v18 = vld [vmem:[#allocation7 + $0x930] sm:$0xff] }
 0x43b   :  { %v1748_v33 = vld [vmem:[#allocation7 + $0xcd0] sm:$0xff] }
 0x43c   :  { %4807 = vmatpush2.bf16.msra.mxu0 %v6586_v19  ;;  %v1752_v34 = vld [vmem:[#allocation7 + $0xcf0] sm:$0xff] }
 0x43d   :  { %4848 = vmatpush2.bf16.msra.mxu1 %v6714_v43  ;;  %4808 = vmatprep.subr.bf16.mxu0 %v6579_v9  ;;  %v1756_v9 = vld [vmem:[#allocation7 + $0xd10] sm:$0xff]  ;;  %v6914_v46 = vcombine.low %v1748_v33, %v1752_v34 }
 0x43e   :  { %4849 = vmatprep.subr.bf16.mxu1 %v6707_v20  ;;  %v1760_v20 = vld [vmem:[#allocation7 + $0xd30] sm:$0xff] }
 0x43f   :  { %v6922_v41 = vcombine.low %v1756_v9, %v1760_v20  ;;  %v1740_v42 = vld [vmem:[#allocation7 + $0xc90] sm:$0xff] }
 0x440   :  { %4809 = vmatpush2.bf16.msra.mxu0 %v6578_v0  ;;  %v6930_v0 = vcombine.low %v1764_v58, %v1768_v31  ;;  %v1744_v44 = vld [vmem:[#allocation7 + $0xcb0] sm:$0xff] }
 0x441   :  { %4850 = vmatpush2.bf16.msra.mxu1 %v6706_v27  ;;  %4810 = vmatprep.subr.bf16.mxu0 %v6571_v25  ;;  %v1620_v25 = vld [vmem:[#allocation7 + $0x8d0] sm:$0xff] }
 0x442   :  { %4851 = vmatprep.subr.bf16.mxu1 %v6699_v32  ;;  %v1624_v32 = vld [vmem:[#allocation7 + $0x8f0] sm:$0xff] }
 0x443   :  { %v1608_v50 = vld [vmem:[#allocation7 + $0x870] sm:$0xff] }
 0x444   :  { %4811 = vmatpush2.bf16.msra.mxu0 %v6570_v61  ;;  %v6787_v61 = vcombine.high %v1620_v25, %v1624_v32  ;;  %v1732_v22 = vld [vmem:[#allocation7 + $0xc50] sm:$0xff] }
 0x445   :  { %4852 = vmatpush2.bf16.msra.mxu1 %v6698_v3  ;;  %4862 = vmatprep.subr.bf16.mxu0 %v6819_v10  ;;  %v6915_v3 = vcombine.high %v1748_v33, %v1752_v34  ;;  %v1612_v10 = vld [vmem:[#allocation7 + $0x890] sm:$0xff] }
 0x446   :  { %4903 = vmatprep.subr.bf16.mxu1 %v6947_v62  ;;  %v1616_v62 = vld [vmem:[#allocation7 + $0x8b0] sm:$0xff] }
 0x447   :  { %v4568_v51 = vpop.f32.mrf.mxu0  ;;  %v4609_v52 = vpop.f32.mrf.mxu1  ;;  %4813 = vmatmul.mubr.bf16.vlgmr.msra.gmra.mxu0 %v8077_v38  ;;  %v6779_v47 = vcombine.high %v1612_v10, %v1616_v62 }
 0x448   :  { %v4569_v60 = vadd.f32 %v4568_v51, %v8116_v53  ;;  %4854 = vmatmul.mubr.bf16.vlgmr.msra.gmra.mxu1 %v8079_v35  ;;  %4863 = vmatpush1.bf16.msra.mxu0 %v6818_v45  ;;  %v1628_v53 = vld [vmem:[#allocation7 + $0x910] sm:$0xff]  ;;  %v6786_v45 = vcombine.low %v1620_v25, %v1624_v32 }
 0x449   :  { %4894 = vmatprep.mubr.bf16.mxu0 %v8085_v29  ;;  %4904 = vmatpush1.bf16.msra.mxu1 %v6946_v48  ;;  %v4570_v2 = vpop.f32.mrf.mxu0  ;;  %v4611_v4 = vpop.f32.mrf.mxu1  ;;  %v6795_v27 = vcombine.high %v1628_v53, %v1632_v18  ;;  %v6794_v40 = vcombine.low %v1628_v53, %v1632_v18  ;;  %v6907_v48 = vcombine.high %v1740_v42, %v1744_v44  ;;  %v1736_v51 = vld [vmem:[#allocation7 + $0xc70] sm:$0xff] }
 0x44a   :  { %v8125_v12 = vadd.f32 %v4609_v52, %v4569_v60  ;;  %4935 = vmatprep.mubr.bf16.mxu1 %v8087_v30  ;;  %v4571_v16 = vadd.f32 %v4570_v2, %v8119_v17  ;;  %4864 = vmatprep.subr.bf16.mxu0 %v6811_v49  ;;  %v6923_v17 = vcombine.high %v1756_v9, %v1760_v20  ;;  %v1604_v49 = vld [vmem:[#allocation7 + $0x850] sm:$0xff] }
 0x44b   :  { %v4572_v19 = vpop.f32.mrf.mxu0  ;;  %v4613_v43 = vpop.f32.mrf.mxu1  ;;  %4905 = vmatprep.subr.bf16.mxu1 %v6939_v54  ;;  %v6778_v52 = vcombine.low %v1612_v10, %v1616_v62  ;;  %v6906_v54 = vcombine.low %v1740_v42, %v1744_v44  ;;  %v6771_v58 = vcombine.high %v1604_v49, %v1608_v50  ;;  %v6899_v31 = vcombine.high %v1732_v22, %v1736_v51  ;;  %v1596_v60 = vld [vmem:[#allocation7 + $0x810] sm:$0xff] }
 0x44c   :  { %v8129_v21 = vadd.f32 %v4611_v4, %v4571_v16  ;;  %4865 = vmatpush1.bf16.msra.mxu0 %v6810_v63  ;;  %v1600_v63 = vld [vmem:[#allocation7 + $0x830] sm:$0xff] }
 0x44d   :  { %4906 = vmatpush1.bf16.msra.mxu1 %v6938_v5  ;;  %v4573_v26 = vpop.f32.mrf.mxu0  ;;  %v4614_v37 = vpop.f32.mrf.mxu1  ;;  %4866 = vmatprep.subr.bf16.mxu0 %v6803_v7  ;;  %v1724_v2 = vld [vmem:[#allocation7 + $0xc10] sm:$0xff]  ;;  %v6770_v5 = vcombine.low %v1604_v49, %v1608_v50  ;;  %v6898_v7 = vcombine.low %v1732_v22, %v1736_v51  ;;  %v6763_v16 = vcombine.high %v1596_v60, %v1600_v63 }
 0x44e   :  { %4907 = vmatprep.subr.bf16.mxu1 %v6931_v39  ;;  %v1728_v4 = vld [vmem:[#allocation7 + $0xc30] sm:$0xff]  ;;  %v6762_v9 = vcombine.low %v1596_v60, %v1600_v63 }
 0x44f   :  { %v6891_v39 = vcombine.high %v1724_v2, %v1728_v4  ;;  %v1716_v53 = vld [vmem:[#allocation7 + $0xbd0] sm:$0xff]  ;;  %v6890_v20 = vcombine.low %v1724_v2, %v1728_v4 }
 0x450   :  { %4867 = vmatpush1.bf16.msra.mxu0 %v6802_v23  ;;  %v1720_v18 = vld [vmem:[#allocation7 + $0xbf0] sm:$0xff] }
 0x451   :  { %4908 = vmatpush1.bf16.msra.mxu1 %v6930_v0  ;;  %4868 = vmatprep.subr.bf16.mxu0 %v6795_v27  ;;  %v1844_v19 = vld [vmem:[#allocation7 + $0xfd0] sm:$0xff]  ;;  %v6883_v23 = vcombine.high %v1716_v53, %v1720_v18  ;;  %v6882_v25 = vcombine.low %v1716_v53, %v1720_v18 }
 0x452   :  { %4909 = vmatprep.subr.bf16.mxu1 %v6923_v17  ;;  %v1848_v43 = vld [vmem:[#allocation7 + $0xff0] sm:$0xff] }
 0x453   :  { %v7011_v26 = vcombine.high %v1844_v19, %v1848_v43  ;;  %v1708_v37 = vld [vmem:[#allocation7 + $0xb90] sm:$0xff]  ;;  %v7010_v32 = vcombine.low %v1844_v19, %v1848_v43 }
 0x454   :  { %4869 = vmatpush1.bf16.msra.mxu0 %v6794_v40  ;;  %v1712_v0 = vld [vmem:[#allocation7 + $0xbb0] sm:$0xff] }
 0x455   :  { %4910 = vmatpush1.bf16.msra.mxu1 %v6922_v41  ;;  %4870 = vmatprep.subr.bf16.mxu0 %v6787_v61  ;;  %v1836_v27 = vld [vmem:[#allocation7 + $0xf90] sm:$0xff]  ;;  %v6875_v33 = vcombine.high %v1708_v37, %v1712_v0  ;;  %v6874_v10 = vcombine.low %v1708_v37, %v1712_v0 }
 0x456   :  { %4911 = vmatprep.subr.bf16.mxu1 %v6915_v3  ;;  %v1840_v17 = vld [vmem:[#allocation7 + $0xfb0] sm:$0xff] }
 0x457   :  { %v7003_v34 = vcombine.high %v1836_v27, %v1840_v17  ;;  %v1700_v40 = vld [vmem:[#allocation7 + $0xb50] sm:$0xff]  ;;  %v7002_v62 = vcombine.low %v1836_v27, %v1840_v17 }
 0x458   :  { %4871 = vmatpush1.bf16.msra.mxu0 %v6786_v45  ;;  %v1704_v41 = vld [vmem:[#allocation7 + $0xb70] sm:$0xff] }
 0x459   :  { %4912 = vmatpush1.bf16.msra.mxu1 %v6914_v46  ;;  %4872 = vmatprep.subr.bf16.mxu0 %v6779_v47  ;;  %v1828_v61 = vld [vmem:[#allocation7 + $0xf50] sm:$0xff]  ;;  %v6867_v42 = vcombine.high %v1700_v40, %v1704_v41  ;;  %v6866_v49 = vcombine.low %v1700_v40, %v1704_v41 }
 0x45a   :  { %4913 = vmatprep.subr.bf16.mxu1 %v6907_v48  ;;  %v1832_v3 = vld [vmem:[#allocation7 + $0xf70] sm:$0xff] }
 0x45b   :  { %v6995_v44 = vcombine.high %v1828_v61, %v1832_v3  ;;  %v1692_v45 = vld [vmem:[#allocation7 + $0xb10] sm:$0xff]  ;;  %v6994_v50 = vcombine.low %v1828_v61, %v1832_v3 }
 0x45c   :  { %4873 = vmatpush1.bf16.msra.mxu0 %v6778_v52  ;;  %v1696_v46 = vld [vmem:[#allocation7 + $0xb30] sm:$0xff] }
 0x45d   :  { %4914 = vmatpush1.bf16.msra.mxu1 %v6906_v54  ;;  %4874 = vmatprep.subr.bf16.mxu0 %v6771_v58  ;;  %v1820_v47 = vld [vmem:[#allocation7 + $0xf10] sm:$0xff]  ;;  %v6859_v22 = vcombine.high %v1692_v45, %v1696_v46  ;;  %v6858_v60 = vcombine.low %v1692_v45, %v1696_v46 }
 0x45e   :  { %4915 = vmatprep.subr.bf16.mxu1 %v6899_v31  ;;  %v1824_v48 = vld [vmem:[#allocation7 + $0xf30] sm:$0xff] }
 0x45f   :  { %v6987_v51 = vcombine.high %v1820_v47, %v1824_v48  ;;  %v1684_v52 = vld [vmem:[#allocation7 + $0xad0] sm:$0xff]  ;;  %v6986_v63 = vcombine.low %v1820_v47, %v1824_v48 }
 0x460   :  { %4875 = vmatpush1.bf16.msra.mxu0 %v6770_v5  ;;  %v1688_v54 = vld [vmem:[#allocation7 + $0xaf0] sm:$0xff] }
 0x461   :  { %4916 = vmatpush1.bf16.msra.mxu1 %v6898_v7  ;;  %4876 = vmatprep.subr.bf16.mxu0 %v6763_v16  ;;  %v1812_v58 = vld [vmem:[#allocation7 + $0xed0] sm:$0xff]  ;;  %v6851_v2 = vcombine.high %v1684_v52, %v1688_v54  ;;  %v6850_v53 = vcombine.low %v1684_v52, %v1688_v54  ;;  %v1517_v52 = vld [vmem:[#allocation7 + $0x598] sm:$0xff] }
 0x462   :  { %4917 = vmatprep.subr.bf16.mxu1 %v6891_v39  ;;  %v1816_v31 = vld [vmem:[#allocation7 + $0xef0] sm:$0xff]  ;;  %v1521_v54 = vld [vmem:[#allocation7 + $0x5b8] sm:$0xff] }
 0x463   :  { %v6979_v4 = vcombine.high %v1812_v58, %v1816_v31  ;;  %v1676_v5 = vld [vmem:[#allocation7 + $0xa90] sm:$0xff]  ;;  %v6978_v18 = vcombine.low %v1812_v58, %v1816_v31  ;;  %v1867_v31 = vrot.slane %v8107_v28, %v421_v1  ;;  %v6684_v1 = vcombine.low %v1517_v52, %v1521_v54 }
 0x464   :  { %4877 = vmatpush1.bf16.msra.mxu0 %v6762_v9  ;;  %v1680_v7 = vld [vmem:[#allocation7 + $0xab0] sm:$0xff] }
 0x465   :  { %4918 = vmatpush1.bf16.msra.mxu1 %v6890_v20  ;;  %4878 = vmatprep.subr.bf16.mxu0 %v6883_v23  ;;  %v1804_v16 = vld [vmem:[#allocation7 + $0xe90] sm:$0xff]  ;;  %v6843_v19 = vcombine.high %v1676_v5, %v1680_v7  ;;  %v6842_v37 = vcombine.low %v1676_v5, %v1680_v7  ;;  %v6685_v5 = vcombine.high %v1517_v52, %v1521_v54  ;;  %v1509_v7 = vld [vmem:[#allocation7 + $0x558] sm:$0xff] }
 0x466   :  { %4919 = vmatprep.subr.bf16.mxu1 %v7011_v26  ;;  %v1808_v39 = vld [vmem:[#allocation7 + $0xeb0] sm:$0xff]  ;;  %v1349_v54 = vld [vmem:[#allocation7 + $0x58] sm:$0xff] }
 0x467   :  { %v6971_v43 = vcombine.high %v1804_v16, %v1808_v39  ;;  %v1668_v9 = vld [vmem:[#allocation7 + $0xa50] sm:$0xff]  ;;  %v6970_v0 = vcombine.low %v1804_v16, %v1808_v39 }
 0x468   :  { %4879 = vmatpush2.bf16.msra.mxu0 %v6882_v25  ;;  %v1672_v20 = vld [vmem:[#allocation7 + $0xa70] sm:$0xff] }
 0x469   :  { %4920 = vmatpush2.bf16.msra.mxu1 %v7010_v32  ;;  %4880 = vmatprep.subr.bf16.mxu0 %v6875_v33  ;;  %v1796_v23 = vld [vmem:[#allocation7 + $0xe50] sm:$0xff]  ;;  %v6835_v27 = vcombine.high %v1668_v9, %v1672_v20  ;;  %v6834_v40 = vcombine.low %v1668_v9, %v1672_v20 }
 0x46a   :  { %4921 = vmatprep.subr.bf16.mxu1 %v7003_v34  ;;  %v1800_v26 = vld [vmem:[#allocation7 + $0xe70] sm:$0xff] }
 0x46b   :  { %v6963_v17 = vcombine.high %v1796_v23, %v1800_v26  ;;  %v1660_v25 = vld [vmem:[#allocation7 + $0xa10] sm:$0xff]  ;;  %v6962_v41 = vcombine.low %v1796_v23, %v1800_v26  ;;  %v1373_v23 = vld [vmem:[#allocation7 + $0x118] sm:$0xff] }
 0x46c   :  { %4881 = vmatpush2.bf16.msra.mxu0 %v6874_v10  ;;  %v1664_v32 = vld [vmem:[#allocation7 + $0xa30] sm:$0xff]  ;;  %v1397_v10 = vld [vmem:[#allocation7 + $0x1d8] sm:$0xff] }
 0x46d   :  { %4922 = vmatpush2.bf16.msra.mxu1 %v7002_v62  ;;  %4882 = vmatprep.subr.bf16.mxu0 %v6867_v42  ;;  %v1788_v33 = vld [vmem:[#allocation7 + $0xe10] sm:$0xff]  ;;  %v6827_v61 = vcombine.high %v1660_v25, %v1664_v32  ;;  %v1401_v62 = vld [vmem:[#allocation7 + $0x1f8] sm:$0xff]  ;;  %v6826_v45 = vcombine.low %v1660_v25, %v1664_v32 }
 0x46e   :  { %4923 = vmatprep.subr.bf16.mxu1 %v6995_v44  ;;  %v1792_v34 = vld [vmem:[#allocation7 + $0xe30] sm:$0xff]  ;;  %v1525_v42 = vld [vmem:[#allocation7 + $0x5d8] sm:$0xff]  ;;  %v6565_v47 = vcombine.high %v1397_v10, %v1401_v62 }
 0x46f   :  { %v6955_v3 = vcombine.high %v1788_v33, %v1792_v34  ;;  %v1529_v44 = vld [vmem:[#allocation7 + $0x5f8] sm:$0xff]  ;;  %v6954_v46 = vcombine.low %v1788_v33, %v1792_v34 }
 0x470   :  { %4883 = vmatpush2.bf16.msra.mxu0 %v6866_v49  ;;  %v6693_v48 = vcombine.high %v1525_v42, %v1529_v44  ;;  %v1389_v49 = vld [vmem:[#allocation7 + $0x198] sm:$0xff]  ;;  %v6692_v58 = vcombine.low %v1525_v42, %v1529_v44 }
 0x471   :  { %4924 = vmatpush2.bf16.msra.mxu1 %v6994_v50  ;;  %4884 = vmatprep.subr.bf16.mxu0 %v6859_v22  ;;  %v1393_v50 = vld [vmem:[#allocation7 + $0x1b8] sm:$0xff]  ;;  %v1863_v22 = vrot.slane %v8107_v28, %v417_v59 }
 0x472   :  { %4925 = vmatprep.subr.bf16.mxu1 %v6987_v51  ;;  %v6564_v51 = vcombine.low %v1397_v10, %v1401_v62  ;;  %v1513_v59 = vld [vmem:[#allocation7 + $0x578] sm:$0xff] }
 0x473   :  { %v6677_v20 = vcombine.high %v1509_v7, %v1513_v59  ;;  %v1377_v26 = vld [vmem:[#allocation7 + $0x138] sm:$0xff]  ;;  %v6676_v33 = vcombine.low %v1509_v7, %v1513_v59 }
 0x474   :  { %4885 = vmatpush2.bf16.msra.mxu0 %v6858_v60  ;;  %v6557_v60 = vcombine.high %v1389_v49, %v1393_v50  ;;  %v1497_v10 = vld [vmem:[#allocation7 + $0x4f8] sm:$0xff]  ;;  %v6540_v62 = vcombine.low %v1373_v23, %v1377_v26 }
 0x475   :  { %4926 = vmatpush2.bf16.msra.mxu1 %v6986_v63  ;;  %4886 = vmatprep.subr.bf16.mxu0 %v6851_v2  ;;  %v1381_v63 = vld [vmem:[#allocation7 + $0x158] sm:$0xff] }
 0x476   :  { %4927 = vmatprep.subr.bf16.mxu1 %v6979_v4  ;;  %v1385_v2 = vld [vmem:[#allocation7 + $0x178] sm:$0xff] }
 0x477   :  { %v6549_v28 = vcombine.high %v1381_v63, %v1385_v2  ;;  %v6548_v25 = vcombine.low %v1381_v63, %v1385_v2  ;;  %v1341_v7 = vld [vmem:[#allocation7 + $0x18] sm:$0xff] }
 0x478   :  { %4887 = vmatpush2.bf16.msra.mxu0 %v6850_v53  ;;  %v6556_v53 = vcombine.low %v1389_v49, %v1393_v50  ;;  %v1489_v49 = vld [vmem:[#allocation7 + $0x4b8] sm:$0xff] }
 0x479   :  { %4928 = vmatpush2.bf16.msra.mxu1 %v6978_v18  ;;  %4888 = vmatprep.subr.bf16.mxu0 %v6843_v19  ;;  %v1345_v59 = vld [vmem:[#allocation7 + $0x38] sm:$0xff] }
 0x47a   :  { %4929 = vmatprep.subr.bf16.mxu1 %v6971_v43 }
 0x47c   :  { %4889 = vmatpush2.bf16.msra.mxu0 %v6842_v37 }
 0x47d   :  { %4930 = vmatpush2.bf16.msra.mxu1 %v6970_v0  ;;  %4890 = vmatprep.subr.bf16.mxu0 %v6835_v27  ;;  %v1501_v0 = vld [vmem:[#allocation7 + $0x518] sm:$0xff] }
 0x47e   :  { %4931 = vmatprep.subr.bf16.mxu1 %v6963_v17  ;;  %v1505_v27 = vld [vmem:[#allocation7 + $0x538] sm:$0xff] }
 0x47f   :  { %v6668_v42 = vcombine.low %v1501_v0, %v1505_v27 }
 0x480   :  { %4891 = vmatpush2.bf16.msra.mxu0 %v6834_v40  ;;  %v6669_v40 = vcombine.high %v1501_v0, %v1505_v27 }
 0x481   :  { %4932 = vmatpush2.bf16.msra.mxu1 %v6962_v41  ;;  %4892 = vmatprep.subr.bf16.mxu0 %v6827_v61  ;;  %v1365_v41 = vld [vmem:[#allocation7 + $0xd8] sm:$0xff] }
 0x482   :  { %4933 = vmatprep.subr.bf16.mxu1 %v6955_v3  ;;  %v1369_v61 = vld [vmem:[#allocation7 + $0xf8] sm:$0xff] }
 0x483   :  { %v1493_v3 = vld [vmem:[#allocation7 + $0x4d8] sm:$0xff]  ;;  %v6533_v44 = vcombine.high %v1365_v41, %v1369_v61  ;;  %v6532_v50 = vcombine.low %v1365_v41, %v1369_v61 }
 0x484   :  { %4893 = vmatpush2.bf16.msra.mxu0 %v6826_v45  ;;  %v6661_v45 = vcombine.high %v1493_v3, %v1497_v10  ;;  %v1445_v61 = vld [vmem:[#allocation7 + $0x358] sm:$0xff] }
 0x485   :  { %4934 = vmatpush2.bf16.msra.mxu1 %v6954_v46  ;;  %4944 = vmatprep.subr.bf16.mxu0 %v6565_v47  ;;  %v1357_v46 = vld [vmem:[#allocation7 + $0x98] sm:$0xff] }
 0x486   :  { %4985 = vmatprep.subr.bf16.mxu1 %v6693_v48  ;;  %v1361_v47 = vld [vmem:[#allocation7 + $0xb8] sm:$0xff] }
 0x487   :  { %v4650_v4 = vpop.f32.mrf.mxu0  ;;  %4895 = vmatmul.mubr.bf16.vlgmr.msra.gmra.mxu0 %v8095_v14  ;;  %v1485_v48 = vld [vmem:[#allocation7 + $0x498] sm:$0xff]  ;;  %v6524_v63 = vcombine.low %v1357_v46, %v1361_v47 }
 0x488   :  { %v4651_v16 = vadd.f32 %v4650_v4, %v1863_v22  ;;  %v4691_v39 = vpop.f32.mrf.mxu1  ;;  %4936 = vmatmul.mubr.bf16.vlgmr.msra.gmra.mxu1 %v8097_v15  ;;  %4945 = vmatpush1.bf16.msra.mxu0 %v6564_v51  ;;  %v6660_v22 = vcombine.low %v1493_v3, %v1497_v10  ;;  %v6525_v51 = vcombine.high %v1357_v46, %v1361_v47  ;;  %v1449_v3 = vld [vmem:[#allocation7 + $0x378] sm:$0xff] }
 0x489   :  { %4976 = vmatprep.mubr.bf16.mxu0 %v8073_v36  ;;  %4986 = vmatpush1.bf16.msra.mxu1 %v6692_v58  ;;  %v4652_v18 = vpop.f32.mrf.mxu0  ;;  %v6653_v52 = vcombine.high %v1485_v48, %v1489_v49  ;;  %v1353_v58 = vld [vmem:[#allocation7 + $0x78] sm:$0xff]  ;;  %v6652_v2 = vcombine.low %v1485_v48, %v1489_v49 }
 0x48a   :  { %v8140_v19 = vadd.f32 %v4691_v39, %v4651_v16  ;;  %5017 = vmatprep.mubr.bf16.mxu1 %v8075_v24  ;;  %v4653_v43 = vadd.f32 %v4652_v18, %v1867_v31  ;;  %v4693_v9 = vpop.f32.mrf.mxu1  ;;  %4946 = vmatprep.subr.bf16.mxu0 %v6557_v60  ;;  %v6541_v24 = vcombine.high %v1373_v23, %v1377_v26  ;;  %v1477_v31 = vld [vmem:[#allocation7 + $0x458] sm:$0xff] }
 0x48b   :  { %v4654_v37 = vpop.f32.mrf.mxu0  ;;  %4987 = vmatprep.subr.bf16.mxu1 %v6685_v5  ;;  %v1481_v60 = vld [vmem:[#allocation7 + $0x478] sm:$0xff]  ;;  %v6517_v4 = vcombine.high %v1349_v54, %v1353_v58  ;;  %v6508_v26 = vcombine.low %v1341_v7, %v1345_v59 }
 0x48c   :  { %v8143_v17 = vadd.f32 %v4693_v9, %v4653_v43  ;;  %v4695_v36 = vpop.f32.mrf.mxu1  ;;  %4947 = vmatpush1.bf16.msra.mxu0 %v6556_v53  ;;  %v6645_v5 = vcombine.high %v1477_v31, %v1481_v60  ;;  %v1469_v16 = vld [vmem:[#allocation7 + $0x418] sm:$0xff]  ;;  %v6516_v53 = vcombine.low %v1349_v54, %v1353_v58  ;;  %v6644_v18 = vcombine.low %v1477_v31, %v1481_v60 }
 0x48d   :  { %4988 = vmatpush1.bf16.msra.mxu1 %v6684_v1  ;;  %v4655_v32 = vpop.f32.mrf.mxu0  ;;  %4948 = vmatprep.subr.bf16.mxu0 %v6549_v28  ;;  %v1473_v39 = vld [vmem:[#allocation7 + $0x438] sm:$0xff]  ;;  %v6509_v1 = vcombine.high %v1341_v7, %v1345_v59 }
 0x48e   :  { %v4696_v34 = vpop.f32.mrf.mxu1  ;;  %4989 = vmatprep.subr.bf16.mxu1 %v6677_v20  ;;  %v6637_v28 = vcombine.high %v1469_v16, %v1473_v39  ;;  %v1461_v43 = vld [vmem:[#allocation7 + $0x3d8] sm:$0xff]  ;;  %v6636_v37 = vcombine.low %v1469_v16, %v1473_v39 }
 0x48f   :  { %v1465_v9 = vld [vmem:[#allocation7 + $0x3f8] sm:$0xff] }
 0x490   :  { %4949 = vmatpush1.bf16.msra.mxu0 %v6548_v25  ;;  %v1589_v20 = vld [vmem:[#allocation7 + $0x7d8] sm:$0xff]  ;;  %v6629_v0 = vcombine.high %v1461_v43, %v1465_v9 }
 0x491   :  { %4990 = vmatpush1.bf16.msra.mxu1 %v6676_v33  ;;  %4950 = vmatprep.subr.bf16.mxu0 %v6541_v24  ;;  %v1593_v23 = vld [vmem:[#allocation7 + $0x7f8] sm:$0xff]  ;;  %v6628_v24 = vcombine.low %v1461_v43, %v1465_v9 }
 0x492   :  { %4991 = vmatprep.subr.bf16.mxu1 %v6669_v40  ;;  %v6757_v27 = vcombine.high %v1589_v20, %v1593_v23  ;;  %v1453_v36 = vld [vmem:[#allocation7 + $0x398] sm:$0xff]  ;;  %v6756_v34 = vcombine.low %v1589_v20, %v1593_v23 }
 0x493   :  { %v1457_v25 = vld [vmem:[#allocation7 + $0x3b8] sm:$0xff] }
 0x494   :  { %4951 = vmatpush1.bf16.msra.mxu0 %v6540_v62  ;;  %v1581_v32 = vld [vmem:[#allocation7 + $0x798] sm:$0xff]  ;;  %v6621_v40 = vcombine.high %v1453_v36, %v1457_v25 }
 0x495   :  { %4992 = vmatpush1.bf16.msra.mxu1 %v6668_v42  ;;  %4952 = vmatprep.subr.bf16.mxu0 %v6533_v44  ;;  %v1585_v33 = vld [vmem:[#allocation7 + $0x7b8] sm:$0xff]  ;;  %v6620_v42 = vcombine.low %v1453_v36, %v1457_v25 }
 0x496   :  { %4993 = vmatprep.subr.bf16.mxu1 %v6661_v45  ;;  %v6749_v41 = vcombine.high %v1581_v32, %v1585_v33  ;;  %v1573_v10 = vld [vmem:[#allocation7 + $0x758] sm:$0xff]  ;;  %v6748_v44 = vcombine.low %v1581_v32, %v1585_v33  ;;  %v6613_v45 = vcombine.high %v1445_v61, %v1449_v3 }
 0x497   :  { %v1577_v62 = vld [vmem:[#allocation7 + $0x778] sm:$0xff] }
 0x498   :  { %4953 = vmatpush1.bf16.msra.mxu0 %v6532_v50  ;;  %v6741_v46 = vcombine.high %v1573_v10, %v1577_v62  ;;  %v1437_v47 = vld [vmem:[#allocation7 + $0x318] sm:$0xff] }
 0x499   :  { %4994 = vmatpush1.bf16.msra.mxu1 %v6660_v22  ;;  %4954 = vmatprep.subr.bf16.mxu0 %v6525_v51  ;;  %v1441_v48 = vld [vmem:[#allocation7 + $0x338] sm:$0xff]  ;;  %v6612_v22 = vcombine.low %v1445_v61, %v1449_v3  ;;  %v6740_v51 = vcombine.low %v1573_v10, %v1577_v62 }
 0x49a   :  { %4995 = vmatprep.subr.bf16.mxu1 %v6653_v52  ;;  %v1565_v49 = vld [vmem:[#allocation7 + $0x718] sm:$0xff]  ;;  %v6605_v52 = vcombine.high %v1437_v47, %v1441_v48 }
 0x49b   :  { %v1569_v50 = vld [vmem:[#allocation7 + $0x738] sm:$0xff] }
 0x49c   :  { %4955 = vmatpush1.bf16.msra.mxu0 %v6524_v63  ;;  %v6733_v54 = vcombine.high %v1565_v49, %v1569_v50  ;;  %v1429_v58 = vld [vmem:[#allocation7 + $0x2d8] sm:$0xff] }
 0x49d   :  { %4996 = vmatpush1.bf16.msra.mxu1 %v6652_v2  ;;  %4956 = vmatprep.subr.bf16.mxu0 %v6517_v4  ;;  %v1433_v31 = vld [vmem:[#allocation7 + $0x2f8] sm:$0xff]  ;;  %v6604_v2 = vcombine.low %v1437_v47, %v1441_v48  ;;  %v6732_v4 = vcombine.low %v1565_v49, %v1569_v50 }
 0x49e   :  { %4997 = vmatprep.subr.bf16.mxu1 %v6645_v5  ;;  %v1557_v60 = vld [vmem:[#allocation7 + $0x6d8] sm:$0xff]  ;;  %v6597_v5 = vcombine.high %v1429_v58, %v1433_v31 }
 0x49f   :  { %v1561_v63 = vld [vmem:[#allocation7 + $0x6f8] sm:$0xff] }
 0x4a0   :  { %4957 = vmatpush1.bf16.msra.mxu0 %v6516_v53  ;;  %v6725_v7 = vcombine.high %v1557_v60, %v1561_v63  ;;  %v1421_v59 = vld [vmem:[#allocation7 + $0x298] sm:$0xff] }
 0x4a1   :  { %4998 = vmatpush1.bf16.msra.mxu1 %v6644_v18  ;;  %4958 = vmatprep.subr.bf16.mxu0 %v6509_v1  ;;  %v1425_v16 = vld [vmem:[#allocation7 + $0x2b8] sm:$0xff]  ;;  %v6596_v18 = vcombine.low %v1429_v58, %v1433_v31  ;;  %v6724_v1 = vcombine.low %v1557_v60, %v1561_v63 }
 0x4a2   :  { %4999 = vmatprep.subr.bf16.mxu1 %v6637_v28  ;;  %v1549_v39 = vld [vmem:[#allocation7 + $0x698] sm:$0xff]  ;;  %v6589_v28 = vcombine.high %v1421_v59, %v1425_v16 }
 0x4a3   :  { %v1553_v53 = vld [vmem:[#allocation7 + $0x6b8] sm:$0xff] }
 0x4a4   :  { %4959 = vmatpush1.bf16.msra.mxu0 %v6508_v26  ;;  %v6717_v43 = vcombine.high %v1549_v39, %v1553_v53  ;;  %v1413_v9 = vld [vmem:[#allocation7 + $0x258] sm:$0xff] }
 0x4a5   :  { %5000 = vmatpush1.bf16.msra.mxu1 %v6636_v37  ;;  %4960 = vmatprep.subr.bf16.mxu0 %v6629_v0  ;;  %v1417_v20 = vld [vmem:[#allocation7 + $0x278] sm:$0xff]  ;;  %v6588_v37 = vcombine.low %v1421_v59, %v1425_v16  ;;  %v6716_v0 = vcombine.low %v1549_v39, %v1553_v53 }
 0x4a6   :  { %5001 = vmatprep.subr.bf16.mxu1 %v6757_v27  ;;  %v1541_v23 = vld [vmem:[#allocation7 + $0x658] sm:$0xff]  ;;  %v6581_v27 = vcombine.high %v1413_v9, %v1417_v20 }
 0x4a7   :  { %v1545_v26 = vld [vmem:[#allocation7 + $0x678] sm:$0xff] }
 0x4a8   :  { %4961 = vmatpush2.bf16.msra.mxu0 %v6628_v24  ;;  %v6709_v36 = vcombine.high %v1541_v23, %v1545_v26  ;;  %v1405_v25 = vld [vmem:[#allocation7 + $0x218] sm:$0xff] }
 0x4a9   :  { %5002 = vmatpush2.bf16.msra.mxu1 %v6756_v34  ;;  %4962 = vmatprep.subr.bf16.mxu0 %v6621_v40  ;;  %v1409_v32 = vld [vmem:[#allocation7 + $0x238] sm:$0xff]  ;;  %v6580_v34 = vcombine.low %v1413_v9, %v1417_v20  ;;  %v6708_v40 = vcombine.low %v1541_v23, %v1545_v26 }
 0x4aa   :  { %5003 = vmatprep.subr.bf16.mxu1 %v6749_v41  ;;  %v1533_v33 = vld [vmem:[#allocation7 + $0x618] sm:$0xff]  ;;  %v6573_v41 = vcombine.high %v1405_v25, %v1409_v32 }
 0x4ab   :  { %v1537_v24 = vld [vmem:[#allocation7 + $0x638] sm:$0xff] }
 0x4ac   :  { %4963 = vmatpush2.bf16.msra.mxu0 %v6620_v42  ;;  %v6701_v61 = vcombine.high %v1533_v33, %v1537_v24  ;;  %v1653_v3 = vld [vmem:[#allocation7 + $0x9d8] sm:$0xff] }
 0x4ad   :  { %5004 = vmatpush2.bf16.msra.mxu1 %v6748_v44  ;;  %4964 = vmatprep.subr.bf16.mxu0 %v6613_v45  ;;  %v1657_v10 = vld [vmem:[#allocation7 + $0x9f8] sm:$0xff]  ;;  %v6572_v44 = vcombine.low %v1405_v25, %v1409_v32  ;;  %v6700_v45 = vcombine.low %v1533_v33, %v1537_v24 }
 0x4ae   :  { %5005 = vmatprep.subr.bf16.mxu1 %v6741_v46  ;;  %v1781_v62 = vld [vmem:[#allocation7 + $0xdd8] sm:$0xff]  ;;  %v6821_v46 = vcombine.high %v1653_v3, %v1657_v10  ;;  %v6820_v50 = vcombine.low %v1653_v3, %v1657_v10 }
 0x4af   :  { %v1785_v42 = vld [vmem:[#allocation7 + $0xdf8] sm:$0xff] }
 0x4b0   :  { %4965 = vmatpush2.bf16.msra.mxu0 %v6612_v22  ;;  %v6949_v47 = vcombine.high %v1781_v62, %v1785_v42  ;;  %v1645_v48 = vld [vmem:[#allocation7 + $0x998] sm:$0xff] }
 0x4b1   :  { %5006 = vmatpush2.bf16.msra.mxu1 %v6740_v51  ;;  %4966 = vmatprep.subr.bf16.mxu0 %v6605_v52  ;;  %v1649_v49 = vld [vmem:[#allocation7 + $0x9b8] sm:$0xff]  ;;  %v6948_v52 = vcombine.low %v1781_v62, %v1785_v42 }
 0x4b2   :  { %5007 = vmatprep.subr.bf16.mxu1 %v6733_v54  ;;  %v1773_v22 = vld [vmem:[#allocation7 + $0xd98] sm:$0xff]  ;;  %v6813_v54 = vcombine.high %v1645_v48, %v1649_v49  ;;  %v6812_v59 = vcombine.low %v1645_v48, %v1649_v49 }
 0x4b3   :  { %v1777_v51 = vld [vmem:[#allocation7 + $0xdb8] sm:$0xff] }
 0x4b4   :  { %4967 = vmatpush2.bf16.msra.mxu0 %v6604_v2  ;;  %v1637_v58 = vld [vmem:[#allocation7 + $0x958] sm:$0xff]  ;;  %v6941_v63 = vcombine.high %v1773_v22, %v1777_v51  ;;  %v6940_v39 = vcombine.low %v1773_v22, %v1777_v51 }
 0x4b5   :  { %5008 = vmatpush2.bf16.msra.mxu1 %v6732_v4  ;;  %4968 = vmatprep.subr.bf16.mxu0 %v6597_v5  ;;  %v1641_v31 = vld [vmem:[#allocation7 + $0x978] sm:$0xff] }
 0x4b6   :  { %5009 = vmatprep.subr.bf16.mxu1 %v6725_v7  ;;  %v1765_v2 = vld [vmem:[#allocation7 + $0xd58] sm:$0xff]  ;;  %v6805_v53 = vcombine.high %v1637_v58, %v1641_v31  ;;  %v6804_v20 = vcombine.low %v1637_v58, %v1641_v31 }
 0x4b7   :  { %v1769_v4 = vld [vmem:[#allocation7 + $0xd78] sm:$0xff] }
 0x4b8   :  { %4969 = vmatpush2.bf16.msra.mxu0 %v6596_v18  ;;  %v1761_v9 = vld [vmem:[#allocation7 + $0xd38] sm:$0xff]  ;;  %v6932_v26 = vcombine.low %v1765_v2, %v1769_v4 }
 0x4b9   :  { %5010 = vmatpush2.bf16.msra.mxu1 %v6724_v1  ;;  %4970 = vmatprep.subr.bf16.mxu0 %v6589_v28  ;;  %v1629_v1 = vld [vmem:[#allocation7 + $0x918] sm:$0xff] }
 0x4ba   :  { %5011 = vmatprep.subr.bf16.mxu1 %v6717_v43  ;;  %v1633_v28 = vld [vmem:[#allocation7 + $0x938] sm:$0xff] }
 0x4bb   :  { %v1757_v43 = vld [vmem:[#allocation7 + $0xd18] sm:$0xff]  ;;  %v6796_v33 = vcombine.low %v1629_v1, %v1633_v28 }
 0x4bc   :  { %4971 = vmatpush2.bf16.msra.mxu0 %v6588_v37  ;;  %v6797_v37 = vcombine.high %v1629_v1, %v1633_v28  ;;  %v1749_v25 = vld [vmem:[#allocation7 + $0xcd8] sm:$0xff]  ;;  %v6924_v24 = vcombine.low %v1757_v43, %v1761_v9 }
 0x4bd   :  { %5012 = vmatpush2.bf16.msra.mxu1 %v6716_v0  ;;  %4972 = vmatprep.subr.bf16.mxu0 %v6581_v27  ;;  %v1621_v27 = vld [vmem:[#allocation7 + $0x8d8] sm:$0xff] }
 0x4be   :  { %5013 = vmatprep.subr.bf16.mxu1 %v6709_v36  ;;  %v1625_v36 = vld [vmem:[#allocation7 + $0x8f8] sm:$0xff] }
 0x4bf   :  { %v1753_v32 = vld [vmem:[#allocation7 + $0xcf8] sm:$0xff]  ;;  %v6788_v62 = vcombine.low %v1621_v27, %v1625_v36 }
 0x4c0   :  { %4973 = vmatpush2.bf16.msra.mxu0 %v6580_v34  ;;  %v6789_v34 = vcombine.high %v1621_v27, %v1625_v36  ;;  %v1741_v3 = vld [vmem:[#allocation7 + $0xc98] sm:$0xff]  ;;  %v6916_v42 = vcombine.low %v1749_v25, %v1753_v32 }
 0x4c1   :  { %5014 = vmatpush2.bf16.msra.mxu1 %v6708_v40  ;;  %4974 = vmatprep.subr.bf16.mxu0 %v6573_v41  ;;  %v6917_v40 = vcombine.high %v1749_v25, %v1753_v32  ;;  %v1613_v41 = vld [vmem:[#allocation7 + $0x898] sm:$0xff] }
 0x4c2   :  { %5015 = vmatprep.subr.bf16.mxu1 %v6701_v61  ;;  %v1617_v61 = vld [vmem:[#allocation7 + $0x8b8] sm:$0xff] }
 0x4c3   :  { %v1745_v10 = vld [vmem:[#allocation7 + $0xcb8] sm:$0xff] }
 0x4c4   :  { %4975 = vmatpush2.bf16.msra.mxu0 %v6572_v44  ;;  %v6781_v44 = vcombine.high %v1613_v41, %v1617_v61  ;;  %v1733_v48 = vld [vmem:[#allocation7 + $0xc58] sm:$0xff]  ;;  %v6908_v22 = vcombine.low %v1741_v3, %v1745_v10 }
 0x4c5   :  { %5016 = vmatpush2.bf16.msra.mxu1 %v6700_v45  ;;  %5026 = vmatprep.subr.bf16.mxu0 %v6821_v46  ;;  %v6909_v45 = vcombine.high %v1741_v3, %v1745_v10  ;;  %v1605_v46 = vld [vmem:[#allocation7 + $0x858] sm:$0xff] }
 0x4c6   :  { %5067 = vmatprep.subr.bf16.mxu1 %v6949_v47  ;;  %v1609_v47 = vld [vmem:[#allocation7 + $0x878] sm:$0xff] }
 0x4c7   :  { %v4732_v60 = vpop.f32.mrf.mxu0  ;;  %4977 = vmatmul.mubr.bf16.vlgmr.msra.gmra.mxu0 %v8077_v38  ;;  %v1737_v49 = vld [vmem:[#allocation7 + $0xc78] sm:$0xff]  ;;  %v6773_v51 = vcombine.high %v1605_v46, %v1609_v47 }
 0x4c8   :  { %v4733_v5 = vadd.f32 %v4732_v60, %v8140_v19  ;;  %v4773_v7 = vpop.f32.mrf.mxu1  ;;  %5018 = vmatmul.mubr.bf16.vlgmr.msra.gmra.mxu1 %v8079_v35  ;;  %5027 = vmatpush1.bf16.msra.mxu0 %v6820_v50  ;;  %v6933_v19 = vcombine.high %v1765_v2, %v1769_v4  ;;  %v6780_v50 = vcombine.low %v1613_v41, %v1617_v61  ;;  %v1601_v58 = vld [vmem:[#allocation7 + $0x838] sm:$0xff] }
 0x4c9   :  { %5058 = vmatprep.mubr.bf16.mxu0 %v8085_v29  ;;  %5068 = vmatpush1.bf16.msra.mxu1 %v6948_v52  ;;  %v8149_v16 = vpop.f32.mrf.mxu0  ;;  %v6901_v52 = vcombine.high %v1733_v48, %v1737_v49  ;;  %v1725_v31 = vld [vmem:[#allocation7 + $0xc18] sm:$0xff]  ;;  %v6900_v2 = vcombine.low %v1733_v48, %v1737_v49 }
 0x4ca   :  { %v8151_v18 = vadd.f32 %v4773_v7, %v4733_v5  ;;  %5099 = vmatprep.mubr.bf16.mxu1 %v8087_v30  ;;  %v8154_v38 = vpop.f32.mrf.mxu1  ;;  %5028 = vmatprep.subr.bf16.mxu0 %v6813_v54  ;;  %v6925_v30 = vcombine.high %v1757_v43, %v1761_v9  ;;  %v1597_v54 = vld [vmem:[#allocation7 + $0x818] sm:$0xff] }
 0x4cb   :  { %v4736_v35 = vpop.f32.mrf.mxu0  ;;  %5069 = vmatprep.subr.bf16.mxu1 %v6941_v63  ;;  %v1729_v60 = vld [vmem:[#allocation7 + $0xc38] sm:$0xff]  ;;  %v6772_v63 = vcombine.low %v1605_v46, %v1609_v47  ;;  %v6765_v4 = vcombine.high %v1597_v54, %v1601_v58 }
 0x4cc   :  { %v4777_v29 = vpop.f32.mrf.mxu1  ;;  %5029 = vmatpush1.bf16.msra.mxu0 %v6812_v59  ;;  %v6893_v5 = vcombine.high %v1725_v31, %v1729_v60  ;;  %v1717_v7 = vld [vmem:[#allocation7 + $0xbd8] sm:$0xff]  ;;  %v6892_v1 = vcombine.low %v1725_v31, %v1729_v60 }
 0x4cd   :  { %5070 = vmatpush1.bf16.msra.mxu1 %v6940_v39  ;;  %v4737_v23 = vpop.f32.mrf.mxu0  ;;  %5030 = vmatprep.subr.bf16.mxu0 %v6805_v53  ;;  %v1721_v59 = vld [vmem:[#allocation7 + $0xbf8] sm:$0xff] }
 0x4ce   :  { %v4778_v0 = vpop.f32.mrf.mxu1  ;;  %5071 = vmatprep.subr.bf16.mxu1 %v6933_v19  ;;  %v1845_v39 = vld [vmem:[#allocation7 + $0xfd8] sm:$0xff]  ;;  %v6764_v19 = vcombine.low %v1597_v54, %v1601_v58  ;;  %v6885_v28 = vcombine.high %v1717_v7, %v1721_v59  ;;  %v6884_v23 = vcombine.low %v1717_v7, %v1721_v59 }
 0x4cf   :  { %v1849_v53 = vld [vmem:[#allocation7 + $0xff8] sm:$0xff] }
 0x4d0   :  { %5031 = vmatpush1.bf16.msra.mxu0 %v6804_v20  ;;  %v7013_v35 = vcombine.high %v1845_v39, %v1849_v53  ;;  %v1709_v43 = vld [vmem:[#allocation7 + $0xb98] sm:$0xff] }
 0x4d1   :  { %5072 = vmatpush1.bf16.msra.mxu1 %v6932_v26  ;;  %5032 = vmatprep.subr.bf16.mxu0 %v6797_v37  ;;  %v1713_v9 = vld [vmem:[#allocation7 + $0xbb8] sm:$0xff]  ;;  %v7012_v26 = vcombine.low %v1845_v39, %v1849_v53 }
 0x4d2   :  { %5073 = vmatprep.subr.bf16.mxu1 %v6925_v30  ;;  %v1837_v29 = vld [vmem:[#allocation7 + $0xf98] sm:$0xff]  ;;  %v6877_v37 = vcombine.high %v1709_v43, %v1713_v9  ;;  %v6876_v32 = vcombine.low %v1709_v43, %v1713_v9 }
 0x4d3   :  { %v1841_v20 = vld [vmem:[#allocation7 + $0xfb8] sm:$0xff] }
 0x4d4   :  { %5033 = vmatpush1.bf16.msra.mxu0 %v6796_v33  ;;  %v7005_v0 = vcombine.high %v1837_v29, %v1841_v20  ;;  %v1701_v30 = vld [vmem:[#allocation7 + $0xb58] sm:$0xff]  ;;  %v7004_v33 = vcombine.low %v1837_v29, %v1841_v20  ;;  %v4735_v20 = vadd.f32 %v8149_v16, %v8143_v17  ;;  %v5109_v17 = vmax.f32 %v8129_v21, 0.0 }
 0x4d5   :  { %5074 = vmatpush1.bf16.msra.mxu1 %v6924_v24  ;;  %5034 = vmatprep.subr.bf16.mxu0 %v6789_v34  ;;  %v1705_v27 = vld [vmem:[#allocation7 + $0xb78] sm:$0xff] }
 0x4d6   :  { %5075 = vmatprep.subr.bf16.mxu1 %v6917_v40  ;;  %v1829_v36 = vld [vmem:[#allocation7 + $0xf58] sm:$0xff]  ;;  %v6869_v24 = vcombine.high %v1701_v30, %v1705_v27  ;;  %v6868_v10 = vcombine.low %v1701_v30, %v1705_v27  ;;  %v4776_v30 = vadd.f32 %v8154_v38, %v4735_v20  ;;  %v7338_v20 = vld [vmem:[#allocation10] ss:$8 sps:$4 sm:$0xff]  }
 0x4d7   :  { %v1833_v25 = vld [vmem:[#allocation7 + $0xf78] sm:$0xff] }
 0x4d8   :  { %5035 = vmatpush1.bf16.msra.mxu0 %v6788_v62  ;;  %v6997_v34 = vcombine.high %v1829_v36, %v1833_v25  ;;  %v1693_v40 = vld [vmem:[#allocation7 + $0xb18] sm:$0xff]  ;;  %v6996_v62 = vcombine.low %v1829_v36, %v1833_v25  ;;  %v5111_v16 = vmax.f32 %v4776_v30, 0.0 }
 0x4d9   :  { %5076 = vmatpush1.bf16.msra.mxu1 %v6916_v42  ;;  %5036 = vmatprep.subr.bf16.mxu0 %v6781_v44  ;;  %v1697_v41 = vld [vmem:[#allocation7 + $0xb38] sm:$0xff] }
 0x4da   :  { %5077 = vmatprep.subr.bf16.mxu1 %v6909_v45  ;;  %v1821_v61 = vld [vmem:[#allocation7 + $0xf18] sm:$0xff]  ;;  %v6861_v42 = vcombine.high %v1693_v40, %v1697_v41  ;;  %v6860_v49 = vcombine.low %v1693_v40, %v1697_v41  ;;  %v7304_v41 = vld [vmem:[#allocation10 + $0x64] ss:$8 sps:$4 sm:$0xff]  }
 0x4db   :  { %v1825_v3 = vld [vmem:[#allocation7 + $0xf38] sm:$0xff] }
 0x4dc   :  { %5037 = vmatpush1.bf16.msra.mxu0 %v6780_v50  ;;  %v6989_v44 = vcombine.high %v1821_v61, %v1825_v3  ;;  %v1685_v45 = vld [vmem:[#allocation7 + $0xad8] sm:$0xff]  ;;  %v6988_v50 = vcombine.low %v1821_v61, %v1825_v3  ;;  %v5117_v61 = vpack.c.bf16 %v5109_v17, %v5109_v17  ;;  %v7307_v3 = vld [vmem:[#allocation10 + $0x164] ss:$8 sps:$4 sm:$0xff]  }
 0x4dd   :  { %5078 = vmatpush1.bf16.msra.mxu1 %v6908_v22  ;;  %5038 = vmatprep.subr.bf16.mxu0 %v6773_v51  ;;  %v1689_v46 = vld [vmem:[#allocation7 + $0xaf8] sm:$0xff] }
 0x4de   :  { %5079 = vmatprep.subr.bf16.mxu1 %v6901_v52  ;;  %v1813_v47 = vld [vmem:[#allocation7 + $0xed8] sm:$0xff]  ;;  %v6853_v22 = vcombine.high %v1685_v45, %v1689_v46  ;;  %v6852_v60 = vcombine.low %v1685_v45, %v1689_v46  ;;  %v7305_v45 = vld [vmem:[#allocation10 + $0x160] ss:$8 sps:$4 sm:$0xff]  }
 0x4df   :  { %v1817_v48 = vld [vmem:[#allocation7 + $0xef8] sm:$0xff] }
 0x4e0   :  { %5039 = vmatpush1.bf16.msra.mxu0 %v6772_v63  ;;  %v6981_v51 = vcombine.high %v1813_v47, %v1817_v48  ;;  %v1677_v52 = vld [vmem:[#allocation7 + $0xa98] sm:$0xff]  ;;  %v6980_v63 = vcombine.low %v1813_v47, %v1817_v48 }
 0x4e1   :  { %5080 = vmatpush1.bf16.msra.mxu1 %v6900_v2  ;;  %5040 = vmatprep.subr.bf16.mxu0 %v6765_v4  ;;  %v1681_v54 = vld [vmem:[#allocation7 + $0xab8] sm:$0xff] }
 0x4e2   :  { %5081 = vmatprep.subr.bf16.mxu1 %v6893_v5  ;;  %v1805_v58 = vld [vmem:[#allocation7 + $0xe98] sm:$0xff]  ;;  %v6845_v2 = vcombine.high %v1677_v52, %v1681_v54  ;;  %v6844_v53 = vcombine.low %v1677_v52, %v1681_v54  ;;  %v7316_v54 = vld [vmem:[#allocation10 + $0x44] ss:$8 sps:$4 sm:$0xff]  }
 0x4e3   :  { %v1809_v31 = vld [vmem:[#allocation7 + $0xeb8] sm:$0xff] }
 0x4e4   :  { %5041 = vmatpush1.bf16.msra.mxu0 %v6764_v19  ;;  %v6973_v4 = vcombine.high %v1805_v58, %v1809_v31  ;;  %v1669_v5 = vld [vmem:[#allocation7 + $0xa58] sm:$0xff]  ;;  %v6972_v19 = vcombine.low %v1805_v58, %v1809_v31  ;;  %v7319_v31 = vld [vmem:[#allocation10 + $0x144] ss:$8 sps:$4 sm:$0xff]  }
 0x4e5   :  { %5082 = vmatpush1.bf16.msra.mxu1 %v6892_v1  ;;  %5042 = vmatprep.subr.bf16.mxu0 %v6885_v28  ;;  %v1673_v7 = vld [vmem:[#allocation7 + $0xa78] sm:$0xff] }
 0x4e6   :  { %5083 = vmatprep.subr.bf16.mxu1 %v7013_v35  ;;  %v1797_v59 = vld [vmem:[#allocation7 + $0xe58] sm:$0xff]  ;;  %v6837_v1 = vcombine.high %v1669_v5, %v1673_v7 }
 0x4e7   :  { %v1801_v39 = vld [vmem:[#allocation7 + $0xe78] sm:$0xff] }
 0x4e8   :  { %5043 = vmatpush2.bf16.msra.mxu0 %v6884_v23  ;;  %v6965_v28 = vcombine.high %v1797_v59, %v1801_v39  ;;  %v1661_v35 = vld [vmem:[#allocation7 + $0xa18] sm:$0xff]  ;;  %v6836_v23 = vcombine.low %v1669_v5, %v1673_v7 }
 0x4e9   :  { %5084 = vmatpush2.bf16.msra.mxu1 %v7012_v26  ;;  %5044 = vmatprep.subr.bf16.mxu0 %v6877_v37  ;;  %v1665_v43 = vld [vmem:[#allocation7 + $0xa38] sm:$0xff]  ;;  %v6964_v26 = vcombine.low %v1797_v59, %v1801_v39  ;;  %v7328_v59 = vld [vmem:[#allocation10 + $0x24] ss:$8 sps:$4 sm:$0xff]  }
 0x4ea   :  { %5085 = vmatprep.subr.bf16.mxu1 %v7005_v0  ;;  %v1789_v9 = vld [vmem:[#allocation7 + $0xe18] sm:$0xff]  ;;  %v6829_v37 = vcombine.high %v1661_v35, %v1665_v43  ;;  %v6828_v27 = vcombine.low %v1661_v35, %v1665_v43  ;;  %v7331_v39 = vld [vmem:[#allocation10 + $0x124] ss:$8 sps:$4 sm:$0xff]  }
 0x4eb   :  { %v1793_v29 = vld [vmem:[#allocation7 + $0xe38] sm:$0xff] }
 0x4ec   :  { %5045 = vmatpush2.bf16.msra.mxu0 %v6876_v32  ;;  %v6957_v0 = vcombine.high %v1789_v9, %v1793_v29  ;;  %v6956_v36 = vcombine.low %v1789_v9, %v1793_v29  ;;  %v7298_v25 = vld [vmem:[#allocation10 + $0x74] ss:$8 sps:$4 sm:$0xff]   ;;  %v7299_v38 = vld [vmem:[#allocation10 + $0x170] ss:$8 sps:$4 sm:$0xff]   ;;  %v7340_v9 = vld [vmem:[#allocation10 + $0x4] ss:$8 sps:$4 sm:$0xff]  }
 0x4ed   :  { %5086 = vmatpush2.bf16.msra.mxu1 %v7004_v33  ;;  %5046 = vmatprep.subr.bf16.mxu0 %v6869_v24  ;;  %v7301_v32 = vld [vmem:[#allocation10 + $0x174] ss:$8 sps:$4 sm:$0xff]   ;;  %v7311_v52 = vld [vmem:[#allocation10 + $0x150] ss:$8 sps:$4 sm:$0xff]   ;;  %v7343_v29 = vld [vmem:[#allocation10 + $0x104] ss:$8 sps:$4 sm:$0xff]  }
 0x4ee   :  { %5087 = vmatprep.subr.bf16.mxu1 %v6997_v34  ;;  %v8160_v33 = vld [vmem:[#allocation9] sm:$0xff] }
 0x4ef   :  { %v1871_v24 = vrot.slane %v8160_v33, %v425_v6  ;;  %v7296_v34 = vld [vmem:[#allocation10 + $0x70] ss:$8 sps:$4 sm:$0xff]   ;;  %v1875_v40 = vrot.slane %v8160_v33, %v429_v11  ;;  %v7302_v6 = vld [vmem:[#allocation10 + $0x60] ss:$8 sps:$4 sm:$0xff]   ;;  %v7310_v46 = vld [vmem:[#allocation10 + $0x54] ss:$8 sps:$4 sm:$0xff]  }
 0x4f0   :  { %5047 = vmatpush2.bf16.msra.mxu0 %v6868_v10  ;;  %v5119_v10 = vpack.c.bf16 %v5111_v16, %v5111_v16  ;;  %v7320_v5 = vld [vmem:[#allocation10 + $0x30] ss:$8 sps:$4 sm:$0xff]   ;;  %v7358_v17 = vld [vmem:[#allocation10 + $0xd4] ss:$8 sps:$4 sm:$0xff]  }
 0x4f1   :  { %5088 = vmatpush2.bf16.msra.mxu1 %v6996_v62  ;;  %5048 = vmatprep.subr.bf16.mxu0 %v6861_v42  ;;  %v7323_v7 = vld [vmem:[#allocation10 + $0x130] ss:$8 sps:$4 sm:$0xff]   ;;  %v7361_v16 = vld [vmem:[#allocation10 + $0x1d4] ss:$8 sps:$4 sm:$0xff]  }
 0x4f2   :  { %5089 = vmatprep.subr.bf16.mxu1 %v6989_v44  ;;  %v7332_v35 = vld [vmem:[#allocation10 + $0x10] ss:$8 sps:$4 sm:$0xff]  }
 0x4f3   :  { %v7335_v43 = vld [vmem:[#allocation10 + $0x110] ss:$8 sps:$4 sm:$0xff]  }
 0x4f4   :  { %5049 = vmatpush2.bf16.msra.mxu0 %v6860_v49  ;;  %v7347_v30 = vld [vmem:[#allocation10 + $0x1f0] ss:$8 sps:$4 sm:$0xff]  }
 0x4f5   :  { %5090 = vmatpush2.bf16.msra.mxu1 %v6988_v50  ;;  %5050 = vmatprep.subr.bf16.mxu0 %v6853_v22 }
 0x4f6   :  { %5091 = vmatprep.subr.bf16.mxu1 %v6981_v51 }
 0x4f8   :  { %5051 = vmatpush2.bf16.msra.mxu0 %v6852_v60  ;;  %v7314_v60 = vld [vmem:[#allocation10 + $0x40] ss:$8 sps:$4 sm:$0xff]  }
 0x4f9   :  { %5092 = vmatpush2.bf16.msra.mxu1 %v6980_v63  ;;  %5052 = vmatprep.subr.bf16.mxu0 %v6845_v2  ;;  %v7317_v63 = vld [vmem:[#allocation10 + $0x140] ss:$8 sps:$4 sm:$0xff]   ;;  %v7322_v2 = vld [vmem:[#allocation10 + $0x34] ss:$8 sps:$4 sm:$0xff]  }
 0x4fa   :  { %5093 = vmatprep.subr.bf16.mxu1 %v6973_v4  ;;  %v7325_v4 = vld [vmem:[#allocation10 + $0x134] ss:$8 sps:$4 sm:$0xff]  }
 0x4fc   :  { %5053 = vmatpush2.bf16.msra.mxu0 %v6844_v53  ;;  %v7326_v53 = vld [vmem:[#allocation10 + $0x20] ss:$8 sps:$4 sm:$0xff]  }
 0x4fd   :  { %5094 = vmatpush2.bf16.msra.mxu1 %v6972_v19  ;;  %5054 = vmatprep.subr.bf16.mxu0 %v6837_v1  ;;  %v7329_v19 = vld [vmem:[#allocation10 + $0x120] ss:$8 sps:$4 sm:$0xff]   ;;  %v7334_v1 = vld [vmem:[#allocation10 + $0x14] ss:$8 sps:$4 sm:$0xff]  }
 0x4fe   :  { %5095 = vmatprep.subr.bf16.mxu1 %v6965_v28  ;;  %v7337_v28 = vld [vmem:[#allocation10 + $0x114] ss:$8 sps:$4 sm:$0xff]  }
 0x500   :  { %5055 = vmatpush2.bf16.msra.mxu0 %v6836_v23  ;;  %v7341_v23 = vld [vmem:[#allocation10 + $0x100] ss:$8 sps:$4 sm:$0xff]  }
 0x501   :  { %5096 = vmatpush2.bf16.msra.mxu1 %v6964_v26  ;;  %5056 = vmatprep.subr.bf16.mxu0 %v6829_v37  ;;  %v7346_v26 = vld [vmem:[#allocation10 + $0xf4] ss:$8 sps:$4 sm:$0xff]  }
 0x502   :  { %5097 = vmatprep.subr.bf16.mxu1 %v6957_v0  ;;  %v7349_v37 = vld [vmem:[#allocation10 + $0x1f4] ss:$8 sps:$4 sm:$0xff]   ;;  %v7344_v0 = vld [vmem:[#allocation10 + $0xf0] ss:$8 sps:$4 sm:$0xff]  }
 0x504   :  { %5057 = vmatpush2.bf16.msra.mxu0 %v6828_v27  ;;  %v7352_v27 = vld [vmem:[#allocation10 + $0xe4] ss:$8 sps:$4 sm:$0xff]  }
 0x505   :  { %5098 = vmatpush2.bf16.msra.mxu1 %v6956_v36  ;;  %5516 = vmatprep.subr.bf16.mxu0 %v7298_v25  ;;  %v7355_v36 = vld [vmem:[#allocation10 + $0x1e4] ss:$8 sps:$4 sm:$0xff]   ;;  %v7350_v25 = vld [vmem:[#allocation10 + $0xe0] ss:$8 sps:$4 sm:$0xff]  }
 0x506   :  { %5557 = vmatprep.subr.bf16.mxu1 %v7301_v32  ;;  %v7353_v32 = vld [vmem:[#allocation10 + $0x1e0] ss:$8 sps:$4 sm:$0xff]  }
 0x507   :  { %v4814_v21 = vpop.f32.mrf.mxu0  ;;  %5059 = vmatmul.mubr.bf16.vlgmr.msra.gmra.mxu0 %v8095_v14  ;;  %v7313_v14 = vld [vmem:[#allocation10 + $0x154] ss:$8 sps:$4 sm:$0xff]  }
 0x508   :  { %v4815_v62 = vadd.f32 %v4814_v21, %v1871_v24  ;;  %v4855_v42 = vpop.f32.mrf.mxu1  ;;  %5100 = vmatmul.mubr.bf16.vlgmr.msra.gmra.mxu1 %v8097_v15  ;;  %5517 = vmatpush1.bf16.msra.mxu0 %v7296_v34  ;;  %v7308_v15 = vld [vmem:[#allocation10 + $0x50] ss:$8 sps:$4 sm:$0xff]   ;;  %v7370_v21 = vld [vmem:[#allocation10 + $0xb4] ss:$8 sps:$4 sm:$0xff]  }
 0x509   :  { %5548 = vmatprep.mubr.bf16.mxu0 %v5117_v61  ;;  %5558 = vmatpush1.bf16.msra.mxu1 %v7299_v38  ;;  %v4816_v44 = vpop.f32.mrf.mxu0  ;;  %v7356_v24 = vld [vmem:[#allocation10 + $0xd0] ss:$8 sps:$4 sm:$0xff]   ;;  %v7364_v38 = vld [vmem:[#allocation10 + $0xc4] ss:$8 sps:$4 sm:$0xff]   ;;  %v7365_v61 = vld [vmem:[#allocation10 + $0x1c0] ss:$8 sps:$4 sm:$0xff]  }
 0x50a   :  { %v8170_v47 = vadd.f32 %v4855_v42, %v4815_v62  ;;  %5589 = vmatprep.mubr.bf16.mxu1 %v5119_v10  ;;  %v4817_v11 = vadd.f32 %v4816_v44, %v1875_v40  ;;  %v4857_v48 = vpop.f32.mrf.mxu1  ;;  %5518 = vmatprep.subr.bf16.mxu0 %v7304_v41  ;;  %v7359_v34 = vld [vmem:[#allocation10 + $0x1d0] ss:$8 sps:$4 sm:$0xff]   ;;  %v7367_v40 = vld [vmem:[#allocation10 + $0x1c4] ss:$8 sps:$4 sm:$0xff]   ;;  %v7362_v41 = vld [vmem:[#allocation10 + $0xc0] ss:$8 sps:$4 sm:$0xff]  }
 0x50b   :  { %v4818_v49 = vpop.f32.mrf.mxu0  ;;  %5559 = vmatprep.subr.bf16.mxu1 %v7307_v3  ;;  %v7373_v3 = vld [vmem:[#allocation10 + $0x1b4] ss:$8 sps:$4 sm:$0xff]   ;;  %v7368_v10 = vld [vmem:[#allocation10 + $0xb0] ss:$8 sps:$4 sm:$0xff]   ;;  %v7376_v42 = vld [vmem:[#allocation10 + $0xa4] ss:$8 sps:$4 sm:$0xff]  }
 0x50c   :  { %v8172_v50 = vadd.f32 %v4857_v48, %v4817_v11  ;;  %v4859_v22 = vpop.f32.mrf.mxu1  ;;  %5519 = vmatpush1.bf16.msra.mxu0 %v7302_v6  ;;  %v7371_v62 = vld [vmem:[#allocation10 + $0x1b0] ss:$8 sps:$4 sm:$0xff]   ;;  %v7379_v6 = vld [vmem:[#allocation10 + $0x1a4] ss:$8 sps:$4 sm:$0xff]   ;;  %v7374_v44 = vld [vmem:[#allocation10 + $0xa0] ss:$8 sps:$4 sm:$0xff]  }
 0x50d   :  { %5560 = vmatpush1.bf16.msra.mxu1 %v7305_v45  ;;  %v4819_v51 = vpop.f32.mrf.mxu0  ;;  %5520 = vmatprep.subr.bf16.mxu0 %v7310_v46  ;;  %v7377_v45 = vld [vmem:[#allocation10 + $0x1a0] ss:$8 sps:$4 sm:$0xff]   ;;  %v7382_v46 = vld [vmem:[#allocation10 + $0x94] ss:$8 sps:$4 sm:$0xff]   ;;  %v7380_v48 = vld [vmem:[#allocation10 + $0x90] ss:$8 sps:$4 sm:$0xff]  }
 0x50e   :  { %v4860_v58 = vpop.f32.mrf.mxu1  ;;  %5561 = vmatprep.subr.bf16.mxu1 %v7313_v14  ;;  %v7385_v11 = vld [vmem:[#allocation10 + $0x194] ss:$8 sps:$4 sm:$0xff]   ;;  %v7383_v14 = vld [vmem:[#allocation10 + $0x190] ss:$8 sps:$4 sm:$0xff]   ;;  %v7388_v49 = vld [vmem:[#allocation10 + $0x84] ss:$8 sps:$4 sm:$0xff]  }
 0x50f   :  { %v7391_v22 = vld [vmem:[#allocation10 + $0x184] ss:$8 sps:$4 sm:$0xff]   ;;  %v5108_v51 = vmax.f32 %v8125_v12, 0.0 }
 0x510   :  { %5521 = vmatpush1.bf16.msra.mxu0 %v7308_v15  ;;  %v7386_v15 = vld [vmem:[#allocation10 + $0x80] ss:$8 sps:$4 sm:$0xff]  }
 0x511   :  { %5562 = vmatpush1.bf16.msra.mxu1 %v7311_v52  ;;  %5522 = vmatprep.subr.bf16.mxu0 %v7316_v54  ;;  %v7389_v52 = vld [vmem:[#allocation10 + $0x180] ss:$8 sps:$4 sm:$0xff]   ;;  %v5110_v54 = vmax.f32 %v8151_v18, 0.0  ;;  %v5116_v58 = vpack.c.bf16 %v5108_v51, %v5108_v51 }
 0x512   :  { %5563 = vmatprep.subr.bf16.mxu1 %v7319_v31 }
 0x513   :  { %v5118_v31 = vpack.c.bf16 %v5110_v54, %v5110_v54 }
 0x514   :  { %5523 = vmatpush1.bf16.msra.mxu0 %v7314_v60 }
 0x515   :  { %5564 = vmatpush1.bf16.msra.mxu1 %v7317_v63  ;;  %5524 = vmatprep.subr.bf16.mxu0 %v7322_v2 }
 0x516   :  { %5565 = vmatprep.subr.bf16.mxu1 %v7325_v4 }
 0x518   :  { %5525 = vmatpush1.bf16.msra.mxu0 %v7320_v5 }
 0x519   :  { %5566 = vmatpush1.bf16.msra.mxu1 %v7323_v7  ;;  %5526 = vmatprep.subr.bf16.mxu0 %v7328_v59 }
 0x51a   :  { %5567 = vmatprep.subr.bf16.mxu1 %v7331_v39 }
 0x51c   :  { %5527 = vmatpush1.bf16.msra.mxu0 %v7326_v53 }
 0x51d   :  { %5568 = vmatpush1.bf16.msra.mxu1 %v7329_v19  ;;  %5528 = vmatprep.subr.bf16.mxu0 %v7334_v1  ;;  %v7392_v1 = vld [vmem:[#allocation13 + $0x78] sm:$0xff]  }
 0x51e   :  { %5569 = vmatprep.subr.bf16.mxu1 %v7337_v28  ;;  %v7393_v28 = vld [vmem:[#allocation13 + $0x38] sm:$0xff]  }
 0x520   :  { %5529 = vmatpush1.bf16.msra.mxu0 %v7332_v35  ;;  %v7394_v35 = vld [vmem:[#allocation13 + $0x70] sm:$0xff]  }
 0x521   :  { %5570 = vmatpush1.bf16.msra.mxu1 %v7335_v43  ;;  %5530 = vmatprep.subr.bf16.mxu0 %v7340_v9  ;;  %v7396_v43 = vld [vmem:[#allocation13 + $0x68] sm:$0xff]  }
 0x522   :  { %5571 = vmatprep.subr.bf16.mxu1 %v7343_v29  ;;  %v7397_v9 = vld [vmem:[#allocation13 + $0x28] sm:$0xff]   ;;  %v7398_v29 = vld [vmem:[#allocation13 + $0x60] sm:$0xff]  }
 0x524   :  { %5531 = vmatpush1.bf16.msra.mxu0 %v7338_v20  ;;  %v7400_v20 = vld [vmem:[#allocation13 + $0x58] sm:$0xff]  }
 0x525   :  { %5572 = vmatpush1.bf16.msra.mxu1 %v7341_v23  ;;  %5532 = vmatprep.subr.bf16.mxu0 %v7346_v26  ;;  %v7401_v23 = vld [vmem:[#allocation13 + $0x18] sm:$0xff]   ;;  %v7402_v26 = vld [vmem:[#allocation13 + $0x50] sm:$0xff]  }
 0x526   :  { %5573 = vmatprep.subr.bf16.mxu1 %v7349_v37  ;;  %v1879_v37 = vrot.slane %v8160_v33, %v433_v8 }
 0x528   :  { %5533 = vmatpush2.bf16.msra.mxu0 %v7344_v0  ;;  %v1883_v0 = vrot.slane %v8160_v33, %v437_v13  ;;  %v7407_v13 = vld [vmem:[#allocation13] sm:$0xff]  }
 0x529   :  { %5574 = vmatpush2.bf16.msra.mxu1 %v7347_v30  ;;  %5534 = vmatprep.subr.bf16.mxu0 %v7352_v27  ;;  %v7403_v27 = vld [vmem:[#allocation13 + $0x10] sm:$0xff]   ;;  %v7408_v33 = vld [vmem:[#allocation19 + $0x78] sm:$0xff]  }
 0x52a   :  { %5575 = vmatprep.subr.bf16.mxu1 %v7355_v36 }
 0x52c   :  { %5535 = vmatpush2.bf16.msra.mxu0 %v7350_v25 }
 0x52d   :  { %5576 = vmatpush2.bf16.msra.mxu1 %v7353_v32  ;;  %5536 = vmatprep.subr.bf16.mxu0 %v7358_v17 }
 0x52e   :  { %5577 = vmatprep.subr.bf16.mxu1 %v7361_v16 }
 0x530   :  { %5537 = vmatpush2.bf16.msra.mxu0 %v7356_v24 }
 0x531   :  { %5578 = vmatpush2.bf16.msra.mxu1 %v7359_v34  ;;  %5538 = vmatprep.subr.bf16.mxu0 %v7364_v38  ;;  %v7404_v34 = vld [vmem:[#allocation13 + $0x48] sm:$0xff]  }
 0x532   :  { %5579 = vmatprep.subr.bf16.mxu1 %v7367_v40  ;;  %v7405_v40 = vld [vmem:[#allocation13 + $0x8] sm:$0xff]  }
 0x534   :  { %5539 = vmatpush2.bf16.msra.mxu0 %v7362_v41 }
 0x535   :  { %5580 = vmatpush2.bf16.msra.mxu1 %v7365_v61  ;;  %5540 = vmatprep.subr.bf16.mxu0 %v7370_v21  ;;  %v7406_v21 = vld [vmem:[#allocation13 + $0x40] sm:$0xff]  }
 0x536   :  { %5581 = vmatprep.subr.bf16.mxu1 %v7373_v3  ;;  %v7424_v3 = vld [vmem:[#allocation16 + $0x38] sm:$0xff]  }
 0x538   :  { %5541 = vmatpush2.bf16.msra.mxu0 %v7368_v10  ;;  %v7798_v10 = vmov 0.0  }
 0x539   :  { %5582 = vmatpush2.bf16.msra.mxu1 %v7371_v62  ;;  %5542 = vmatprep.subr.bf16.mxu0 %v7376_v42  ;;  %v7425_v62 = vld [vmem:[#allocation16 + $0x30] sm:$0xff]   ;;  %v7426_v42 = vld [vmem:[#allocation16 + $0x28] sm:$0xff]  }
 0x53a   :  { %5583 = vmatprep.subr.bf16.mxu1 %v7379_v6  ;;  %v7427_v6 = vld [vmem:[#allocation16 + $0x20] sm:$0xff]  }
 0x53c   :  { %5543 = vmatpush2.bf16.msra.mxu0 %v7374_v44  ;;  %v7428_v44 = vld [vmem:[#allocation16 + $0x18] sm:$0xff]  }
 0x53d   :  { %5584 = vmatpush2.bf16.msra.mxu1 %v7377_v45  ;;  %5544 = vmatprep.subr.bf16.mxu0 %v7382_v46  ;;  %v7429_v45 = vld [vmem:[#allocation16 + $0x10] sm:$0xff]  }
 0x53e   :  { %5585 = vmatprep.subr.bf16.mxu1 %v7385_v11 }
 0x540   :  { %5545 = vmatpush2.bf16.msra.mxu0 %v7380_v48 }
 0x541   :  { %5586 = vmatpush2.bf16.msra.mxu1 %v7383_v14  ;;  %5546 = vmatprep.subr.bf16.mxu0 %v7388_v49 }
 0x542   :  { %5587 = vmatprep.subr.bf16.mxu1 %v7391_v22 }
 0x544   :  { %5547 = vmatpush2.bf16.msra.mxu0 %v7386_v15 }
 0x545   :  { %5588 = vmatpush2.bf16.msra.mxu1 %v7389_v52  ;;  %7147 = vmatprep.subr.bf16.mxu0 %v7392_v1 }
 0x546   :  { %7231 = vmatprep.subr.bf16.mxu1 %v7798_v10 }
 0x547   :  { %v4896_v60 = vpop.f32.mrf.mxu0  ;;  %5549 = vmatmul.mubr.bf16.vlgmr.msra.gmra.mxu0 %v5116_v58 }
 0x548   :  { %v4897_v63 = vadd.f32 %v4896_v60, %v8170_v47  ;;  %v4937_v2 = vpop.f32.mrf.mxu1  ;;  %5590 = vmatmul.mubr.bf16.vlgmr.msra.gmra.mxu1 %v5118_v31  ;;  %7148 = vmatpush3.bf16.msra.mxu0 %v7393_v28  ;;  %v7395_v47 = vld [vmem:[#allocation13 + $0x30] sm:$0xff]   ;;  %v5184_v60 = vld [vmem:[#allocation12] sm:$0x3] }
 0x549   :  { %v4898_v4 = vpop.f32.mrf.mxu0  ;;  %7149 = vmatprep.subr.bf16.mxu0 %v7394_v35  ;;  %7232 = vmatpush3.bf16.msra.mxu1 %v7424_v3 }
 0x54a   :  { %v8177_v5 = vadd.f32 %v4937_v2, %v4897_v63  ;;  %v4899_v12 = vadd.f32 %v4898_v4, %v8172_v50  ;;  %v4939_v7 = vpop.f32.mrf.mxu1  ;;  %v7399_v50 = vld [vmem:[#allocation13 + $0x20] sm:$0xff]   ;;  %7233 = vmatprep.subr.bf16.mxu1 %v7798_v10  ;;  %v5189_v63 = vrot.slane %v5184_v60, %v7954_v56  ;;  %v5193_v2 = vrot.slane %v5184_v60, %v7957_v57  ;;  %v7410_v57 = vld [vmem:[#allocation19 + $0x70] sm:$0xff]  }
 0x54b   :  { %v4900_v59 = vpop.f32.mrf.mxu0  ;;  %v7409_v56 = vld [vmem:[#allocation19 + $0x38] sm:$0xff]   ;;  %7247 = vmatprep.mubr.msk.bf16.mxu1 %vm7799_vm2, %v7798_v10  ;;  %v7443_v60 = vld [vmem:[#allocation19 + $0x90] sm:$0xff]  }
 0x54c   :  { %v8180_v39 = vadd.f32 %v4939_v7, %v4899_v12  ;;  %v4941_v18 = vpop.f32.mrf.mxu1  ;;  %7150 = vmatpush3.bf16.msra.mxu0 %v7395_v47 }
 0x54d   :  { %v4901_v53 = vpop.f32.mrf.mxu0  ;;  %7151 = vmatprep.subr.bf16.mxu0 %v7396_v43  ;;  %7234 = vmatpush3.bf16.msra.mxu1 %v7425_v62 }
 0x54e   :  { %v4942_v19 = vpop.f32.mrf.mxu1  ;;  %7235 = vmatprep.subr.bf16.mxu1 %v7798_v10 }
 0x550   :  { %7152 = vmatpush3.bf16.msra.mxu0 %v7397_v9  ;;  %v5113_v9 = vmax.f32 %v8180_v39, 0.0  ;;  %v7415_v39 = vld [vmem:[#allocation19 + $0x20] sm:$0xff]  }
 0x551   :  { %7153 = vmatprep.subr.bf16.mxu0 %v7398_v29  ;;  %7236 = vmatpush3.bf16.msra.mxu1 %v7426_v42 }
 0x552   :  { %7237 = vmatprep.subr.bf16.mxu1 %v7798_v10 }
 0x554   :  { %7154 = vmatpush3.bf16.msra.mxu0 %v7399_v50 }
 0x555   :  { %7155 = vmatprep.subr.bf16.mxu0 %v7400_v20  ;;  %7238 = vmatpush3.bf16.msra.mxu1 %v7427_v6 }
 0x556   :  { %7239 = vmatprep.subr.bf16.mxu1 %v7798_v10 }
 0x558   :  { %7156 = vmatpush3.bf16.msra.mxu0 %v7401_v23 }
 0x559   :  { %7157 = vmatprep.subr.bf16.mxu0 %v7402_v26  ;;  %7240 = vmatpush3.bf16.msra.mxu1 %v7428_v44  ;;  %v5891_v26 = vpack.c.bf16 %v5113_v9, %v5113_v9  ;;  %v7451_v9 = vld [vmem:[#allocation22 + $0x20] sm:$0xff]  }
 0x55a   :  { %7241 = vmatprep.subr.bf16.mxu1 %v7798_v10 }
 0x55c   :  { %7158 = vmatpush3.bf16.msra.mxu0 %v7403_v27  ;;  %v7414_v27 = vld [vmem:[#allocation19 + $0x60] sm:$0xff]  }
 0x55d   :  { %7159 = vmatprep.subr.bf16.mxu0 %v7404_v34  ;;  %7242 = vmatpush3.bf16.msra.mxu1 %v7429_v45  ;;  %v7422_v34 = vld [vmem:[#allocation19 + $0x40] sm:$0xff]   ;;  %v7433_v45 = vld [vmem:[#allocation19 + $0xb8] sm:$0xff]  }
 0x55e   :  { %7243 = vmatprep.subr.bf16.mxu1 %v7798_v10 }
 0x560   :  { %7160 = vmatpush3.bf16.msra.mxu0 %v7405_v40  ;;  %v5112_v40 = vmax.f32 %v8177_v5, 0.0 }
 0x561   :  { %7161 = vmatprep.subr.bf16.mxu0 %v7406_v21  ;;  %v7078_v21 = vld [vmem:[#allocation15] ss:$0 sm:$0xff] }
 0x564   :  { %7162 = vmatpush3.bf16.msra.mxu0 %v7407_v13 }
 0x565   :  { %7178 = vmatprep.subr.bf16.mxu0 %v7408_v33 }
 0x587   :  { %v4978_v30 = vpop.f32.mrf.mxu0 }
 0x588   :  { %v4979_v36 = vadd.f32 %v4978_v30, %v1879_v37  ;;  %v5019_v25 = vpop.f32.mrf.mxu1  ;;  %v7411_v37 = vld [vmem:[#allocation19 + $0x30] sm:$0xff]   ;;  %v7413_v30 = vld [vmem:[#allocation19 + $0x28] sm:$0xff]  }
 0x589   :  { %v4980_v32 = vpop.f32.mrf.mxu0 }
 0x58a   :  { %v5020_v17 = vadd.f32 %v5019_v25, %v4979_v36  ;;  %v4981_v16 = vadd.f32 %v4980_v32, %v1883_v0  ;;  %v5021_v24 = vpop.f32.mrf.mxu1  ;;  %v7412_v0 = vld [vmem:[#allocation19 + $0x68] sm:$0xff]   ;;  %v7416_v36 = vld [vmem:[#allocation19 + $0x58] sm:$0xff]   ;;  %v7418_v32 = vld [vmem:[#allocation19 + $0x50] sm:$0xff]  }
 0x58b   :  { %v4982_v38 = vpop.f32.mrf.mxu0  ;;  %v7417_v25 = vld [vmem:[#allocation19 + $0x18] sm:$0xff]  }
 0x58c   :  { %v5022_v41 = vadd.f32 %v5021_v24, %v4981_v16  ;;  %v5023_v61 = vpop.f32.mrf.mxu1  ;;  %v7420_v16 = vld [vmem:[#allocation19 + $0x48] sm:$0xff]   ;;  %v7423_v38 = vld [vmem:[#allocation19] sm:$0xff]  }
 0x58d   :  { %v4983_v8 = vpop.f32.mrf.mxu0  ;;  %v7421_v24 = vld [vmem:[#allocation19 + $0x8] sm:$0xff]  }
 0x58e   :  { %v5024_v55 = vpop.f32.mrf.mxu1  ;;  %v7430_v61 = vld [vmem:[#allocation16 + $0x8] sm:$0xff]   ;;  %v7431_v8 = vld [vmem:[#allocation16] sm:$0xff]  }
 0x58f   :  { %7244 = vmatpush3.bf16.msra.mxu1 %v7430_v61  ;;  %v7432_v55 = vld [vmem:[#allocation19 + $0xf8] sm:$0xff]  }
 0x590   :  { %7245 = vmatprep.subr.bf16.mxu1 %v7798_v10 }
 0x593   :  { %7246 = vmatpush3.bf16.msra.mxu1 %v7431_v8 }
 0x594   :  { %7200 = vmatprep.subr.bf16.mxu1 %v7432_v55 }
 0x5c7   :  { %v5060_v46 = vpop.f32.mrf.mxu0 }
 0x5c8   :  { %v5061_v11 = vadd.f32 %v5060_v46, %v5020_v17  ;;  %v5101_v48 = vpop.f32.mrf.mxu1  ;;  %v7419_v17 = vld [vmem:[#allocation19 + $0x10] sm:$0xff]  }
 0x5c9   :  { %v5062_v14 = vpop.f32.mrf.mxu0 }
 0x5ca   :  { %v8194_v49 = vadd.f32 %v5101_v48, %v5061_v11  ;;  %v5063_v22 = vadd.f32 %v5062_v14, %v5022_v41  ;;  %v5103_v15 = vpop.f32.mrf.mxu1  ;;  %v5890_v41 = vpack.c.bf16 %v5112_v40, %v5112_v40  ;;  %v7434_v11 = vld [vmem:[#allocation19 + $0xf0] sm:$0xff]  }
 0x5cb   :  { %v5064_v51 = vpop.f32.mrf.mxu0  ;;  %v7435_v14 = vld [vmem:[#allocation19 + $0xb0] sm:$0xff]  }
 0x5cc   :  { %v8197_v52 = vadd.f32 %v5103_v15, %v5063_v22  ;;  %v5105_v54 = vpop.f32.mrf.mxu1  ;;  %v7436_v22 = vld [vmem:[#allocation19 + $0xe8] sm:$0xff]   ;;  %v7438_v51 = vld [vmem:[#allocation19 + $0xe0] sm:$0xff]  }
 0x5cd   :  { %v5065_v58 = vpop.f32.mrf.mxu0  ;;  %v7437_v15 = vld [vmem:[#allocation19 + $0xa8] sm:$0xff]   ;;  %v7439_v54 = vld [vmem:[#allocation19 + $0xa0] sm:$0xff]  }
 0x5ce   :  { %v5106_v31 = vpop.f32.mrf.mxu1  ;;  %v5115_v42 = vmax.f32 %v8197_v52, 0.0  ;;  %v7440_v52 = vld [vmem:[#allocation19 + $0xd8] sm:$0xff]  }
 0x5cf   :  { %v7441_v58 = vld [vmem:[#allocation19 + $0x98] sm:$0xff]   ;;  %v7442_v31 = vld [vmem:[#allocation19 + $0xd0] sm:$0xff]  }
 0x5d0   :  { %v5893_v48 = vpack.c.bf16 %v5115_v42, %v5115_v42 }
 0x607   :  { %v5550_v4 = vpop.f32.mrf.mxu0 }
 0x608   :  { %v5551_v12 = vadd.f32 %v5550_v4, %v5189_v63  ;;  %v5591_v7 = vpop.f32.mrf.mxu1  ;;  %v7444_v63 = vld [vmem:[#allocation19 + $0xc8] sm:$0xff]  }
 0x609   :  { %v5552_v59 = vpop.f32.mrf.mxu0  ;;  %v7445_v4 = vld [vmem:[#allocation19 + $0x88] sm:$0xff]  }
 0x60a   :  { %v5592_v18 = vadd.f32 %v5591_v7, %v5551_v12  ;;  %v5553_v53 = vadd.f32 %v5552_v59, %v5193_v2  ;;  %v5593_v19 = vpop.f32.mrf.mxu1  ;;  %v7446_v12 = vld [vmem:[#allocation19 + $0xc0] sm:$0xff]  }
 0x60b   :  { %v5554_v1 = vpop.f32.mrf.mxu0 }
 0x60c   :  { %v5594_v28 = vadd.f32 %v5593_v19, %v5553_v53  ;;  %v5595_v35 = vpop.f32.mrf.mxu1  ;;  %v5598_v47 = vmax.f32 %v5592_v18, 0.0  ;;  %v7447_v53 = vld [vmem:[#allocation19 + $0x80] sm:$0xff]   ;;  %v5114_v19 = vmax.f32 %v8194_v49, 0.0 }
 0x60d   :  { %v5555_v43 = vpop.f32.mrf.mxu0  ;;  %v7448_v35 = vld [vmem:[#allocation22 + $0x38] sm:$0xff]  }
 0x60e   :  { %v5599_v29 = vmax.f32 %v5594_v28, 0.0  ;;  %v5596_v50 = vpop.f32.mrf.mxu1  ;;  %v5600_v23 = vpack.c.bf16 %v5598_v47, %v5598_v47  ;;  %v5892_v28 = vpack.c.bf16 %v5114_v19, %v5114_v19  ;;  %v7449_v47 = vld [vmem:[#allocation22 + $0x30] sm:$0xff]   ;;  %v7450_v43 = vld [vmem:[#allocation22 + $0x28] sm:$0xff]   ;;  %v7452_v49 = vld [vmem:[#allocation22 + $0x18] sm:$0xff]  }
 0x60f   :  { %v7454_v50 = vld [vmem:[#allocation22 + $0x8] sm:$0xff]  }
 0x610   :  { %v5601_v20 = vpack.c.bf16 %v5599_v29, %v5599_v29  ;;  %v7453_v29 = vld [vmem:[#allocation22 + $0x10] sm:$0xff]  }
 0x612   :  { %5769 = vmatprep.mubr.bf16.mxu0 %v5601_v20  ;;  %v7455_v20 = vld [vmem:[#allocation22] sm:$0xff]  }
 0x613   :  { %5770 = vmatmul.mubr.bf16.vlgmr.msra.gmra.mxu0 %v5600_v23 }
 0x614   :  { %7179 = vmatpush3.bf16.msra.mxu0 %v7409_v56  ;;  %6189 = vmatprep.mubr.bf16.mxu0 %v5891_v26 }
 0x615   :  { %7180 = vmatprep.subr.bf16.mxu0 %v7410_v57 }
 0x618   :  { %7181 = vmatpush3.bf16.msra.mxu0 %v7411_v37  ;;  %v7104_v37 = vld [vmem:[#allocation21] ss:$0 sm:$0xff] }
 0x619   :  { %7182 = vmatprep.subr.bf16.mxu0 %v7412_v0 }
 0x61c   :  { %7183 = vmatpush3.bf16.msra.mxu0 %v7413_v30 }
 0x61d   :  { %7184 = vmatprep.subr.bf16.mxu0 %v7414_v27 }
 0x620   :  { %7185 = vmatpush3.bf16.msra.mxu0 %v7415_v39 }
 0x621   :  { %7186 = vmatprep.subr.bf16.mxu0 %v7416_v36 }
 0x624   :  { %7187 = vmatpush3.bf16.msra.mxu0 %v7417_v25 }
 0x625   :  { %7188 = vmatprep.subr.bf16.mxu0 %v7418_v32 }
 0x628   :  { %7189 = vmatpush3.bf16.msra.mxu0 %v7419_v17 }
 0x629   :  { %7190 = vmatprep.subr.bf16.mxu0 %v7420_v16 }
 0x62c   :  { %7191 = vmatpush3.bf16.msra.mxu0 %v7421_v24  ;;  %v7095_v24 = vld [vmem:[#allocation18] ss:$0 sm:$0xff] }
 0x62d   :  { %7192 = vmatprep.subr.bf16.mxu0 %v7422_v34  ;;  %v7137_v34 = vld [vmem:[#allocation24] ss:$0 sm:$0xff] }
 0x630   :  { %7193 = vmatpush3.bf16.msra.mxu0 %v7423_v38 }
 0x631   :  { %7251 = vmatprep.subr.bf16.mxu0 %v7798_v10 }
 0x633   :  { %6190 = vmatmul.mubr.bf16.vlgmr.msra.gmra.mxu0 %v5890_v41 }
 0x634   :  { %7267 = vmatprep.mubr.msk.bf16.mxu0 %vm7799_vm2, %v7798_v10  ;;  %7252 = vmatpush3.bf16.msra.mxu0 %v7448_v35 }
 0x635   :  { %7253 = vmatprep.subr.bf16.mxu0 %v7798_v10 }
 0x638   :  { %7254 = vmatpush3.bf16.msra.mxu0 %v7449_v47 }
 0x639   :  { %7255 = vmatprep.subr.bf16.mxu0 %v7798_v10 }
 0x63c   :  { %7256 = vmatpush3.bf16.msra.mxu0 %v7450_v43 }
 0x63d   :  { %7257 = vmatprep.subr.bf16.mxu0 %v7798_v10 }
 0x640   :  { %7258 = vmatpush3.bf16.msra.mxu0 %v7451_v9 }
 0x641   :  { %7259 = vmatprep.subr.bf16.mxu0 %v7798_v10 }
 0x644   :  { %7260 = vmatpush3.bf16.msra.mxu0 %v7452_v49 }
 0x645   :  { %7261 = vmatprep.subr.bf16.mxu0 %v7798_v10 }
 0x648   :  { %7262 = vmatpush3.bf16.msra.mxu0 %v7453_v29 }
 0x649   :  { %7263 = vmatprep.subr.bf16.mxu0 %v7798_v10 }
 0x64c   :  { %7264 = vmatpush3.bf16.msra.mxu0 %v7454_v50 }
 0x64d   :  { %7265 = vmatprep.subr.bf16.mxu0 %v7798_v10 }
 0x650   :  { %7266 = vmatpush3.bf16.msra.mxu0 %v7455_v20 }
 0x6d3   :  { %v7163_v5 = vpop.f32.mrf.mxu0 }
 0x6d5   :  { %v7164_v13 = vpop.f32.mrf.mxu0 }
 0x6d6   :  { %v7165_v33 = vadd.f32 %v7164_v13, %v7163_v5 }
 0x6d7   :  { %v7166_v3 = vpop.f32.mrf.mxu0 }
 0x6d8   :  { %v5772_v62 = vadd.f32 %v7165_v33, %v7078_v21 }
 0x6d9   :  { %v7167_v6 = vpop.f32.mrf.mxu0 }
 0x6da   :  { %v5777_v44 = vmax.f32 %v5772_v62, 0.0 }
 0x6dc   :  { %v5778_v46 = vpack.c.bf16 %v5777_v44, %v5777_v44 }
 0x6de   :  { %7248 = vmatmul.mubr.bf16.vlgmr.msra.gmra.mxu1 %v5778_v46 }
 0x6df   :  { %7201 = vmatpush3.bf16.msra.mxu1 %v7433_v45  ;;  %6229 = vmatprep.mubr.bf16.mxu1 %v5893_v48 }
 0x6e0   :  { %7202 = vmatprep.subr.bf16.mxu1 %v7434_v11 }
 0x6e3   :  { %7203 = vmatpush3.bf16.msra.mxu1 %v7435_v14 }
 0x6e4   :  { %7204 = vmatprep.subr.bf16.mxu1 %v7436_v22 }
 0x6e7   :  { %7205 = vmatpush3.bf16.msra.mxu1 %v7437_v15 }
 0x6e8   :  { %7206 = vmatprep.subr.bf16.mxu1 %v7438_v51 }
 0x6eb   :  { %7207 = vmatpush3.bf16.msra.mxu1 %v7439_v54 }
 0x6ec   :  { %7208 = vmatprep.subr.bf16.mxu1 %v7440_v52 }
 0x6ef   :  { %7209 = vmatpush3.bf16.msra.mxu1 %v7441_v58 }
 0x6f0   :  { %7210 = vmatprep.subr.bf16.mxu1 %v7442_v31 }
 0x6f3   :  { %v7194_v2 = vpop.f32.mrf.mxu0  ;;  %7211 = vmatpush3.bf16.msra.mxu1 %v7443_v60 }
 0x6f4   :  { %7212 = vmatprep.subr.bf16.mxu1 %v7444_v63 }
 0x6f5   :  { %v7195_v7 = vpop.f32.mrf.mxu0 }
 0x6f6   :  { %v7196_v59 = vadd.f32 %v7195_v7, %v7194_v2 }
 0x6f7   :  { %v7197_v18 = vpop.f32.mrf.mxu0  ;;  %7213 = vmatpush3.bf16.msra.mxu1 %v7445_v4 }
 0x6f8   :  { %7214 = vmatprep.subr.bf16.mxu1 %v7446_v12  ;;  %v6192_v27 = vadd.f32 %v7196_v59, %v7104_v37 }
 0x6f9   :  { %v7198_v1 = vpop.f32.mrf.mxu0 }
 0x6fb   :  { %7215 = vmatpush3.bf16.msra.mxu1 %v7447_v53 }
 0x6fe   :  { %6230 = vmatmul.mubr.bf16.vlgmr.msra.gmra.mxu1 %v5892_v28 }
 0x79e   :  { %v5884_v56 = vpop.f32.mrf.mxu1 }
 0x79f   :  { %v5885_v38 = vadd.f32 %v7095_v24, %v5884_v56 }
 0x7a0   :  { %v7249_v23 = vpop.f32.mrf.mxu1 }
 0x7a2   :  { %v5887_v57 = vpop.f32.mrf.mxu1 }
 0x7a4   :  { %v7250_v26 = vpop.f32.mrf.mxu1 }
 0x7be   :  { %v7216_v0 = vpop.f32.mrf.mxu1 }
 0x7c0   :  { %v7217_v30 = vpop.f32.mrf.mxu1 }
 0x7c1   :  { %v7218_v39 = vadd.f32 %v7217_v30, %v7216_v0 }
 0x7c2   :  { %v7219_v36 = vpop.f32.mrf.mxu1 }
 0x7c3   :  { %v6232_v25 = vadd.f32 %v7218_v39, %v6192_v27 }
 0x7c4   :  { %v7220_v32 = vpop.f32.mrf.mxu1 }
 0x7c5   :  { %v6237_v17 = vmax.f32 %v6232_v25, 0.0 }
 0x7c7   :  { %v6238_v16 = vpack.c.bf16 %v6237_v17, %v6237_v17 }
 0x7c9   :  { %7268 = vmatmul.mubr.bf16.vlgmr.msra.gmra.mxu0 %v6238_v16 }
 0x889   :  { %v6344_v10 = vpop.f32.mrf.mxu0 }
 0x88a   :  { %v6345_v40 = vadd.f32 %v7137_v34, %v6344_v10 }
 0x88b   :  { %v7269_v41 = vpop.f32.mrf.mxu0 }
 0x88c   :  { %v6352_v61 = vcombine.low %v5885_v38, %v6345_v40 }
 0x88d   :  { %v6347_v8 = vpop.f32.mrf.mxu0 }
 0x88e   :  { %7146 = vst.sshfl [vmem:[%s8234_s15] sm:$0x33 pattern:$0x76325410] %v6352_v61 }
 0x88f   :  { %v7270_v55 = vpop.f32.mrf.mxu0 }
 0x890   :  { %6366 = vsyncpa [#allocation3], 1 }
 0x891   :  { %6367 = vsyncpa [#allocation5], 1 }
 0x892   :  { %6368 = vsyncpa [#allocation8], 1 }
 0x893   :  { %6369 = vsyncpa [#allocation11], 1 }
 0x894   :  { %6370 = vsyncpa [#allocation14], 1 }
 0x895   :  { %6371 = vsyncpa [#allocation17], 1 }
 0x896   :  { %6372 = vsyncpa [#allocation20], 1 }
 0x897   :  { %6373 = vsyncpa [#allocation23], 1 }

</bundles_post_ra>
